<compile_context>
chip_gen: v6e
topology: v6e:2x2x1
jax: 0.10.0
libtpu: 0.0.40
codegen_flags: <defaults>
</compile_context>

<pallas_src>
import functools
import math

import jax
import jax.numpy as jnp
from jax import lax
from jax.experimental import pallas as pl
from jax.experimental.pallas import tpu as pltpu

LN_EPS = 1e-5                       # torch.nn.LayerNorm default
ROW_TILE = 512                      # max rows per grid step for row-wise kernels


def _vmem_limit_bytes():
    # ~100 MiB on 128-MiB chips (v5e/v6e); 48 MiB on 64-MiB v7x.
    cap = 64 * 1024 * 1024
    try:
        cap = int(getattr(pltpu.get_tpu_info(), "vmem_capacity_bytes", cap))
    except Exception:
        pass
    return 100 * 1024 * 1024 if cap >= 120 * 1024 * 1024 else 48 * 1024 * 1024


VMEM_LIMIT = _vmem_limit_bytes()


def _row_tiles(m):
    tm = min(ROW_TILE, m)
    # Give the pipeline / v7x megacore at least two grid steps when possible.
    if tm == m and m >= 16 and (m // 2) % 8 == 0:
        tm = m // 2
    return tm, pl.cdiv(m, tm)


def _compiler_params():
    return pltpu.CompilerParams(dimension_semantics=("parallel",),
                                vmem_limit_bytes=VMEM_LIMIT)


# ----------------------------- Pallas kernels ------------------------------

def _layernorm_kernel(x_ref, g_ref, b_ref, o_ref):
    x = x_ref[...].astype(jnp.float32)                        # (TM, D)
    mu = jnp.mean(x, axis=-1, keepdims=True)
    var = jnp.mean(jnp.square(x - mu), axis=-1, keepdims=True)
    xn = (x - mu) * lax.rsqrt(var + LN_EPS)
    o_ref[...] = (xn * g_ref[...] + b_ref[...]).astype(o_ref.dtype)


def _matmul_bias_kernel(x_ref, w_ref, b_ref, o_ref):
    # x: (TM, K) fp32, w: (K, N) bf16 pre-packed, b: (1, N) fp32
    acc = jnp.dot(x_ref[...].astype(w_ref.dtype), w_ref[...],
                  preferred_element_type=jnp.float32)
    o_ref[...] = (acc + b_ref[...]).astype(o_ref.dtype)


def _ffn_kernel(x_ref, g_ref, beta_ref, w1_ref, b1_ref, w2_ref, b2_ref, o_ref):
    # fused LN -> Linear -> exact GELU -> Linear -> residual (bf16 weights)
    x = x_ref[...].astype(jnp.float32)                        # (TM, D)
    mu = jnp.mean(x, axis=-1, keepdims=True)
    var = jnp.mean(jnp.square(x - mu), axis=-1, keepdims=True)
    xn = (x - mu) * lax.rsqrt(var + LN_EPS) * g_ref[...] + beta_ref[...]
    h = jnp.dot(xn.astype(w1_ref.dtype), w1_ref[...],
                preferred_element_type=jnp.float32) + b1_ref[...]
    h = 0.5 * h * (1.0 + lax.erf(h * (1.0 / math.sqrt(2.0))))     # torch GELU (erf)
    y = jnp.dot(h.astype(w2_ref.dtype), w2_ref[...],
                preferred_element_type=jnp.float32) + b2_ref[...]
    o_ref[...] = (y + x).astype(o_ref.dtype)                  # residual fused
    # TODO(synk): at production D (>=768) on v7x, stream w1/w2 over a K/N grid
    # axis with an fp32 accumulator scratch instead of keeping both resident.


def _attn_block_kernel(x_ref, g_ref, beta_ref, wqkv_ref, wout_ref, bout_ref,
                       bias_ref, o_ref, qkv_scr, attn_scr, *, num_heads, scale):
    # One batch element per grid step.  Blocks are lane-dense:
    #   x/o: (1, N, D);  qkv matmul output: (N, 3D);  head split stays in VMEM.
    x = x_ref[0].astype(jnp.float32)                          # (N, D)
    d = x.shape[-1]
    dh = d // num_heads
    # --- pre-attention LayerNorm (fp32) ---
    mu = jnp.mean(x, axis=-1, keepdims=True)
    var = jnp.mean(jnp.square(x - mu), axis=-1, keepdims=True)
    xn = (x - mu) * lax.rsqrt(var + LN_EPS) * g_ref[...] + beta_ref[...]
    # --- QKV projection: single dense D-deep MXU matmul, f32 accumulation ---
    qkv = jnp.dot(xn.astype(wqkv_ref.dtype), wqkv_ref[...],
                  preferred_element_type=jnp.float32)         # (N, 3D)
    qkv_scr[...] = qkv.astype(qkv_scr.dtype)                  # bf16 VMEM stash
    # --- per-head attention; head split/merge via VMEM ref slices only ------
    for h in range(num_heads):
        lo = h * dh
        q_h = qkv_scr[:, lo:lo + dh]                          # (N, dh) bf16
        k_h = qkv_scr[:, d + lo:d + lo + dh]                  # (N, dh) bf16
        v_h = qkv_scr[:, 2 * d + lo:2 * d + lo + dh]          # (N, dh) bf16
        s = lax.dot_general(q_h, k_h, (((1,), (1,)), ((), ())),
                            preferred_element_type=jnp.float32) * scale
        s = s + bias_ref[h]                                   # (N, N) fp32
        s = s - jnp.max(s, axis=-1, keepdims=True)
        p = jnp.exp(s)
        p = p * pl.reciprocal(jnp.sum(p, axis=-1, keepdims=True), approx=True)
        o_h = jnp.dot(p.astype(v_h.dtype), v_h,
                      preferred_element_type=jnp.float32)     # (N, dh)
        attn_scr[:, lo:lo + dh] = o_h.astype(attn_scr.dtype)  # head merge
    # --- output projection (+bias) fused with residual add ------------------
    out = jnp.dot(attn_scr[...], wout_ref[...],
                  preferred_element_type=jnp.float32)         # (N, D)
    o_ref[0] = (out + bout_ref[...] + x).astype(o_ref.dtype)
    # TODO(synk): for large N convert to flash/online-softmax with a KV-tile
    # grid axis and index_map-tiled bias so the O(H*N^2) bias/score buffers
    # never have to be VMEM-resident (mandatory on v7x's 64 MiB at real N).


# ----------------------------- Pallas wrappers ------------------------------

def pallas_layernorm(x2d, g, b):
    M, D = x2d.shape
    tm, nb = _row_tiles(M)
    return pl.pallas_call(
        _layernorm_kernel,
        out_shape=jax.ShapeDtypeStruct((M, D), x2d.dtype),
        grid=(nb,),
        in_specs=[pl.BlockSpec((tm, D), lambda i: (i, 0)),
                  pl.BlockSpec((1, D), lambda i: (0, 0)),
                  pl.BlockSpec((1, D), lambda i: (0, 0))],
        out_specs=pl.BlockSpec((tm, D), lambda i: (i, 0)),
        compiler_params=_compiler_params(),
    )(x2d, g, b)


def pallas_linear(x2d, w_kn, b_1n):
    M, K = x2d.shape
    n_out = w_kn.shape[1]
    tm, nb = _row_tiles(M)
    return pl.pallas_call(
        _matmul_bias_kernel,
        out_shape=jax.ShapeDtypeStruct((M, n_out), x2d.dtype),
        grid=(nb,),
        in_specs=[pl.BlockSpec((tm, K), lambda i: (i, 0)),
                  pl.BlockSpec((K, n_out), lambda i: (0, 0)),    # weight resident
                  pl.BlockSpec((1, n_out), lambda i: (0, 0))],
        out_specs=pl.BlockSpec((tm, n_out), lambda i: (i, 0)),
        compiler_params=_compiler_params(),
    )(x2d, w_kn, b_1n)


def pallas_ffn(x2d, g, beta, w1, b1, w2, b2):
    M, D = x2d.shape
    inner = w1.shape[1]
    tm, nb = _row_tiles(M)
    return pl.pallas_call(
        _ffn_kernel,
        out_shape=jax.ShapeDtypeStruct((M, D), x2d.dtype),
        grid=(nb,),
        in_specs=[pl.BlockSpec((tm, D), lambda i: (i, 0)),
                  pl.BlockSpec((1, D), lambda i: (0, 0)),
                  pl.BlockSpec((1, D), lambda i: (0, 0)),
                  pl.BlockSpec((D, inner), lambda i: (0, 0)),
                  pl.BlockSpec((1, inner), lambda i: (0, 0)),
                  pl.BlockSpec((inner, D), lambda i: (0, 0)),
                  pl.BlockSpec((1, D), lambda i: (0, 0))],
        out_specs=pl.BlockSpec((tm, D), lambda i: (i, 0)),
        input_output_aliases={0: 0},            # residual buffer reused in-place
        compiler_params=_compiler_params(),
    )(x2d, g, beta, w1, b1, w2, b2)


def pallas_attention_block(x3, g, beta, wqkv, wout, bout, bias, *, num_heads, scale):
    B, N, D = x3.shape
    H = bias.shape[0]
    kern = functools.partial(_attn_block_kernel, num_heads=num_heads, scale=scale)
    xspec = pl.BlockSpec((1, N, D), lambda b: (b, 0, 0))
    return pl.pallas_call(
        kern,
        out_shape=jax.ShapeDtypeStruct((B, N, D), x3.dtype),
        grid=(B,),
        in_specs=[xspec,
                  pl.BlockSpec((1, D), lambda b: (0, 0)),
                  pl.BlockSpec((1, D), lambda b: (0, 0)),
                  pl.BlockSpec((D, 3 * D), lambda b: (0, 0)),    # weights resident
                  pl.BlockSpec((D, D), lambda b: (0, 0)),
                  pl.BlockSpec((1, D), lambda b: (0, 0)),
                  pl.BlockSpec((H, N, N), lambda b: (0, 0, 0))], # bias resident
        out_specs=xspec,
        scratch_shapes=[pltpu.VMEM((N, 3 * D), jnp.bfloat16),    # qkv stash
                        pltpu.VMEM((N, D), jnp.bfloat16)],       # merged heads
        input_output_aliases={0: 0},            # residual buffer reused in-place
        compiler_params=_compiler_params(),
    )(x3, g, beta, wqkv, wout, bout, bias)


# --------------------------- pure-JAX reference -----------------------------

def _layernorm_ref(x, g, b):
    mu = jnp.mean(x, -1, keepdims=True)
    var = jnp.mean(jnp.square(x - mu), -1, keepdims=True)
    return (x - mu) / jnp.sqrt(var + LN_EPS) * g + b


def _attn_block_ref(x3, layer, bias, num_heads, scale):
    B, N, D = x3.shape
    dh = D // num_heads
    xn = _layernorm_ref(x3, layer['attn_ln_g'], layer['attn_ln_b'])
    qkv = xn @ layer['w_qkv'].astype(jnp.float32)
    q, k, v = jnp.split(qkv, 3, axis=-1)

    def split_heads(t):
        return t.reshape(B, N, num_heads, dh).transpose(0, 2, 1, 3)

    q, k, v = split_heads(q), split_heads(k), split_heads(v)
    s = jnp.einsum('bhid,bhjd->bhij', q, k) * scale + bias
    p = jax.nn.softmax(s, axis=-1)
    o = jnp.einsum('bhij,bhjd->bhid', p, v)
    o = o.transpose(0, 2, 1, 3).reshape(B, N, D)
    return o @ layer['w_out'].astype(jnp.float32) + layer['b_out'] + x3


def _ffn_ref(x2d, layer):
    xn = _layernorm_ref(x2d, layer['ffn_ln_g'], layer['ffn_ln_b'])
    h = xn @ layer['w1'].astype(jnp.float32) + layer['b1']
    h = 0.5 * h * (1.0 + lax.erf(h * (1.0 / math.sqrt(2.0))))
    return h @ layer['w2'].astype(jnp.float32) + layer['b2'] + x2d


# ------------------------------- ViT forward --------------------------------

def vit_forward(imgs, attn_bias, params, *, dim, num_heads, patch,
                out_indices, use_pallas=True):
    B, C, H, W = imgs.shape
    p = patch
    # rearrange 'b c (h i) (w j) -> b (h w) (c i j)'  (pure layout glue)
    x = imgs.reshape(B, C, H // p, p, W // p, p)
    x = x.transpose(0, 2, 4, 1, 3, 5).reshape(B, (H // p) * (W // p), C * p * p)
    _, N, P = x.shape
    D = dim
    dh = D // num_heads
    scale = dh ** -0.5

    if use_pallas:
        x2 = pallas_linear(x.reshape(B * N, P), params['embed_w'], params['embed_b'])
    else:
        x2 = x.reshape(B * N, P) @ params['embed_w'].astype(jnp.float32) + params['embed_b']
    x3 = x2.reshape(B, N, D)

    out_features = []
    for i, layer in enumerate(params['layers']):
        if use_pallas:
            # fused: LN -> QKV -> per-head softmax attn -> out-proj -> +residual
            x3 = pallas_attention_block(
                x3, layer['attn_ln_g'], layer['attn_ln_b'], layer['w_qkv'],
                layer['w_out'], layer['b_out'], attn_bias,
                num_heads=num_heads, scale=scale)
            # fused: LN -> Linear -> GELU -> Linear -> +residual
            x3 = pallas_ffn(x3.reshape(B * N, D), layer['ffn_ln_g'],
                            layer['ffn_ln_b'], layer['w1'], layer['b1'],
                            layer['w2'], layer['b2']).reshape(B, N, D)
        else:
            x3 = _attn_block_ref(x3, layer, attn_bias, num_heads, scale)
            x3 = _ffn_ref(x3.reshape(B * N, D), layer).reshape(B, N, D)
        if i in out_indices:
            kk = int(math.sqrt(N))
            out_features.append(x3.reshape(B, kk, kk, D).transpose(0, 3, 1, 2))

    x2d = x3.reshape(B * N, D)
    if use_pallas:
        xf = pallas_layernorm(x2d, params['norm_g'], params['norm_b'])
    else:
        xf = _layernorm_ref(x2d, params['norm_g'], params['norm_b'])
    return xf.reshape(B, N, D), out_features


# ------------------------------ parameters ----------------------------------

def init_params(key, dim, depth, in_channels, patch):
    """Weights in torch nn.Linear layout (N_out, K); biases 1-D; fp32."""
    P = patch * patch * in_channels
    keys = iter(jax.random.split(key, 4 + depth * 8))

    def nrm(shape, scl=0.05):
        return (scl * jax.random.normal(next(keys), shape)).astype(jnp.float32)

    params = dict(
        embed_w=nrm((dim, P)),
        embed_b=nrm((dim,)),
        norm_g=jnp.ones((dim,), jnp.float32),
        norm_b=jnp.zeros((dim,), jnp.float32),
        layers=[],
    )
    for _ in range(depth):
        params['layers'].append(dict(
            attn_ln_g=jnp.ones((dim,), jnp.float32),
            attn_ln_b=jnp.zeros((dim,), jnp.float32),
            w_qkv=nrm((3 * dim, dim)),        # nn.Linear(dim, 3*dim, bias=False)
            w_out=nrm((dim, dim)),
            b_out=nrm((dim,)),
            ffn_ln_g=jnp.ones((dim,), jnp.float32),
            ffn_ln_b=jnp.zeros((dim,), jnp.float32),
            w1=nrm((4 * dim, dim)),
            b1=nrm((4 * dim,)),
            w2=nrm((dim, 4 * dim)),
            b2=nrm((dim,)),
        ))
    return params


def pack_params(params):
    """One-time pre-pack: matmul weights (N_out,K)->(K,N_out) in bf16;
    biases / LN params stay fp32 as (1, N) rows."""
    def t(w):
        return jnp.asarray(w).T.astype(jnp.bfloat16)

    def row(v):
        return jnp.asarray(v).reshape(1, -1).astype(jnp.float32)

    packed = dict(
        embed_w=t(params['embed_w']), embed_b=row(params['embed_b']),
        norm_g=row(params['norm_g']), norm_b=row(params['norm_b']),
        layers=[],
    )
    for L in params['layers']:
        packed['layers'].append(dict(
            attn_ln_g=row(L['attn_ln_g']), attn_ln_b=row(L['attn_ln_b']),
            w_qkv=t(L['w_qkv']),
            w_out=t(L['w_out']), b_out=row(L['b_out']),
            ffn_ln_g=row(L['ffn_ln_g']), ffn_ln_b=row(L['ffn_ln_b']),
            w1=t(L['w1']), b1=row(L['b1']),
            w2=t(L['w2']), b2=row(L['b2']),
        ))
    return packed


# ----------------------------------- main ------------------------------------

if __name__ == "__main__":
    DIM, DEPTH, IN_CH = 128, 2, 4            # D = 128 -> lane-dense feature dim
    NUM_HEADS, PATCH = 16, 8                 # fixed inside the PyTorch ViT
    B, HW = 2, 32                            # 32x32 image, patch 8 -> 4x4 = 16 tokens
    N = (HW // PATCH) ** 2

    root = jax.random.PRNGKey(0)
    k_img, k_bias, k_par = jax.random.split(root, 3)
    imgs = jax.random.normal(k_img, (B, IN_CH, HW, HW), jnp.float32)
    attn_bias = 0.1 * jax.random.normal(k_bias, (NUM_HEADS, N, N), jnp.float32)
    params = pack_params(init_params(k_par, DIM, DEPTH, IN_CH, PATCH))

    # TODO(synk): `self.out_indices` is assigned externally in the original
    # repo (not in __init__); we emit features for every layer here.
    out_indices = tuple(range(DEPTH))

    fwd = jax.jit(functools.partial(
        vit_forward, dim=DIM, num_heads=NUM_HEADS, patch=PATCH,
        out_indices=out_indices, use_pallas=True))
    ref = functools.partial(
        vit_forward, dim=DIM, num_heads=NUM_HEADS, patch=PATCH,
        out_indices=out_indices, use_pallas=False)

    x_out, feats = fwd(imgs, attn_bias, params)
    jax.block_until_ready(x_out)
    jax.block_until_ready(feats)

    # pure-JAX fp32-math reference (same bf16-quantized weights); tolerance
    # covers the kernel's bf16 activation casts + approx softmax reciprocal.
    x_ref, feats_ref = ref(imgs, attn_bias, params)
    assert x_out.shape == (B, N, DIM)
    assert len(feats) == DEPTH
    assert feats[0].shape == (B, DIM, HW // PATCH, HW // PATCH)
    assert float(jnp.max(jnp.abs(x_out - x_ref))) < 5e-2
    for f, fr in zip(feats, feats_ref):
        assert float(jnp.max(jnp.abs(f - fr))) < 5e-2

    print("KERNEL_OK")
</pallas_src>

<mosaic_0001>
module attributes {stable_mosaic.version = 11 : i64} {
  func.func @_matmul_bias_kernel(%arg0: i32, %arg1: memref<16x256xf32, #tpu.memory_space<vmem>>, %arg2: memref<256x128xbf16, #tpu.memory_space<vmem>>, %arg3: memref<1x128xf32, #tpu.memory_space<vmem>>, %arg4: memref<16x128xf32, #tpu.memory_space<vmem>>) attributes {dimension_semantics = [#tpu.dimension_semantics<parallel>], iteration_bounds = array<i64: 2>, scalar_prefetch = 0 : i64, scratch_operands = 0 : i64, tpu.core_type = #tpu.core_type<tc>, window_params = [{transform_indices = @transform_0, window_bounds = array<i64: 16, 256>}, {pipeline_mode = #tpu.pipeline_mode<synchronous>, transform_indices = @transform_1, window_bounds = array<i64: 256, 128>}, {pipeline_mode = #tpu.pipeline_mode<synchronous>, transform_indices = @transform_2, window_bounds = array<i64: 1, 128>}, {transform_indices = @transform_3, window_bounds = array<i64: 16, 128>}]} {
    %c0 = arith.constant 0 : index
    %c0_0 = arith.constant 0 : index
    %0 = vector.load %arg1[%c0, %c0_0] : memref<16x256xf32, #tpu.memory_space<vmem>>, vector<16x256xf32>
    %1 = arith.truncf %0 : vector<16x256xf32> to vector<16x256xbf16>
    %c0_1 = arith.constant 0 : index
    %c0_2 = arith.constant 0 : index
    %2 = vector.load %arg2[%c0_1, %c0_2] : memref<256x128xbf16, #tpu.memory_space<vmem>>, vector<256x128xbf16>
    %cst = arith.constant dense<0.000000e+00> : vector<16x128xf32>
    %3 = tpu.matmul %1, %2, %cst {dimension_numbers = #tpu.dot_dimension_numbers<[1], [0], [0], [1], [0, 0, 1, 1], [], []>} : vector<16x256xbf16>, vector<256x128xbf16>, vector<16x128xf32> -> vector<16x128xf32>
    %c0_3 = arith.constant 0 : index
    %c0_4 = arith.constant 0 : index
    %4 = vector.load %arg3[%c0_3, %c0_4] : memref<1x128xf32, #tpu.memory_space<vmem>>, vector<1x128xf32>
    %5 = vector.broadcast %4 : vector<1x128xf32> to vector<16x128xf32>
    %6 = arith.addf %3, %5 : vector<16x128xf32>
    %c0_5 = arith.constant 0 : index
    %c0_6 = arith.constant 0 : index
    %7 = vector.load %arg4[%c0_5, %c0_6] : memref<16x128xf32, #tpu.memory_space<vmem>>, vector<16x128xf32>
    tpu.vector_store %arg4[%c0_5, %c0_6], %6 {strides = array<i32>} : memref<16x128xf32, #tpu.memory_space<vmem>>, vector<16x128xf32>,
    return
  }
  func.func @transform_0(%arg0: i32) -> (i32, i32) {
    %c0_i32 = arith.constant 0 : i32
    %c0_i32_0 = arith.constant 0 : i32
    return %arg0, %c0_i32 : i32, i32
  }
  func.func @transform_1(%arg0: i32) -> (i32, i32) {
    %c0_i32 = arith.constant 0 : i32
    %c0_i32_0 = arith.constant 0 : i32
    %c0_i32_1 = arith.constant 0 : i32
    return %c0_i32, %c0_i32_0 : i32, i32
  }
  func.func @transform_2(%arg0: i32) -> (i32, i32) {
    %c0_i32 = arith.constant 0 : i32
    %c0_i32_0 = arith.constant 0 : i32
    %c0_i32_1 = arith.constant 0 : i32
    return %c0_i32, %c0_i32_0 : i32, i32
  }
  func.func @transform_3(%arg0: i32) -> (i32, i32) {
    %c0_i32 = arith.constant 0 : i32
    %c0_i32_0 = arith.constant 0 : i32
    return %arg0, %c0_i32 : i32, i32
  }
}

module attributes {stable_mosaic.version = 11 : i64} {
  func.func @_ffn_kernel(%arg0: i32, %arg1: memref<16x128xf32, #tpu.memory_space<vmem>>, %arg2: memref<1x128xf32, #tpu.memory_space<vmem>>, %arg3: memref<1x128xf32, #tpu.memory_space<vmem>>, %arg4: memref<128x512xbf16, #tpu.memory_space<vmem>>, %arg5: memref<1x512xf32, #tpu.memory_space<vmem>>, %arg6: memref<512x128xbf16, #tpu.memory_space<vmem>>, %arg7: memref<1x128xf32, #tpu.memory_space<vmem>>, %arg8: memref<16x128xf32, #tpu.memory_space<vmem>>) attributes {dimension_semantics = [#tpu.dimension_semantics<parallel>], iteration_bounds = array<i64: 2>, scalar_prefetch = 0 : i64, scratch_operands = 0 : i64, tpu.core_type = #tpu.core_type<tc>, window_params = [{transform_indices = @transform_0, window_bounds = array<i64: 16, 128>}, {pipeline_mode = #tpu.pipeline_mode<synchronous>, transform_indices = @transform_1, window_bounds = array<i64: 1, 128>}, {pipeline_mode = #tpu.pipeline_mode<synchronous>, transform_indices = @transform_2, window_bounds = array<i64: 1, 128>}, {pipeline_mode = #tpu.pipeline_mode<synchronous>, transform_indices = @transform_3, window_bounds = array<i64: 128, 512>}, {pipeline_mode = #tpu.pipeline_mode<synchronous>, transform_indices = @transform_4, window_bounds = array<i64: 1, 512>}, {pipeline_mode = #tpu.pipeline_mode<synchronous>, transform_indices = @transform_5, window_bounds = array<i64: 512, 128>}, {pipeline_mode = #tpu.pipeline_mode<synchronous>, transform_indices = @transform_6, window_bounds = array<i64: 1, 128>}, {transform_indices = @transform_7, window_bounds = array<i64: 16, 128>}]} {
    %c0 = arith.constant 0 : index
    %c0_0 = arith.constant 0 : index
    %0 = vector.load %arg1[%c0, %c0_0] : memref<16x128xf32, #tpu.memory_space<vmem>>, vector<16x128xf32>
    %cst = arith.constant dense<0.000000e+00> : vector<16xf32>
    %1 = vector.multi_reduction <add>, %0, %cst [1] : vector<16x128xf32> to vector<16xf32>
    %2 = vector.shape_cast %1 : vector<16xf32> to vector<16x1xf32>
    %cst_1 = arith.constant 1.280000e+02 : f32
    %3 = vector.broadcast %cst_1 : f32 to vector<16x1xf32>
    %4 = arith.divf %2, %3 : vector<16x1xf32>
    %5 = vector.broadcast %4 : vector<16x1xf32> to vector<16x128xf32>
    %6 = arith.subf %0, %5 : vector<16x128xf32>
    %7 = arith.mulf %6, %6 : vector<16x128xf32>
    %cst_2 = arith.constant dense<0.000000e+00> : vector<16xf32>
    %8 = vector.multi_reduction <add>, %7, %cst_2 [1] : vector<16x128xf32> to vector<16xf32>
    %9 = vector.shape_cast %8 : vector<16xf32> to vector<16x1xf32>
    %cst_3 = arith.constant 1.280000e+02 : f32
    %10 = vector.broadcast %cst_3 : f32 to vector<16x1xf32>
    %11 = arith.divf %9, %10 : vector<16x1xf32>
    %12 = vector.broadcast %4 : vector<16x1xf32> to vector<16x128xf32>
    %13 = arith.subf %0, %12 : vector<16x128xf32>
    %cst_4 = arith.constant 9.99999974E-6 : f32
    %14 = vector.broadcast %cst_4 : f32 to vector<16x1xf32>
    %15 = arith.addf %11, %14 : vector<16x1xf32>
    %16 = math.rsqrt %15 : vector<16x1xf32>
    %17 = vector.broadcast %16 : vector<16x1xf32> to vector<16x128xf32>
    %18 = arith.mulf %13, %17 : vector<16x128xf32>
    %c0_5 = arith.constant 0 : index
    %c0_6 = arith.constant 0 : index
    %19 = vector.load %arg2[%c0_5, %c0_6] : memref<1x128xf32, #tpu.memory_space<vmem>>, vector<1x128xf32>
    %20 = vector.broadcast %19 : vector<1x128xf32> to vector<16x128xf32>
    %21 = arith.mulf %18, %20 : vector<16x128xf32>
    %c0_7 = arith.constant 0 : index
    %c0_8 = arith.constant 0 : index
    %22 = vector.load %arg3[%c0_7, %c0_8] : memref<1x128xf32, #tpu.memory_space<vmem>>, vector<1x128xf32>
    %23 = vector.broadcast %22 : vector<1x128xf32> to vector<16x128xf32>
    %24 = arith.addf %21, %23 : vector<16x128xf32>
    %25 = arith.truncf %24 : vector<16x128xf32> to vector<16x128xbf16>
    %c0_9 = arith.constant 0 : index
    %c0_10 = arith.constant 0 : index
    %26 = vector.load %arg4[%c0_9, %c0_10] : memref<128x512xbf16, #tpu.memory_space<vmem>>, vector<128x512xbf16>
    %cst_11 = arith.constant dense<0.000000e+00> : vector<16x512xf32>
    %27 = tpu.matmul %25, %26, %cst_11 {dimension_numbers = #tpu.dot_dimension_numbers<[1], [0], [0], [1], [0, 0, 1, 1], [], []>} : vector<16x128xbf16>, vector<128x512xbf16>, vector<16x512xf32> -> vector<16x512xf32>
    %c0_12 = arith.constant 0 : index
    %c0_13 = arith.constant 0 : index
    %28 = vector.load %arg5[%c0_12, %c0_13] : memref<1x512xf32, #tpu.memory_space<vmem>>, vector<1x512xf32>
    %29 = vector.broadcast %28 : vector<1x512xf32> to vector<16x512xf32>
    %30 = arith.addf %27, %29 : vector<16x512xf32>
    %cst_14 = arith.constant 5.000000e-01 : f32
    %31 = vector.broadcast %cst_14 : f32 to vector<16x512xf32>
    %32 = arith.mulf %31, %30 : vector<16x512xf32>
    %cst_15 = arith.constant 0.707106769 : f32
    %33 = vector.broadcast %cst_15 : f32 to vector<16x512xf32>
    %34 = arith.mulf %30, %33 : vector<16x512xf32>
    %35 = math.erf %34 : vector<16x512xf32>
    %cst_16 = arith.constant 1.000000e+00 : f32
    %36 = vector.broadcast %cst_16 : f32 to vector<16x512xf32>
    %37 = arith.addf %36, %35 : vector<16x512xf32>
    %38 = arith.mulf %32, %37 : vector<16x512xf32>
    %39 = arith.truncf %38 : vector<16x512xf32> to vector<16x512xbf16>
    %c0_17 = arith.constant 0 : index
    %c0_18 = arith.constant 0 : index
    %40 = vector.load %arg6[%c0_17, %c0_18] : memref<512x128xbf16, #tpu.memory_space<vmem>>, vector<512x128xbf16>
    %cst_19 = arith.constant dense<0.000000e+00> : vector<16x128xf32>
    %41 = tpu.matmul %39, %40, %cst_19 {dimension_numbers = #tpu.dot_dimension_numbers<[1], [0], [0], [1], [0, 0, 1, 1], [], []>} : vector<16x512xbf16>, vector<512x128xbf16>, vector<16x128xf32> -> vector<16x128xf32>
    %c0_20 = arith.constant 0 : index
    %c0_21 = arith.constant 0 : index
    %42 = vector.load %arg7[%c0_20, %c0_21] : memref<1x128xf32, #tpu.memory_space<vmem>>, vector<1x128xf32>
    %43 = vector.broadcast %42 : vector<1x128xf32> to vector<16x128xf32>
    %44 = arith.addf %41, %43 : vector<16x128xf32>
    %45 = arith.addf %44, %0 : vector<16x128xf32>
    %c0_22 = arith.constant 0 : index
    %c0_23 = arith.constant 0 : index
    %46 = vector.load %arg8[%c0_22, %c0_23] : memref<16x128xf32, #tpu.memory_space<vmem>>, vector<16x128xf32>
    tpu.vector_store %arg8[%c0_22, %c0_23], %45 {strides = array<i32>} : memref<16x128xf32, #tpu.memory_space<vmem>>, vector<16x128xf32>,
    return
  }
  func.func @transform_0(%arg0: i32) -> (i32, i32) {
    %c0_i32 = arith.constant 0 : i32
    %c0_i32_0 = arith.constant 0 : i32
    return %arg0, %c0_i32 : i32, i32
  }
  func.func @transform_1(%arg0: i32) -> (i32, i32) {
    %c0_i32 = arith.constant 0 : i32
    %c0_i32_0 = arith.constant 0 : i32
    %c0_i32_1 = arith.constant 0 : i32
    return %c0_i32, %c0_i32_0 : i32, i32
  }
  func.func @transform_2(%arg0: i32) -> (i32, i32) {
    %c0_i32 = arith.constant 0 : i32
    %c0_i32_0 = arith.constant 0 : i32
    %c0_i32_1 = arith.constant 0 : i32
    return %c0_i32, %c0_i32_0 : i32, i32
  }
  func.func @transform_3(%arg0: i32) -> (i32, i32) {
    %c0_i32 = arith.constant 0 : i32
    %c0_i32_0 = arith.constant 0 : i32
    %c0_i32_1 = arith.constant 0 : i32
    return %c0_i32, %c0_i32_0 : i32, i32
  }
  func.func @transform_4(%arg0: i32) -> (i32, i32) {
    %c0_i32 = arith.constant 0 : i32
    %c0_i32_0 = arith.constant 0 : i32
    %c0_i32_1 = arith.constant 0 : i32
    return %c0_i32, %c0_i32_0 : i32, i32
  }
  func.func @transform_5(%arg0: i32) -> (i32, i32) {
    %c0_i32 = arith.constant 0 : i32
    %c0_i32_0 = arith.constant 0 : i32
    %c0_i32_1 = arith.constant 0 : i32
    return %c0_i32, %c0_i32_0 : i32, i32
  }
  func.func @transform_6(%arg0: i32) -> (i32, i32) {
    %c0_i32 = arith.constant 0 : i32
    %c0_i32_0 = arith.constant 0 : i32
    %c0_i32_1 = arith.constant 0 : i32
    return %c0_i32, %c0_i32_0 : i32, i32
  }
  func.func @transform_7(%arg0: i32) -> (i32, i32) {
    %c0_i32 = arith.constant 0 : i32
    %c0_i32_0 = arith.constant 0 : i32
    return %arg0, %c0_i32 : i32, i32
  }
}

module attributes {stable_mosaic.version = 11 : i64} {
  func.func @_attn_block_kernel(%arg0: i32, %arg1: memref<1x16x128xf32, #tpu.memory_space<vmem>>, %arg2: memref<1x128xf32, #tpu.memory_space<vmem>>, %arg3: memref<1x128xf32, #tpu.memory_space<vmem>>, %arg4: memref<128x384xbf16, #tpu.memory_space<vmem>>, %arg5: memref<128x128xbf16, #tpu.memory_space<vmem>>, %arg6: memref<1x128xf32, #tpu.memory_space<vmem>>, %arg7: memref<16x16x16xf32, #tpu.memory_space<vmem>>, %arg8: memref<1x16x128xf32, #tpu.memory_space<vmem>>, %arg9: memref<16x384xbf16, #tpu.memory_space<vmem>>, %arg10: memref<16x128xbf16, #tpu.memory_space<vmem>>) attributes {dimension_semantics = [#tpu.dimension_semantics<parallel>], iteration_bounds = array<i64: 2>, scalar_prefetch = 0 : i64, scratch_operands = 2 : i64, tpu.core_type = #tpu.core_type<tc>, window_params = [{transform_indices = @transform_0, window_bounds = array<i64: 1, 16, 128>}, {pipeline_mode = #tpu.pipeline_mode<synchronous>, transform_indices = @transform_1, window_bounds = array<i64: 1, 128>}, {pipeline_mode = #tpu.pipeline_mode<synchronous>, transform_indices = @transform_2, window_bounds = array<i64: 1, 128>}, {pipeline_mode = #tpu.pipeline_mode<synchronous>, transform_indices = @transform_3, window_bounds = array<i64: 128, 384>}, {pipeline_mode = #tpu.pipeline_mode<synchronous>, transform_indices = @transform_4, window_bounds = array<i64: 128, 128>}, {pipeline_mode = #tpu.pipeline_mode<synchronous>, transform_indices = @transform_5, window_bounds = array<i64: 1, 128>}, {pipeline_mode = #tpu.pipeline_mode<synchronous>, transform_indices = @transform_6, window_bounds = array<i64: 16, 16, 16>}, {transform_indices = @transform_7, window_bounds = array<i64: 1, 16, 128>}]} {
    %c0 = arith.constant 0 : index
    %c0_0 = arith.constant 0 : index
    %c0_1 = arith.constant 0 : index
    %0 = vector.load %arg1[%c0, %c0_0, %c0_1] : memref<1x16x128xf32, #tpu.memory_space<vmem>>, vector<1x16x128xf32>
    %1 = vector.shape_cast %0 : vector<1x16x128xf32> to vector<16x128xf32>
    %cst = arith.constant dense<0.000000e+00> : vector<16xf32>
    %2 = vector.multi_reduction <add>, %1, %cst [1] : vector<16x128xf32> to vector<16xf32>
    %3 = vector.shape_cast %2 : vector<16xf32> to vector<16x1xf32>
    %cst_2 = arith.constant 1.280000e+02 : f32
    %4 = vector.broadcast %cst_2 : f32 to vector<16x1xf32>
    %5 = arith.divf %3, %4 : vector<16x1xf32>
    %6 = vector.broadcast %5 : vector<16x1xf32> to vector<16x128xf32>
    %7 = arith.subf %1, %6 : vector<16x128xf32>
    %8 = arith.mulf %7, %7 : vector<16x128xf32>
    %cst_3 = arith.constant dense<0.000000e+00> : vector<16xf32>
    %9 = vector.multi_reduction <add>, %8, %cst_3 [1] : vector<16x128xf32> to vector<16xf32>
    %10 = vector.shape_cast %9 : vector<16xf32> to vector<16x1xf32>
    %cst_4 = arith.constant 1.280000e+02 : f32
    %11 = vector.broadcast %cst_4 : f32 to vector<16x1xf32>
    %12 = arith.divf %10, %11 : vector<16x1xf32>
    %13 = vector.broadcast %5 : vector<16x1xf32> to vector<16x128xf32>
    %14 = arith.subf %1, %13 : vector<16x128xf32>
    %cst_5 = arith.constant 9.99999974E-6 : f32
    %15 = vector.broadcast %cst_5 : f32 to vector<16x1xf32>
    %16 = arith.addf %12, %15 : vector<16x1xf32>
    %17 = math.rsqrt %16 : vector<16x1xf32>
    %18 = vector.broadcast %17 : vector<16x1xf32> to vector<16x128xf32>
    %19 = arith.mulf %14, %18 : vector<16x128xf32>
    %c0_6 = arith.constant 0 : index
    %c0_7 = arith.constant 0 : index
    %20 = vector.load %arg2[%c0_6, %c0_7] : memref<1x128xf32, #tpu.memory_space<vmem>>, vector<1x128xf32>
    %21 = vector.broadcast %20 : vector<1x128xf32> to vector<16x128xf32>
    %22 = arith.mulf %19, %21 : vector<16x128xf32>
    %c0_8 = arith.constant 0 : index
    %c0_9 = arith.constant 0 : index
    %23 = vector.load %arg3[%c0_8, %c0_9] : memref<1x128xf32, #tpu.memory_space<vmem>>, vector<1x128xf32>
    %24 = vector.broadcast %23 : vector<1x128xf32> to vector<16x128xf32>
    %25 = arith.addf %22, %24 : vector<16x128xf32>
    %26 = arith.truncf %25 : vector<16x128xf32> to vector<16x128xbf16>
    %c0_10 = arith.constant 0 : index
    %c0_11 = arith.constant 0 : index
    %27 = vector.load %arg4[%c0_10, %c0_11] : memref<128x384xbf16, #tpu.memory_space<vmem>>, vector<128x384xbf16>
    %cst_12 = arith.constant dense<0.000000e+00> : vector<16x384xf32>
    %28 = tpu.matmul %26, %27, %cst_12 {dimension_numbers = #tpu.dot_dimension_numbers<[1], [0], [0], [1], [0, 0, 1, 1], [], []>} : vector<16x128xbf16>, vector<128x384xbf16>, vector<16x384xf32> -> vector<16x384xf32>
    %29 = arith.truncf %28 : vector<16x384xf32> to vector<16x384xbf16>
    %c0_13 = arith.constant 0 : index
    %c0_14 = arith.constant 0 : index
    %30 = vector.load %arg9[%c0_13, %c0_14] : memref<16x384xbf16, #tpu.memory_space<vmem>>, vector<16x384xbf16>
    tpu.vector_store %arg9[%c0_13, %c0_14], %29 {strides = array<i32>} : memref<16x384xbf16, #tpu.memory_space<vmem>>, vector<16x384xbf16>,
    %c0_15 = arith.constant 0 : index
    %c0_16 = arith.constant 0 : index
    %31 = vector.load %arg9[%c0_15, %c0_16] : memref<16x384xbf16, #tpu.memory_space<vmem>>, vector<16x8xbf16>
    %c0_17 = arith.constant 0 : index
    %c128 = arith.constant 128 : index
    %32 = vector.load %arg9[%c0_17, %c128] : memref<16x384xbf16, #tpu.memory_space<vmem>>, vector<16x8xbf16>
    %c0_18 = arith.constant 0 : index
    %c256 = arith.constant 256 : index
    %33 = vector.load %arg9[%c0_18, %c256] : memref<16x384xbf16, #tpu.memory_space<vmem>>, vector<16x8xbf16>
    %cst_19 = arith.constant dense<0.000000e+00> : vector<16x16xf32>
    %34 = tpu.matmul %31, %32, %cst_19 {dimension_numbers = #tpu.dot_dimension_numbers<[1], [1], [0], [0], [0, 0, 1, 0], [], []>} : vector<16x8xbf16>, vector<16x8xbf16>, vector<16x16xf32> -> vector<16x16xf32>
    %cst_20 = arith.constant 0.353553385 : f32
    %35 = vector.broadcast %cst_20 : f32 to vector<16x16xf32>
    %36 = arith.mulf %34, %35 : vector<16x16xf32>
    %c0_21 = arith.constant 0 : index
    %c0_22 = arith.constant 0 : index
    %c0_23 = arith.constant 0 : index
    %37 = vector.load %arg7[%c0_21, %c0_22, %c0_23] : memref<16x16x16xf32, #tpu.memory_space<vmem>>, vector<1x16x16xf32>
    %38 = vector.shape_cast %37 : vector<1x16x16xf32> to vector<16x16xf32>
    %39 = arith.addf %36, %38 : vector<16x16xf32>
    %cst_24 = arith.constant dense<0xFF800000> : vector<16xf32>
    %40 = vector.multi_reduction <maximumf>, %39, %cst_24 [1] : vector<16x16xf32> to vector<16xf32>
    %41 = vector.shape_cast %40 : vector<16xf32> to vector<16x1xf32>
    %42 = vector.broadcast %41 : vector<16x1xf32> to vector<16x16xf32>
    %43 = arith.subf %39, %42 : vector<16x16xf32>
    %44 = math.exp %43 : vector<16x16xf32>
    %cst_25 = arith.constant dense<0.000000e+00> : vector<16xf32>
    %45 = vector.multi_reduction <add>, %44, %cst_25 [1] : vector<16x16xf32> to vector<16xf32>
    %46 = vector.shape_cast %45 : vector<16xf32> to vector<16x1xf32>
    %47 = tpu.reciprocal %46 {approx = true} : vector<16x1xf32> -> vector<16x1xf32>
    %48 = vector.broadcast %47 : vector<16x1xf32> to vector<16x16xf32>
    %49 = arith.mulf %44, %48 : vector<16x16xf32>
    %50 = arith.truncf %49 : vector<16x16xf32> to vector<16x16xbf16>
    %cst_26 = arith.constant dense<0.000000e+00> : vector<16x8xf32>
    %51 = tpu.matmul %50, %33, %cst_26 {dimension_numbers = #tpu.dot_dimension_numbers<[1], [0], [0], [1], [0, 0, 1, 1], [], []>} : vector<16x16xbf16>, vector<16x8xbf16>, vector<16x8xf32> -> vector<16x8xf32>
    %52 = arith.truncf %51 : vector<16x8xf32> to vector<16x8xbf16>
    %c0_27 = arith.constant 0 : index
    %c0_28 = arith.constant 0 : index
    %53 = vector.load %arg10[%c0_27, %c0_28] : memref<16x128xbf16, #tpu.memory_space<vmem>>, vector<16x8xbf16>
    tpu.vector_store %arg10[%c0_27, %c0_28], %52 {strides = array<i32>} : memref<16x128xbf16, #tpu.memory_space<vmem>>, vector<16x8xbf16>,
    %c0_29 = arith.constant 0 : index
    %c8 = arith.constant 8 : index
    %54 = vector.load %arg9[%c0_29, %c8] : memref<16x384xbf16, #tpu.memory_space<vmem>>, vector<16x8xbf16>
    %c0_30 = arith.constant 0 : index
    %c136 = arith.constant 136 : index
    %55 = vector.load %arg9[%c0_30, %c136] : memref<16x384xbf16, #tpu.memory_space<vmem>>, vector<16x8xbf16>
    %c0_31 = arith.constant 0 : index
    %c264 = arith.constant 264 : index
    %56 = vector.load %arg9[%c0_31, %c264] : memref<16x384xbf16, #tpu.memory_space<vmem>>, vector<16x8xbf16>
    %cst_32 = arith.constant dense<0.000000e+00> : vector<16x16xf32>
    %57 = tpu.matmul %54, %55, %cst_32 {dimension_numbers = #tpu.dot_dimension_numbers<[1], [1], [0], [0], [0, 0, 1, 0], [], []>} : vector<16x8xbf16>, vector<16x8xbf16>, vector<16x16xf32> -> vector<16x16xf32>
    %cst_33 = arith.constant 0.353553385 : f32
    %58 = vector.broadcast %cst_33 : f32 to vector<16x16xf32>
    %59 = arith.mulf %57, %58 : vector<16x16xf32>
    %c1 = arith.constant 1 : index
    %c0_34 = arith.constant 0 : index
    %c0_35 = arith.constant 0 : index
    %60 = vector.load %arg7[%c1, %c0_34, %c0_35] : memref<16x16x16xf32, #tpu.memory_space<vmem>>, vector<1x16x16xf32>
    %61 = vector.shape_cast %60 : vector<1x16x16xf32> to vector<16x16xf32>
    %62 = arith.addf %59, %61 : vector<16x16xf32>
    %cst_36 = arith.constant dense<0xFF800000> : vector<16xf32>
    %63 = vector.multi_reduction <maximumf>, %62, %cst_36 [1] : vector<16x16xf32> to vector<16xf32>
    %64 = vector.shape_cast %63 : vector<16xf32> to vector<16x1xf32>
    %65 = vector.broadcast %64 : vector<16x1xf32> to vector<16x16xf32>
    %66 = arith.subf %62, %65 : vector<16x16xf32>
    %67 = math.exp %66 : vector<16x16xf32>
    %cst_37 = arith.constant dense<0.000000e+00> : vector<16xf32>
    %68 = vector.multi_reduction <add>, %67, %cst_37 [1] : vector<16x16xf32> to vector<16xf32>
    %69 = vector.shape_cast %68 : vector<16xf32> to vector<16x1xf32>
    %70 = tpu.reciprocal %69 {approx = true} : vector<16x1xf32> -> vector<16x1xf32>
    %71 = vector.broadcast %70 : vector<16x1xf32> to vector<16x16xf32>
    %72 = arith.mulf %67, %71 : vector<16x16xf32>
    %73 = arith.truncf %72 : vector<16x16xf32> to vector<16x16xbf16>
    %cst_38 = arith.constant dense<0.000000e+00> : vector<16x8xf32>
    %74 = tpu.matmul %73, %56, %cst_38 {dimension_numbers = #tpu.dot_dimension_numbers<[1], [0], [0], [1], [0, 0, 1, 1], [], []>} : vector<16x16xbf16>, vector<16x8xbf16>, vector<16x8xf32> -> vector<16x8xf32>
    %75 = arith.truncf %74 : vector<16x8xf32> to vector<16x8xbf16>
    %c0_39 = arith.constant 0 : index
    %c8_40 = arith.constant 8 : index
    %76 = vector.load %arg10[%c0_39, %c8_40] : memref<16x128xbf16, #tpu.memory_space<vmem>>, vector<16x8xbf16>
    tpu.vector_store %arg10[%c0_39, %c8_40], %75 {strides = array<i32>} : memref<16x128xbf16, #tpu.memory_space<vmem>>, vector<16x8xbf16>,
    %c0_41 = arith.constant 0 : index
    %c16 = arith.constant 16 : index
    %77 = vector.load %arg9[%c0_41, %c16] : memref<16x384xbf16, #tpu.memory_space<vmem>>, vector<16x8xbf16>
    %c0_42 = arith.constant 0 : index
    %c144 = arith.constant 144 : index
    %78 = vector.load %arg9[%c0_42, %c144] : memref<16x384xbf16, #tpu.memory_space<vmem>>, vector<16x8xbf16>
    %c0_43 = arith.constant 0 : index
    %c272 = arith.constant 272 : index
    %79 = vector.load %arg9[%c0_43, %c272] : memref<16x384xbf16, #tpu.memory_space<vmem>>, vector<16x8xbf16>
    %cst_44 = arith.constant dense<0.000000e+00> : vector<16x16xf32>
    %80 = tpu.matmul %77, %78, %cst_44 {dimension_numbers = #tpu.dot_dimension_numbers<[1], [1], [0], [0], [0, 0, 1, 0], [], []>} : vector<16x8xbf16>, vector<16x8xbf16>, vector<16x16xf32> -> vector<16x16xf32>
    %cst_45 = arith.constant 0.353553385 : f32
    %81 = vector.broadcast %cst_45 : f32 to vector<16x16xf32>
    %82 = arith.mulf %80, %81 : vector<16x16xf32>
    %c2 = arith.constant 2 : index
    %c0_46 = arith.constant 0 : index
    %c0_47 = arith.constant 0 : index
    %83 = vector.load %arg7[%c2, %c0_46, %c0_47] : memref<16x16x16xf32, #tpu.memory_space<vmem>>, vector<1x16x16xf32>
    %84 = vector.shape_cast %83 : vector<1x16x16xf32> to vector<16x16xf32>
    %85 = arith.addf %82, %84 : vector<16x16xf32>
    %cst_48 = arith.constant dense<0xFF800000> : vector<16xf32>
    %86 = vector.multi_reduction <maximumf>, %85, %cst_48 [1] : vector<16x16xf32> to vector<16xf32>
    %87 = vector.shape_cast %86 : vector<16xf32> to vector<16x1xf32>
    %88 = vector.broadcast %87 : vector<16x1xf32> to vector<16x16xf32>
    %89 = arith.subf %85, %88 : vector<16x16xf32>
    %90 = math.exp %89 : vector<16x16xf32>
    %cst_49 = arith.constant dense<0.000000e+00> : vector<16xf32>
    %91 = vector.multi_reduction <add>, %90, %cst_49 [1] : vector<16x16xf32> to vector<16xf32>
    %92 = vector.shape_cast %91 : vector<16xf32> to vector<16x1xf32>
    %93 = tpu.reciprocal %92 {approx = true} : vector<16x1xf32> -> vector<16x1xf32>
    %94 = vector.broadcast %93 : vector<16x1xf32> to vector<16x16xf32>
    %95 = arith.mulf %90, %94 : vector<16x16xf32>
    %96 = arith.truncf %95 : vector<16x16xf32> to vector<16x16xbf16>
    %cst_50 = arith.constant dense<0.000000e+00> : vector<16x8xf32>
    %97 = tpu.matmul %96, %79, %cst_50 {dimension_numbers = #tpu.dot_dimension_numbers<[1], [0], [0], [1], [0, 0, 1, 1], [], []>} : vector<16x16xbf16>, vector<16x8xbf16>, vector<16x8xf32> -> vector<16x8xf32>
    %98 = arith.truncf %97 : vector<16x8xf32> to vector<16x8xbf16>
    %c0_51 = arith.constant 0 : index
    %c16_52 = arith.constant 16 : index
    %99 = vector.load %arg10[%c0_51, %c16_52] : memref<16x128xbf16, #tpu.memory_space<vmem>>, vector<16x8xbf16>
    tpu.vector_store %arg10[%c0_51, %c16_52], %98 {strides = array<i32>} : memref<16x128xbf16, #tpu.memory_space<vmem>>, vector<16x8xbf16>,
    %c0_53 = arith.constant 0 : index
    %c24 = arith.constant 24 : index
    %100 = vector.load %arg9[%c0_53, %c24] : memref<16x384xbf16, #tpu.memory_space<vmem>>, vector<16x8xbf16>
    %c0_54 = arith.constant 0 : index
    %c152 = arith.constant 152 : index
    %101 = vector.load %arg9[%c0_54, %c152] : memref<16x384xbf16, #tpu.memory_space<vmem>>, vector<16x8xbf16>
    %c0_55 = arith.constant 0 : index
    %c280 = arith.constant 280 : index
    %102 = vector.load %arg9[%c0_55, %c280] : memref<16x384xbf16, #tpu.memory_space<vmem>>, vector<16x8xbf16>
    %cst_56 = arith.constant dense<0.000000e+00> : vector<16x16xf32>
    %103 = tpu.matmul %100, %101, %cst_56 {dimension_numbers = #tpu.dot_dimension_numbers<[1], [1], [0], [0], [0, 0, 1, 0], [], []>} : vector<16x8xbf16>, vector<16x8xbf16>, vector<16x16xf32> -> vector<16x16xf32>
    %cst_57 = arith.constant 0.353553385 : f32
    %104 = vector.broadcast %cst_57 : f32 to vector<16x16xf32>
    %105 = arith.mulf %103, %104 : vector<16x16xf32>
    %c3 = arith.constant 3 : index
    %c0_58 = arith.constant 0 : index
    %c0_59 = arith.constant 0 : index
    %106 = vector.load %arg7[%c3, %c0_58, %c0_59] : memref<16x16x16xf32, #tpu.memory_space<vmem>>, vector<1x16x16xf32>
    %107 = vector.shape_cast %106 : vector<1x16x16xf32> to vector<16x16xf32>
    %108 = arith.addf %105, %107 : vector<16x16xf32>
    %cst_60 = arith.constant dense<0xFF800000> : vector<16xf32>
    %109 = vector.multi_reduction <maximumf>, %108, %cst_60 [1] : vector<16x16xf32> to vector<16xf32>
    %110 = vector.shape_cast %109 : vector<16xf32> to vector<16x1xf32>
    %111 = vector.broadcast %110 : vector<16x1xf32> to vector<16x16xf32>
    %112 = arith.subf %108, %111 : vector<16x16xf32>
    %113 = math.exp %112 : vector<16x16xf32>
    %cst_61 = arith.constant dense<0.000000e+00> : vector<16xf32>
    %114 = vector.multi_reduction <add>, %113, %cst_61 [1] : vector<16x16xf32> to vector<16xf32>
    %115 = vector.shape_cast %114 : vector<16xf32> to vector<16x1xf32>
    %116 = tpu.reciprocal %115 {approx = true} : vector<16x1xf32> -> vector<16x1xf32>
    %117 = vector.broadcast %116 : vector<16x1xf32> to vector<16x16xf32>
    %118 = arith.mulf %113, %117 : vector<16x16xf32>
    %119 = arith.truncf %118 : vector<16x16xf32> to vector<16x16xbf16>
    %cst_62 = arith.constant dense<0.000000e+00> : vector<16x8xf32>
    %120 = tpu.matmul %119, %102, %cst_62 {dimension_numbers = #tpu.dot_dimension_numbers<[1], [0], [0], [1], [0, 0, 1, 1], [], []>} : vector<16x16xbf16>, vector<16x8xbf16>, vector<16x8xf32> -> vector<16x8xf32>
    %121 = arith.truncf %120 : vector<16x8xf32> to vector<16x8xbf16>
    %c0_63 = arith.constant 0 : index
    %c24_64 = arith.constant 24 : index
    %122 = vector.load %arg10[%c0_63, %c24_64] : memref<16x128xbf16, #tpu.memory_space<vmem>>, vector<16x8xbf16>
    tpu.vector_store %arg10[%c0_63, %c24_64], %121 {strides = array<i32>} : memref<16x128xbf16, #tpu.memory_space<vmem>>, vector<16x8xbf16>,
    %c0_65 = arith.constant 0 : index
    %c32 = arith.constant 32 : index
    %123 = vector.load %arg9[%c0_65, %c32] : memref<16x384xbf16, #tpu.memory_space<vmem>>, vector<16x8xbf16>
    %c0_66 = arith.constant 0 : index
    %c160 = arith.constant 160 : index
    %124 = vector.load %arg9[%c0_66, %c160] : memref<16x384xbf16, #tpu.memory_space<vmem>>, vector<16x8xbf16>
    %c0_67 = arith.constant 0 : index
    %c288 = arith.constant 288 : index
    %125 = vector.load %arg9[%c0_67, %c288] : memref<16x384xbf16, #tpu.memory_space<vmem>>, vector<16x8xbf16>
    %cst_68 = arith.constant dense<0.000000e+00> : vector<16x16xf32>
    %126 = tpu.matmul %123, %124, %cst_68 {dimension_numbers = #tpu.dot_dimension_numbers<[1], [1], [0], [0], [0, 0, 1, 0], [], []>} : vector<16x8xbf16>, vector<16x8xbf16>, vector<16x16xf32> -> vector<16x16xf32>
    %cst_69 = arith.constant 0.353553385 : f32
    %127 = vector.broadcast %cst_69 : f32 to vector<16x16xf32>
    %128 = arith.mulf %126, %127 : vector<16x16xf32>
    %c4 = arith.constant 4 : index
    %c0_70 = arith.constant 0 : index
    %c0_71 = arith.constant 0 : index
    %129 = vector.load %arg7[%c4, %c0_70, %c0_71] : memref<16x16x16xf32, #tpu.memory_space<vmem>>, vector<1x16x16xf32>
    %130 = vector.shape_cast %129 : vector<1x16x16xf32> to vector<16x16xf32>
    %131 = arith.addf %128, %130 : vector<16x16xf32>
    %cst_72 = arith.constant dense<0xFF800000> : vector<16xf32>
    %132 = vector.multi_reduction <maximumf>, %131, %cst_72 [1] : vector<16x16xf32> to vector<16xf32>
    %133 = vector.shape_cast %132 : vector<16xf32> to vector<16x1xf32>
    %134 = vector.broadcast %133 : vector<16x1xf32> to vector<16x16xf32>
    %135 = arith.subf %131, %134 : vector<16x16xf32>
    %136 = math.exp %135 : vector<16x16xf32>
    %cst_73 = arith.constant dense<0.000000e+00> : vector<16xf32>
    %137 = vector.multi_reduction <add>, %136, %cst_73 [1] : vector<16x16xf32> to vector<16xf32>
    %138 = vector.shape_cast %137 : vector<16xf32> to vector<16x1xf32>
    %139 = tpu.reciprocal %138 {approx = true} : vector<16x1xf32> -> vector<16x1xf32>
    %140 = vector.broadcast %139 : vector<16x1xf32> to vector<16x16xf32>
    %141 = arith.mulf %136, %140 : vector<16x16xf32>
    %142 = arith.truncf %141 : vector<16x16xf32> to vector<16x16xbf16>
    %cst_74 = arith.constant dense<0.000000e+00> : vector<16x8xf32>
    %143 = tpu.matmul %142, %125, %cst_74 {dimension_numbers = #tpu.dot_dimension_numbers<[1], [0], [0], [1], [0, 0, 1, 1], [], []>} : vector<16x16xbf16>, vector<16x8xbf16>, vector<16x8xf32> -> vector<16x8xf32>
    %144 = arith.truncf %143 : vector<16x8xf32> to vector<16x8xbf16>
    %c0_75 = arith.constant 0 : index
    %c32_76 = arith.constant 32 : index
    %145 = vector.load %arg10[%c0_75, %c32_76] : memref<16x128xbf16, #tpu.memory_space<vmem>>, vector<16x8xbf16>
    tpu.vector_store %arg10[%c0_75, %c32_76], %144 {strides = array<i32>} : memref<16x128xbf16, #tpu.memory_space<vmem>>, vector<16x8xbf16>,
    %c0_77 = arith.constant 0 : index
    %c40 = arith.constant 40 : index
    %146 = vector.load %arg9[%c0_77, %c40] : memref<16x384xbf16, #tpu.memory_space<vmem>>, vector<16x8xbf16>
    %c0_78 = arith.constant 0 : index
    %c168 = arith.constant 168 : index
    %147 = vector.load %arg9[%c0_78, %c168] : memref<16x384xbf16, #tpu.memory_space<vmem>>, vector<16x8xbf16>
    %c0_79 = arith.constant 0 : index
    %c296 = arith.constant 296 : index
    %148 = vector.load %arg9[%c0_79, %c296] : memref<16x384xbf16, #tpu.memory_space<vmem>>, vector<16x8xbf16>
    %cst_80 = arith.constant dense<0.000000e+00> : vector<16x16xf32>
    %149 = tpu.matmul %146, %147, %cst_80 {dimension_numbers = #tpu.dot_dimension_numbers<[1], [1], [0], [0], [0, 0, 1, 0], [], []>} : vector<16x8xbf16>, vector<16x8xbf16>, vector<16x16xf32> -> vector<16x16xf32>
    %cst_81 = arith.constant 0.353553385 : f32
    %150 = vector.broadcast %cst_81 : f32 to vector<16x16xf32>
    %151 = arith.mulf %149, %150 : vector<16x16xf32>
    %c5 = arith.constant 5 : index
    %c0_82 = arith.constant 0 : index
    %c0_83 = arith.constant 0 : index
    %152 = vector.load %arg7[%c5, %c0_82, %c0_83] : memref<16x16x16xf32, #tpu.memory_space<vmem>>, vector<1x16x16xf32>
    %153 = vector.shape_cast %152 : vector<1x16x16xf32> to vector<16x16xf32>
    %154 = arith.addf %151, %153 : vector<16x16xf32>
    %cst_84 = arith.constant dense<0xFF800000> : vector<16xf32>
    %155 = vector.multi_reduction <maximumf>, %154, %cst_84 [1] : vector<16x16xf32> to vector<16xf32>
    %156 = vector.shape_cast %155 : vector<16xf32> to vector<16x1xf32>
    %157 = vector.broadcast %156 : vector<16x1xf32> to vector<16x16xf32>
    %158 = arith.subf %154, %157 : vector<16x16xf32>
    %159 = math.exp %158 : vector<16x16xf32>
    %cst_85 = arith.constant dense<0.000000e+00> : vector<16xf32>
    %160 = vector.multi_reduction <add>, %159, %cst_85 [1] : vector<16x16xf32> to vector<16xf32>
    %161 = vector.shape_cast %160 : vector<16xf32> to vector<16x1xf32>
    %162 = tpu.reciprocal %161 {approx = true} : vector<16x1xf32> -> vector<16x1xf32>
    %163 = vector.broadcast %162 : vector<16x1xf32> to vector<16x16xf32>
    %164 = arith.mulf %159, %163 : vector<16x16xf32>
    %165 = arith.truncf %164 : vector<16x16xf32> to vector<16x16xbf16>
    %cst_86 = arith.constant dense<0.000000e+00> : vector<16x8xf32>
    %166 = tpu.matmul %165, %148, %cst_86 {dimension_numbers = #tpu.dot_dimension_numbers<[1], [0], [0], [1], [0, 0, 1, 1], [], []>} : vector<16x16xbf16>, vector<16x8xbf16>, vector<16x8xf32> -> vector<16x8xf32>
    %167 = arith.truncf %166 : vector<16x8xf32> to vector<16x8xbf16>
    %c0_87 = arith.constant 0 : index
    %c40_88 = arith.constant 40 : index
    %168 = vector.load %arg10[%c0_87, %c40_88] : memref<16x128xbf16, #tpu.memory_space<vmem>>, vector<16x8xbf16>
    tpu.vector_store %arg10[%c0_87, %c40_88], %167 {strides = array<i32>} : memref<16x128xbf16, #tpu.memory_space<vmem>>, vector<16x8xbf16>,
    %c0_89 = arith.constant 0 : index
    %c48 = arith.constant 48 : index
    %169 = vector.load %arg9[%c0_89, %c48] : memref<16x384xbf16, #tpu.memory_space<vmem>>, vector<16x8xbf16>
    %c0_90 = arith.constant 0 : index
    %c176 = arith.constant 176 : index
    %170 = vector.load %arg9[%c0_90, %c176] : memref<16x384xbf16, #tpu.memory_space<vmem>>, vector<16x8xbf16>
    %c0_91 = arith.constant 0 : index
    %c304 = arith.constant 304 : index
    %171 = vector.load %arg9[%c0_91, %c304] : memref<16x384xbf16, #tpu.memory_space<vmem>>, vector<16x8xbf16>
    %cst_92 = arith.constant dense<0.000000e+00> : vector<16x16xf32>
    %172 = tpu.matmul %169, %170, %cst_92 {dimension_numbers = #tpu.dot_dimension_numbers<[1], [1], [0], [0], [0, 0, 1, 0], [], []>} : vector<16x8xbf16>, vector<16x8xbf16>, vector<16x16xf32> -> vector<16x16xf32>
    %cst_93 = arith.constant 0.353553385 : f32
    %173 = vector.broadcast %cst_93 : f32 to vector<16x16xf32>
    %174 = arith.mulf %172, %173 : vector<16x16xf32>
    %c6 = arith.constant 6 : index
    %c0_94 = arith.constant 0 : index
    %c0_95 = arith.constant 0 : index
    %175 = vector.load %arg7[%c6, %c0_94, %c0_95] : memref<16x16x16xf32, #tpu.memory_space<vmem>>, vector<1x16x16xf32>
    %176 = vector.shape_cast %175 : vector<1x16x16xf32> to vector<16x16xf32>
    %177 = arith.addf %174, %176 : vector<16x16xf32>
    %cst_96 = arith.constant dense<0xFF800000> : vector<16xf32>
    %178 = vector.multi_reduction <maximumf>, %177, %cst_96 [1] : vector<16x16xf32> to vector<16xf32>
    %179 = vector.shape_cast %178 : vector<16xf32> to vector<16x1xf32>
    %180 = vector.broadcast %179 : vector<16x1xf32> to vector<16x16xf32>
    %181 = arith.subf %177, %180 : vector<16x16xf32>
    %182 = math.exp %181 : vector<16x16xf32>
    %cst_97 = arith.constant dense<0.000000e+00> : vector<16xf32>
    %183 = vector.multi_reduction <add>, %182, %cst_97 [1] : vector<16x16xf32> to vector<16xf32>
    %184 = vector.shape_cast %183 : vector<16xf32> to vector<16x1xf32>
    %185 = tpu.reciprocal %184 {approx = true} : vector<16x1xf32> -> vector<16x1xf32>
    %186 = vector.broadcast %185 : vector<16x1xf32> to vector<16x16xf32>
    %187 = arith.mulf %182, %186 : vector<16x16xf32>
    %188 = arith.truncf %187 : vector<16x16xf32> to vector<16x16xbf16>
    %cst_98 = arith.constant dense<0.000000e+00> : vector<16x8xf32>
    %189 = tpu.matmul %188, %171, %cst_98 {dimension_numbers = #tpu.dot_dimension_numbers<[1], [0], [0], [1], [0, 0, 1, 1], [], []>} : vector<16x16xbf16>, vector<16x8xbf16>, vector<16x8xf32> -> vector<16x8xf32>
    %190 = arith.truncf %189 : vector<16x8xf32> to vector<16x8xbf16>
    %c0_99 = arith.constant 0 : index
    %c48_100 = arith.constant 48 : index
    %191 = vector.load %arg10[%c0_99, %c48_100] : memref<16x128xbf16, #tpu.memory_space<vmem>>, vector<16x8xbf16>
    tpu.vector_store %arg10[%c0_99, %c48_100], %190 {strides = array<i32>} : memref<16x128xbf16, #tpu.memory_space<vmem>>, vector<16x8xbf16>,
    %c0_101 = arith.constant 0 : index
    %c56 = arith.constant 56 : index
    %192 = vector.load %arg9[%c0_101, %c56] : memref<16x384xbf16, #tpu.memory_space<vmem>>, vector<16x8xbf16>
    %c0_102 = arith.constant 0 : index
    %c184 = arith.constant 184 : index
    %193 = vector.load %arg9[%c0_102, %c184] : memref<16x384xbf16, #tpu.memory_space<vmem>>, vector<16x8xbf16>
    %c0_103 = arith.constant 0 : index
    %c312 = arith.constant 312 : index
    %194 = vector.load %arg9[%c0_103, %c312] : memref<16x384xbf16, #tpu.memory_space<vmem>>, vector<16x8xbf16>
    %cst_104 = arith.constant dense<0.000000e+00> : vector<16x16xf32>
    %195 = tpu.matmul %192, %193, %cst_104 {dimension_numbers = #tpu.dot_dimension_numbers<[1], [1], [0], [0], [0, 0, 1, 0], [], []>} : vector<16x8xbf16>, vector<16x8xbf16>, vector<16x16xf32> -> vector<16x16xf32>
    %cst_105 = arith.constant 0.353553385 : f32
    %196 = vector.broadcast %cst_105 : f32 to vector<16x16xf32>
    %197 = arith.mulf %195, %196 : vector<16x16xf32>
    %c7 = arith.constant 7 : index
    %c0_106 = arith.constant 0 : index
    %c0_107 = arith.constant 0 : index
    %198 = vector.load %arg7[%c7, %c0_106, %c0_107] : memref<16x16x16xf32, #tpu.memory_space<vmem>>, vector<1x16x16xf32>
    %199 = vector.shape_cast %198 : vector<1x16x16xf32> to vector<16x16xf32>
    %200 = arith.addf %197, %199 : vector<16x16xf32>
    %cst_108 = arith.constant dense<0xFF800000> : vector<16xf32>
    %201 = vector.multi_reduction <maximumf>, %200, %cst_108 [1] : vector<16x16xf32> to vector<16xf32>
    %202 = vector.shape_cast %201 : vector<16xf32> to vector<16x1xf32>
    %203 = vector.broadcast %202 : vector<16x1xf32> to vector<16x16xf32>
    %204 = arith.subf %200, %203 : vector<16x16xf32>
    %205 = math.exp %204 : vector<16x16xf32>
    %cst_109 = arith.constant dense<0.000000e+00> : vector<16xf32>
    %206 = vector.multi_reduction <add>, %205, %cst_109 [1] : vector<16x16xf32> to vector<16xf32>
    %207 = vector.shape_cast %206 : vector<16xf32> to vector<16x1xf32>
    %208 = tpu.reciprocal %207 {approx = true} : vector<16x1xf32> -> vector<16x1xf32>
    %209 = vector.broadcast %208 : vector<16x1xf32> to vector<16x16xf32>
    %210 = arith.mulf %205, %209 : vector<16x16xf32>
    %211 = arith.truncf %210 : vector<16x16xf32> to vector<16x16xbf16>
    %cst_110 = arith.constant dense<0.000000e+00> : vector<16x8xf32>
    %212 = tpu.matmul %211, %194, %cst_110 {dimension_numbers = #tpu.dot_dimension_numbers<[1], [0], [0], [1], [0, 0, 1, 1], [], []>} : vector<16x16xbf16>, vector<16x8xbf16>, vector<16x8xf32> -> vector<16x8xf32>
    %213 = arith.truncf %212 : vector<16x8xf32> to vector<16x8xbf16>
    %c0_111 = arith.constant 0 : index
    %c56_112 = arith.constant 56 : index
    %214 = vector.load %arg10[%c0_111, %c56_112] : memref<16x128xbf16, #tpu.memory_space<vmem>>, vector<16x8xbf16>
    tpu.vector_store %arg10[%c0_111, %c56_112], %213 {strides = array<i32>} : memref<16x128xbf16, #tpu.memory_space<vmem>>, vector<16x8xbf16>,
    %c0_113 = arith.constant 0 : index
    %c64 = arith.constant 64 : index
    %215 = vector.load %arg9[%c0_113, %c64] : memref<16x384xbf16, #tpu.memory_space<vmem>>, vector<16x8xbf16>
    %c0_114 = arith.constant 0 : index
    %c192 = arith.constant 192 : index
    %216 = vector.load %arg9[%c0_114, %c192] : memref<16x384xbf16, #tpu.memory_space<vmem>>, vector<16x8xbf16>
    %c0_115 = arith.constant 0 : index
    %c320 = arith.constant 320 : index
    %217 = vector.load %arg9[%c0_115, %c320] : memref<16x384xbf16, #tpu.memory_space<vmem>>, vector<16x8xbf16>
    %cst_116 = arith.constant dense<0.000000e+00> : vector<16x16xf32>
    %218 = tpu.matmul %215, %216, %cst_116 {dimension_numbers = #tpu.dot_dimension_numbers<[1], [1], [0], [0], [0, 0, 1, 0], [], []>} : vector<16x8xbf16>, vector<16x8xbf16>, vector<16x16xf32> -> vector<16x16xf32>
    %cst_117 = arith.constant 0.353553385 : f32
    %219 = vector.broadcast %cst_117 : f32 to vector<16x16xf32>
    %220 = arith.mulf %218, %219 : vector<16x16xf32>
    %c8_118 = arith.constant 8 : index
    %c0_119 = arith.constant 0 : index
    %c0_120 = arith.constant 0 : index
    %221 = vector.load %arg7[%c8_118, %c0_119, %c0_120] : memref<16x16x16xf32, #tpu.memory_space<vmem>>, vector<1x16x16xf32>
    %222 = vector.shape_cast %221 : vector<1x16x16xf32> to vector<16x16xf32>
    %223 = arith.addf %220, %222 : vector<16x16xf32>
    %cst_121 = arith.constant dense<0xFF800000> : vector<16xf32>
    %224 = vector.multi_reduction <maximumf>, %223, %cst_121 [1] : vector<16x16xf32> to vector<16xf32>
    %225 = vector.shape_cast %224 : vector<16xf32> to vector<16x1xf32>
    %226 = vector.broadcast %225 : vector<16x1xf32> to vector<16x16xf32>
    %227 = arith.subf %223, %226 : vector<16x16xf32>
    %228 = math.exp %227 : vector<16x16xf32>
    %cst_122 = arith.constant dense<0.000000e+00> : vector<16xf32>
    %229 = vector.multi_reduction <add>, %228, %cst_122 [1] : vector<16x16xf32> to vector<16xf32>
    %230 = vector.shape_cast %229 : vector<16xf32> to vector<16x1xf32>
    %231 = tpu.reciprocal %230 {approx = true} : vector<16x1xf32> -> vector<16x1xf32>
    %232 = vector.broadcast %231 : vector<16x1xf32> to vector<16x16xf32>
    %233 = arith.mulf %228, %232 : vector<16x16xf32>
    %234 = arith.truncf %233 : vector<16x16xf32> to vector<16x16xbf16>
    %cst_123 = arith.constant dense<0.000000e+00> : vector<16x8xf32>
    %235 = tpu.matmul %234, %217, %cst_123 {dimension_numbers = #tpu.dot_dimension_numbers<[1], [0], [0], [1], [0, 0, 1, 1], [], []>} : vector<16x16xbf16>, vector<16x8xbf16>, vector<16x8xf32> -> vector<16x8xf32>
    %236 = arith.truncf %235 : vector<16x8xf32> to vector<16x8xbf16>
    %c0_124 = arith.constant 0 : index
    %c64_125 = arith.constant 64 : index
    %237 = vector.load %arg10[%c0_124, %c64_125] : memref<16x128xbf16, #tpu.memory_space<vmem>>, vector<16x8xbf16>
    tpu.vector_store %arg10[%c0_124, %c64_125], %236 {strides = array<i32>} : memref<16x128xbf16, #tpu.memory_space<vmem>>, vector<16x8xbf16>,
    %c0_126 = arith.constant 0 : index
    %c72 = arith.constant 72 : index
    %238 = vector.load %arg9[%c0_126, %c72] : memref<16x384xbf16, #tpu.memory_space<vmem>>, vector<16x8xbf16>
    %c0_127 = arith.constant 0 : index
    %c200 = arith.constant 200 : index
    %239 = vector.load %arg9[%c0_127, %c200] : memref<16x384xbf16, #tpu.memory_space<vmem>>, vector<16x8xbf16>
    %c0_128 = arith.constant 0 : index
    %c328 = arith.constant 328 : index
    %240 = vector.load %arg9[%c0_128, %c328] : memref<16x384xbf16, #tpu.memory_space<vmem>>, vector<16x8xbf16>
    %cst_129 = arith.constant dense<0.000000e+00> : vector<16x16xf32>
    %241 = tpu.matmul %238, %239, %cst_129 {dimension_numbers = #tpu.dot_dimension_numbers<[1], [1], [0], [0], [0, 0, 1, 0], [], []>} : vector<16x8xbf16>, vector<16x8xbf16>, vector<16x16xf32> -> vector<16x16xf32>
    %cst_130 = arith.constant 0.353553385 : f32
    %242 = vector.broadcast %cst_130 : f32 to vector<16x16xf32>
    %243 = arith.mulf %241, %242 : vector<16x16xf32>
    %c9 = arith.constant 9 : index
    %c0_131 = arith.constant 0 : index
    %c0_132 = arith.constant 0 : index
    %244 = vector.load %arg7[%c9, %c0_131, %c0_132] : memref<16x16x16xf32, #tpu.memory_space<vmem>>, vector<1x16x16xf32>
    %245 = vector.shape_cast %244 : vector<1x16x16xf32> to vector<16x16xf32>
    %246 = arith.addf %243, %245 : vector<16x16xf32>
    %cst_133 = arith.constant dense<0xFF800000> : vector<16xf32>
    %247 = vector.multi_reduction <maximumf>, %246, %cst_133 [1] : vector<16x16xf32> to vector<16xf32>
    %248 = vector.shape_cast %247 : vector<16xf32> to vector<16x1xf32>
    %249 = vector.broadcast %248 : vector<16x1xf32> to vector<16x16xf32>
    %250 = arith.subf %246, %249 : vector<16x16xf32>
    %251 = math.exp %250 : vector<16x16xf32>
    %cst_134 = arith.constant dense<0.000000e+00> : vector<16xf32>
    %252 = vector.multi_reduction <add>, %251, %cst_134 [1] : vector<16x16xf32> to vector<16xf32>
    %253 = vector.shape_cast %252 : vector<16xf32> to vector<16x1xf32>
    %254 = tpu.reciprocal %253 {approx = true} : vector<16x1xf32> -> vector<16x1xf32>
    %255 = vector.broadcast %254 : vector<16x1xf32> to vector<16x16xf32>
    %256 = arith.mulf %251, %255 : vector<16x16xf32>
    %257 = arith.truncf %256 : vector<16x16xf32> to vector<16x16xbf16>
    %cst_135 = arith.constant dense<0.000000e+00> : vector<16x8xf32>
    %258 = tpu.matmul %257, %240, %cst_135 {dimension_numbers = #tpu.dot_dimension_numbers<[1], [0], [0], [1], [0, 0, 1, 1], [], []>} : vector<16x16xbf16>, vector<16x8xbf16>, vector<16x8xf32> -> vector<16x8xf32>
    %259 = arith.truncf %258 : vector<16x8xf32> to vector<16x8xbf16>
    %c0_136 = arith.constant 0 : index
    %c72_137 = arith.constant 72 : index
    %260 = vector.load %arg10[%c0_136, %c72_137] : memref<16x128xbf16, #tpu.memory_space<vmem>>, vector<16x8xbf16>
    tpu.vector_store %arg10[%c0_136, %c72_137], %259 {strides = array<i32>} : memref<16x128xbf16, #tpu.memory_space<vmem>>, vector<16x8xbf16>,
    %c0_138 = arith.constant 0 : index
    %c80 = arith.constant 80 : index
    %261 = vector.load %arg9[%c0_138, %c80] : memref<16x384xbf16, #tpu.memory_space<vmem>>, vector<16x8xbf16>
    %c0_139 = arith.constant 0 : index
    %c208 = arith.constant 208 : index
    %262 = vector.load %arg9[%c0_139, %c208] : memref<16x384xbf16, #tpu.memory_space<vmem>>, vector<16x8xbf16>
    %c0_140 = arith.constant 0 : index
    %c336 = arith.constant 336 : index
    %263 = vector.load %arg9[%c0_140, %c336] : memref<16x384xbf16, #tpu.memory_space<vmem>>, vector<16x8xbf16>
    %cst_141 = arith.constant dense<0.000000e+00> : vector<16x16xf32>
    %264 = tpu.matmul %261, %262, %cst_141 {dimension_numbers = #tpu.dot_dimension_numbers<[1], [1], [0], [0], [0, 0, 1, 0], [], []>} : vector<16x8xbf16>, vector<16x8xbf16>, vector<16x16xf32> -> vector<16x16xf32>
    %cst_142 = arith.constant 0.353553385 : f32
    %265 = vector.broadcast %cst_142 : f32 to vector<16x16xf32>
    %266 = arith.mulf %264, %265 : vector<16x16xf32>
    %c10 = arith.constant 10 : index
    %c0_143 = arith.constant 0 : index
    %c0_144 = arith.constant 0 : index
    %267 = vector.load %arg7[%c10, %c0_143, %c0_144] : memref<16x16x16xf32, #tpu.memory_space<vmem>>, vector<1x16x16xf32>
    %268 = vector.shape_cast %267 : vector<1x16x16xf32> to vector<16x16xf32>
    %269 = arith.addf %266, %268 : vector<16x16xf32>
    %cst_145 = arith.constant dense<0xFF800000> : vector<16xf32>
    %270 = vector.multi_reduction <maximumf>, %269, %cst_145 [1] : vector<16x16xf32> to vector<16xf32>
    %271 = vector.shape_cast %270 : vector<16xf32> to vector<16x1xf32>
    %272 = vector.broadcast %271 : vector<16x1xf32> to vector<16x16xf32>
    %273 = arith.subf %269, %272 : vector<16x16xf32>
    %274 = math.exp %273 : vector<16x16xf32>
    %cst_146 = arith.constant dense<0.000000e+00> : vector<16xf32>
    %275 = vector.multi_reduction <add>, %274, %cst_146 [1] : vector<16x16xf32> to vector<16xf32>
    %276 = vector.shape_cast %275 : vector<16xf32> to vector<16x1xf32>
    %277 = tpu.reciprocal %276 {approx = true} : vector<16x1xf32> -> vector<16x1xf32>
    %278 = vector.broadcast %277 : vector<16x1xf32> to vector<16x16xf32>
    %279 = arith.mulf %274, %278 : vector<16x16xf32>
    %280 = arith.truncf %279 : vector<16x16xf32> to vector<16x16xbf16>
    %cst_147 = arith.constant dense<0.000000e+00> : vector<16x8xf32>
    %281 = tpu.matmul %280, %263, %cst_147 {dimension_numbers = #tpu.dot_dimension_numbers<[1], [0], [0], [1], [0, 0, 1, 1], [], []>} : vector<16x16xbf16>, vector<16x8xbf16>, vector<16x8xf32> -> vector<16x8xf32>
    %282 = arith.truncf %281 : vector<16x8xf32> to vector<16x8xbf16>
    %c0_148 = arith.constant 0 : index
    %c80_149 = arith.constant 80 : index
    %283 = vector.load %arg10[%c0_148, %c80_149] : memref<16x128xbf16, #tpu.memory_space<vmem>>, vector<16x8xbf16>
    tpu.vector_store %arg10[%c0_148, %c80_149], %282 {strides = array<i32>} : memref<16x128xbf16, #tpu.memory_space<vmem>>, vector<16x8xbf16>,
    %c0_150 = arith.constant 0 : index
    %c88 = arith.constant 88 : index
    %284 = vector.load %arg9[%c0_150, %c88] : memref<16x384xbf16, #tpu.memory_space<vmem>>, vector<16x8xbf16>
    %c0_151 = arith.constant 0 : index
    %c216 = arith.constant 216 : index
    %285 = vector.load %arg9[%c0_151, %c216] : memref<16x384xbf16, #tpu.memory_space<vmem>>, vector<16x8xbf16>
    %c0_152 = arith.constant 0 : index
    %c344 = arith.constant 344 : index
    %286 = vector.load %arg9[%c0_152, %c344] : memref<16x384xbf16, #tpu.memory_space<vmem>>, vector<16x8xbf16>
    %cst_153 = arith.constant dense<0.000000e+00> : vector<16x16xf32>
    %287 = tpu.matmul %284, %285, %cst_153 {dimension_numbers = #tpu.dot_dimension_numbers<[1], [1], [0], [0], [0, 0, 1, 0], [], []>} : vector<16x8xbf16>, vector<16x8xbf16>, vector<16x16xf32> -> vector<16x16xf32>
    %cst_154 = arith.constant 0.353553385 : f32
    %288 = vector.broadcast %cst_154 : f32 to vector<16x16xf32>
    %289 = arith.mulf %287, %288 : vector<16x16xf32>
    %c11 = arith.constant 11 : index
    %c0_155 = arith.constant 0 : index
    %c0_156 = arith.constant 0 : index
    %290 = vector.load %arg7[%c11, %c0_155, %c0_156] : memref<16x16x16xf32, #tpu.memory_space<vmem>>, vector<1x16x16xf32>
    %291 = vector.shape_cast %290 : vector<1x16x16xf32> to vector<16x16xf32>
    %292 = arith.addf %289, %291 : vector<16x16xf32>
    %cst_157 = arith.constant dense<0xFF800000> : vector<16xf32>
    %293 = vector.multi_reduction <maximumf>, %292, %cst_157 [1] : vector<16x16xf32> to vector<16xf32>
    %294 = vector.shape_cast %293 : vector<16xf32> to vector<16x1xf32>
    %295 = vector.broadcast %294 : vector<16x1xf32> to vector<16x16xf32>
    %296 = arith.subf %292, %295 : vector<16x16xf32>
    %297 = math.exp %296 : vector<16x16xf32>
    %cst_158 = arith.constant dense<0.000000e+00> : vector<16xf32>
    %298 = vector.multi_reduction <add>, %297, %cst_158 [1] : vector<16x16xf32> to vector<16xf32>
    %299 = vector.shape_cast %298 : vector<16xf32> to vector<16x1xf32>
    %300 = tpu.reciprocal %299 {approx = true} : vector<16x1xf32> -> vector<16x1xf32>
    %301 = vector.broadcast %300 : vector<16x1xf32> to vector<16x16xf32>
    %302 = arith.mulf %297, %301 : vector<16x16xf32>
    %303 = arith.truncf %302 : vector<16x16xf32> to vector<16x16xbf16>
    %cst_159 = arith.constant dense<0.000000e+00> : vector<16x8xf32>
    %304 = tpu.matmul %303, %286, %cst_159 {dimension_numbers = #tpu.dot_dimension_numbers<[1], [0], [0], [1], [0, 0, 1, 1], [], []>} : vector<16x16xbf16>, vector<16x8xbf16>, vector<16x8xf32> -> vector<16x8xf32>
    %305 = arith.truncf %304 : vector<16x8xf32> to vector<16x8xbf16>
    %c0_160 = arith.constant 0 : index
    %c88_161 = arith.constant 88 : index
    %306 = vector.load %arg10[%c0_160, %c88_161] : memref<16x128xbf16, #tpu.memory_space<vmem>>, vector<16x8xbf16>
    tpu.vector_store %arg10[%c0_160, %c88_161], %305 {strides = array<i32>} : memref<16x128xbf16, #tpu.memory_space<vmem>>, vector<16x8xbf16>,
    %c0_162 = arith.constant 0 : index
    %c96 = arith.constant 96 : index
    %307 = vector.load %arg9[%c0_162, %c96] : memref<16x384xbf16, #tpu.memory_space<vmem>>, vector<16x8xbf16>
    %c0_163 = arith.constant 0 : index
    %c224 = arith.constant 224 : index
    %308 = vector.load %arg9[%c0_163, %c224] : memref<16x384xbf16, #tpu.memory_space<vmem>>, vector<16x8xbf16>
    %c0_164 = arith.constant 0 : index
    %c352 = arith.constant 352 : index
    %309 = vector.load %arg9[%c0_164, %c352] : memref<16x384xbf16, #tpu.memory_space<vmem>>, vector<16x8xbf16>
    %cst_165 = arith.constant dense<0.000000e+00> : vector<16x16xf32>
    %310 = tpu.matmul %307, %308, %cst_165 {dimension_numbers = #tpu.dot_dimension_numbers<[1], [1], [0], [0], [0, 0, 1, 0], [], []>} : vector<16x8xbf16>, vector<16x8xbf16>, vector<16x16xf32> -> vector<16x16xf32>
    %cst_166 = arith.constant 0.353553385 : f32
    %311 = vector.broadcast %cst_166 : f32 to vector<16x16xf32>
    %312 = arith.mulf %310, %311 : vector<16x16xf32>
    %c12 = arith.constant 12 : index
    %c0_167 = arith.constant 0 : index
    %c0_168 = arith.constant 0 : index
    %313 = vector.load %arg7[%c12, %c0_167, %c0_168] : memref<16x16x16xf32, #tpu.memory_space<vmem>>, vector<1x16x16xf32>
    %314 = vector.shape_cast %313 : vector<1x16x16xf32> to vector<16x16xf32>
    %315 = arith.addf %312, %314 : vector<16x16xf32>
    %cst_169 = arith.constant dense<0xFF800000> : vector<16xf32>
    %316 = vector.multi_reduction <maximumf>, %315, %cst_169 [1] : vector<16x16xf32> to vector<16xf32>
    %317 = vector.shape_cast %316 : vector<16xf32> to vector<16x1xf32>
    %318 = vector.broadcast %317 : vector<16x1xf32> to vector<16x16xf32>
    %319 = arith.subf %315, %318 : vector<16x16xf32>
    %320 = math.exp %319 : vector<16x16xf32>
    %cst_170 = arith.constant dense<0.000000e+00> : vector<16xf32>
    %321 = vector.multi_reduction <add>, %320, %cst_170 [1] : vector<16x16xf32> to vector<16xf32>
    %322 = vector.shape_cast %321 : vector<16xf32> to vector<16x1xf32>
    %323 = tpu.reciprocal %322 {approx = true} : vector<16x1xf32> -> vector<16x1xf32>
    %324 = vector.broadcast %323 : vector<16x1xf32> to vector<16x16xf32>
    %325 = arith.mulf %320, %324 : vector<16x16xf32>
    %326 = arith.truncf %325 : vector<16x16xf32> to vector<16x16xbf16>
    %cst_171 = arith.constant dense<0.000000e+00> : vector<16x8xf32>
    %327 = tpu.matmul %326, %309, %cst_171 {dimension_numbers = #tpu.dot_dimension_numbers<[1], [0], [0], [1], [0, 0, 1, 1], [], []>} : vector<16x16xbf16>, vector<16x8xbf16>, vector<16x8xf32> -> vector<16x8xf32>
    %328 = arith.truncf %327 : vector<16x8xf32> to vector<16x8xbf16>
    %c0_172 = arith.constant 0 : index
    %c96_173 = arith.constant 96 : index
    %329 = vector.load %arg10[%c0_172, %c96_173] : memref<16x128xbf16, #tpu.memory_space<vmem>>, vector<16x8xbf16>
    tpu.vector_store %arg10[%c0_172, %c96_173], %328 {strides = array<i32>} : memref<16x128xbf16, #tpu.memory_space<vmem>>, vector<16x8xbf16>,
    %c0_174 = arith.constant 0 : index
    %c104 = arith.constant 104 : index
    %330 = vector.load %arg9[%c0_174, %c104] : memref<16x384xbf16, #tpu.memory_space<vmem>>, vector<16x8xbf16>
    %c0_175 = arith.constant 0 : index
    %c232 = arith.constant 232 : index
    %331 = vector.load %arg9[%c0_175, %c232] : memref<16x384xbf16, #tpu.memory_space<vmem>>, vector<16x8xbf16>
    %c0_176 = arith.constant 0 : index
    %c360 = arith.constant 360 : index
    %332 = vector.load %arg9[%c0_176, %c360] : memref<16x384xbf16, #tpu.memory_space<vmem>>, vector<16x8xbf16>
    %cst_177 = arith.constant dense<0.000000e+00> : vector<16x16xf32>
    %333 = tpu.matmul %330, %331, %cst_177 {dimension_numbers = #tpu.dot_dimension_numbers<[1], [1], [0], [0], [0, 0, 1, 0], [], []>} : vector<16x8xbf16>, vector<16x8xbf16>, vector<16x16xf32> -> vector<16x16xf32>
    %cst_178 = arith.constant 0.353553385 : f32
    %334 = vector.broadcast %cst_178 : f32 to vector<16x16xf32>
    %335 = arith.mulf %333, %334 : vector<16x16xf32>
    %c13 = arith.constant 13 : index
    %c0_179 = arith.constant 0 : index
    %c0_180 = arith.constant 0 : index
    %336 = vector.load %arg7[%c13, %c0_179, %c0_180] : memref<16x16x16xf32, #tpu.memory_space<vmem>>, vector<1x16x16xf32>
    %337 = vector.shape_cast %336 : vector<1x16x16xf32> to vector<16x16xf32>
    %338 = arith.addf %335, %337 : vector<16x16xf32>
    %cst_181 = arith.constant dense<0xFF800000> : vector<16xf32>
    %339 = vector.multi_reduction <maximumf>, %338, %cst_181 [1] : vector<16x16xf32> to vector<16xf32>
    %340 = vector.shape_cast %339 : vector<16xf32> to vector<16x1xf32>
    %341 = vector.broadcast %340 : vector<16x1xf32> to vector<16x16xf32>
    %342 = arith.subf %338, %341 : vector<16x16xf32>
    %343 = math.exp %342 : vector<16x16xf32>
    %cst_182 = arith.constant dense<0.000000e+00> : vector<16xf32>
    %344 = vector.multi_reduction <add>, %343, %cst_182 [1] : vector<16x16xf32> to vector<16xf32>
    %345 = vector.shape_cast %344 : vector<16xf32> to vector<16x1xf32>
    %346 = tpu.reciprocal %345 {approx = true} : vector<16x1xf32> -> vector<16x1xf32>
    %347 = vector.broadcast %346 : vector<16x1xf32> to vector<16x16xf32>
    %348 = arith.mulf %343, %347 : vector<16x16xf32>
    %349 = arith.truncf %348 : vector<16x16xf32> to vector<16x16xbf16>
    %cst_183 = arith.constant dense<0.000000e+00> : vector<16x8xf32>
    %350 = tpu.matmul %349, %332, %cst_183 {dimension_numbers = #tpu.dot_dimension_numbers<[1], [0], [0], [1], [0, 0, 1, 1], [], []>} : vector<16x16xbf16>, vector<16x8xbf16>, vector<16x8xf32> -> vector<16x8xf32>
    %351 = arith.truncf %350 : vector<16x8xf32> to vector<16x8xbf16>
    %c0_184 = arith.constant 0 : index
    %c104_185 = arith.constant 104 : index
    %352 = vector.load %arg10[%c0_184, %c104_185] : memref<16x128xbf16, #tpu.memory_space<vmem>>, vector<16x8xbf16>
    tpu.vector_store %arg10[%c0_184, %c104_185], %351 {strides = array<i32>} : memref<16x128xbf16, #tpu.memory_space<vmem>>, vector<16x8xbf16>,
    %c0_186 = arith.constant 0 : index
    %c112 = arith.constant 112 : index
    %353 = vector.load %arg9[%c0_186, %c112] : memref<16x384xbf16, #tpu.memory_space<vmem>>, vector<16x8xbf16>
    %c0_187 = arith.constant 0 : index
    %c240 = arith.constant 240 : index
    %354 = vector.load %arg9[%c0_187, %c240] : memref<16x384xbf16, #tpu.memory_space<vmem>>, vector<16x8xbf16>
    %c0_188 = arith.constant 0 : index
    %c368 = arith.constant 368 : index
    %355 = vector.load %arg9[%c0_188, %c368] : memref<16x384xbf16, #tpu.memory_space<vmem>>, vector<16x8xbf16>
    %cst_189 = arith.constant dense<0.000000e+00> : vector<16x16xf32>
    %356 = tpu.matmul %353, %354, %cst_189 {dimension_numbers = #tpu.dot_dimension_numbers<[1], [1], [0], [0], [0, 0, 1, 0], [], []>} : vector<16x8xbf16>, vector<16x8xbf16>, vector<16x16xf32> -> vector<16x16xf32>
    %cst_190 = arith.constant 0.353553385 : f32
    %357 = vector.broadcast %cst_190 : f32 to vector<16x16xf32>
    %358 = arith.mulf %356, %357 : vector<16x16xf32>
    %c14 = arith.constant 14 : index
    %c0_191 = arith.constant 0 : index
    %c0_192 = arith.constant 0 : index
    %359 = vector.load %arg7[%c14, %c0_191, %c0_192] : memref<16x16x16xf32, #tpu.memory_space<vmem>>, vector<1x16x16xf32>
    %360 = vector.shape_cast %359 : vector<1x16x16xf32> to vector<16x16xf32>
    %361 = arith.addf %358, %360 : vector<16x16xf32>
    %cst_193 = arith.constant dense<0xFF800000> : vector<16xf32>
    %362 = vector.multi_reduction <maximumf>, %361, %cst_193 [1] : vector<16x16xf32> to vector<16xf32>
    %363 = vector.shape_cast %362 : vector<16xf32> to vector<16x1xf32>
    %364 = vector.broadcast %363 : vector<16x1xf32> to vector<16x16xf32>
    %365 = arith.subf %361, %364 : vector<16x16xf32>
    %366 = math.exp %365 : vector<16x16xf32>
    %cst_194 = arith.constant dense<0.000000e+00> : vector<16xf32>
    %367 = vector.multi_reduction <add>, %366, %cst_194 [1] : vector<16x16xf32> to vector<16xf32>
    %368 = vector.shape_cast %367 : vector<16xf32> to vector<16x1xf32>
    %369 = tpu.reciprocal %368 {approx = true} : vector<16x1xf32> -> vector<16x1xf32>
    %370 = vector.broadcast %369 : vector<16x1xf32> to vector<16x16xf32>
    %371 = arith.mulf %366, %370 : vector<16x16xf32>
    %372 = arith.truncf %371 : vector<16x16xf32> to vector<16x16xbf16>
    %cst_195 = arith.constant dense<0.000000e+00> : vector<16x8xf32>
    %373 = tpu.matmul %372, %355, %cst_195 {dimension_numbers = #tpu.dot_dimension_numbers<[1], [0], [0], [1], [0, 0, 1, 1], [], []>} : vector<16x16xbf16>, vector<16x8xbf16>, vector<16x8xf32> -> vector<16x8xf32>
    %374 = arith.truncf %373 : vector<16x8xf32> to vector<16x8xbf16>
    %c0_196 = arith.constant 0 : index
    %c112_197 = arith.constant 112 : index
    %375 = vector.load %arg10[%c0_196, %c112_197] : memref<16x128xbf16, #tpu.memory_space<vmem>>, vector<16x8xbf16>
    tpu.vector_store %arg10[%c0_196, %c112_197], %374 {strides = array<i32>} : memref<16x128xbf16, #tpu.memory_space<vmem>>, vector<16x8xbf16>,
    %c0_198 = arith.constant 0 : index
    %c120 = arith.constant 120 : index
    %376 = vector.load %arg9[%c0_198, %c120] : memref<16x384xbf16, #tpu.memory_space<vmem>>, vector<16x8xbf16>
    %c0_199 = arith.constant 0 : index
    %c248 = arith.constant 248 : index
    %377 = vector.load %arg9[%c0_199, %c248] : memref<16x384xbf16, #tpu.memory_space<vmem>>, vector<16x8xbf16>
    %c0_200 = arith.constant 0 : index
    %c376 = arith.constant 376 : index
    %378 = vector.load %arg9[%c0_200, %c376] : memref<16x384xbf16, #tpu.memory_space<vmem>>, vector<16x8xbf16>
    %cst_201 = arith.constant dense<0.000000e+00> : vector<16x16xf32>
    %379 = tpu.matmul %376, %377, %cst_201 {dimension_numbers = #tpu.dot_dimension_numbers<[1], [1], [0], [0], [0, 0, 1, 0], [], []>} : vector<16x8xbf16>, vector<16x8xbf16>, vector<16x16xf32> -> vector<16x16xf32>
    %cst_202 = arith.constant 0.353553385 : f32
    %380 = vector.broadcast %cst_202 : f32 to vector<16x16xf32>
    %381 = arith.mulf %379, %380 : vector<16x16xf32>
    %c15 = arith.constant 15 : index
    %c0_203 = arith.constant 0 : index
    %c0_204 = arith.constant 0 : index
    %382 = vector.load %arg7[%c15, %c0_203, %c0_204] : memref<16x16x16xf32, #tpu.memory_space<vmem>>, vector<1x16x16xf32>
    %383 = vector.shape_cast %382 : vector<1x16x16xf32> to vector<16x16xf32>
    %384 = arith.addf %381, %383 : vector<16x16xf32>
    %cst_205 = arith.constant dense<0xFF800000> : vector<16xf32>
    %385 = vector.multi_reduction <maximumf>, %384, %cst_205 [1] : vector<16x16xf32> to vector<16xf32>
    %386 = vector.shape_cast %385 : vector<16xf32> to vector<16x1xf32>
    %387 = vector.broadcast %386 : vector<16x1xf32> to vector<16x16xf32>
    %388 = arith.subf %384, %387 : vector<16x16xf32>
    %389 = math.exp %388 : vector<16x16xf32>
    %cst_206 = arith.constant dense<0.000000e+00> : vector<16xf32>
    %390 = vector.multi_reduction <add>, %389, %cst_206 [1] : vector<16x16xf32> to vector<16xf32>
    %391 = vector.shape_cast %390 : vector<16xf32> to vector<16x1xf32>
    %392 = tpu.reciprocal %391 {approx = true} : vector<16x1xf32> -> vector<16x1xf32>
    %393 = vector.broadcast %392 : vector<16x1xf32> to vector<16x16xf32>
    %394 = arith.mulf %389, %393 : vector<16x16xf32>
    %395 = arith.truncf %394 : vector<16x16xf32> to vector<16x16xbf16>
    %cst_207 = arith.constant dense<0.000000e+00> : vector<16x8xf32>
    %396 = tpu.matmul %395, %378, %cst_207 {dimension_numbers = #tpu.dot_dimension_numbers<[1], [0], [0], [1], [0, 0, 1, 1], [], []>} : vector<16x16xbf16>, vector<16x8xbf16>, vector<16x8xf32> -> vector<16x8xf32>
    %397 = arith.truncf %396 : vector<16x8xf32> to vector<16x8xbf16>
    %c0_208 = arith.constant 0 : index
    %c120_209 = arith.constant 120 : index
    %398 = vector.load %arg10[%c0_208, %c120_209] : memref<16x128xbf16, #tpu.memory_space<vmem>>, vector<16x8xbf16>
    tpu.vector_store %arg10[%c0_208, %c120_209], %397 {strides = array<i32>} : memref<16x128xbf16, #tpu.memory_space<vmem>>, vector<16x8xbf16>,
    %c0_210 = arith.constant 0 : index
    %c0_211 = arith.constant 0 : index
    %399 = vector.load %arg10[%c0_210, %c0_211] : memref<16x128xbf16, #tpu.memory_space<vmem>>, vector<16x128xbf16>
    %c0_212 = arith.constant 0 : index
    %c0_213 = arith.constant 0 : index
    %400 = vector.load %arg5[%c0_212, %c0_213] : memref<128x128xbf16, #tpu.memory_space<vmem>>, vector<128x128xbf16>
    %cst_214 = arith.constant dense<0.000000e+00> : vector<16x128xf32>
    %401 = tpu.matmul %399, %400, %cst_214 {dimension_numbers = #tpu.dot_dimension_numbers<[1], [0], [0], [1], [0, 0, 1, 1], [], []>} : vector<16x128xbf16>, vector<128x128xbf16>, vector<16x128xf32> -> vector<16x128xf32>
    %c0_215 = arith.constant 0 : index
    %c0_216 = arith.constant 0 : index
    %402 = vector.load %arg6[%c0_215, %c0_216] : memref<1x128xf32, #tpu.memory_space<vmem>>, vector<1x128xf32>
    %403 = vector.broadcast %402 : vector<1x128xf32> to vector<16x128xf32>
    %404 = arith.addf %401, %403 : vector<16x128xf32>
    %405 = arith.addf %404, %1 : vector<16x128xf32>
    %c0_217 = arith.constant 0 : index
    %c0_218 = arith.constant 0 : index
    %c0_219 = arith.constant 0 : index
    %406 = vector.load %arg8[%c0_217, %c0_218, %c0_219] : memref<1x16x128xf32, #tpu.memory_space<vmem>>, vector<1x16x128xf32>
    %407 = vector.shape_cast %406 : vector<1x16x128xf32> to vector<16x128xf32>
    %408 = vector.shape_cast %405 : vector<16x128xf32> to vector<1x16x128xf32>
    tpu.vector_store %arg8[%c0_217, %c0_218, %c0_219], %408 {strides = array<i32>} : memref<1x16x128xf32, #tpu.memory_space<vmem>>, vector<1x16x128xf32>,
    return
  }
  func.func @transform_0(%arg0: i32) -> (i32, i32, i32) {
    %c0_i32 = arith.constant 0 : i32
    %c0_i32_0 = arith.constant 0 : i32
    %c0_i32_1 = arith.constant 0 : i32
    return %arg0, %c0_i32, %c0_i32_0 : i32, i32, i32
  }
  func.func @transform_1(%arg0: i32) -> (i32, i32) {
    %c0_i32 = arith.constant 0 : i32
    %c0_i32_0 = arith.constant 0 : i32
    %c0_i32_1 = arith.constant 0 : i32
    return %c0_i32, %c0_i32_0 : i32, i32
  }
  func.func @transform_2(%arg0: i32) -> (i32, i32) {
    %c0_i32 = arith.constant 0 : i32
    %c0_i32_0 = arith.constant 0 : i32
    %c0_i32_1 = arith.constant 0 : i32
    return %c0_i32, %c0_i32_0 : i32, i32
  }
  func.func @transform_3(%arg0: i32) -> (i32, i32) {
    %c0_i32 = arith.constant 0 : i32
    %c0_i32_0 = arith.constant 0 : i32
    %c0_i32_1 = arith.constant 0 : i32
    return %c0_i32, %c0_i32_0 : i32, i32
  }
  func.func @transform_4(%arg0: i32) -> (i32, i32) {
    %c0_i32 = arith.constant 0 : i32
    %c0_i32_0 = arith.constant 0 : i32
    %c0_i32_1 = arith.constant 0 : i32
    return %c0_i32, %c0_i32_0 : i32, i32
  }
  func.func @transform_5(%arg0: i32) -> (i32, i32) {
    %c0_i32 = arith.constant 0 : i32
    %c0_i32_0 = arith.constant 0 : i32
    %c0_i32_1 = arith.constant 0 : i32
    return %c0_i32, %c0_i32_0 : i32, i32
  }
  func.func @transform_6(%arg0: i32) -> (i32, i32, i32) {
    %c0_i32 = arith.constant 0 : i32
    %c0_i32_0 = arith.constant 0 : i32
    %c0_i32_1 = arith.constant 0 : i32
    %c0_i32_2 = arith.constant 0 : i32
    return %c0_i32, %c0_i32_0, %c0_i32_1 : i32, i32, i32
  }
  func.func @transform_7(%arg0: i32) -> (i32, i32, i32) {
    %c0_i32 = arith.constant 0 : i32
    %c0_i32_0 = arith.constant 0 : i32
    %c0_i32_1 = arith.constant 0 : i32
    return %arg0, %c0_i32, %c0_i32_0 : i32, i32, i32
  }
}

module attributes {stable_mosaic.version = 11 : i64} {
  func.func @_layernorm_kernel(%arg0: i32, %arg1: memref<16x128xf32, #tpu.memory_space<vmem>>, %arg2: memref<1x128xf32, #tpu.memory_space<vmem>>, %arg3: memref<1x128xf32, #tpu.memory_space<vmem>>, %arg4: memref<16x128xf32, #tpu.memory_space<vmem>>) attributes {dimension_semantics = [#tpu.dimension_semantics<parallel>], iteration_bounds = array<i64: 2>, scalar_prefetch = 0 : i64, scratch_operands = 0 : i64, tpu.core_type = #tpu.core_type<tc>, window_params = [{transform_indices = @transform_0, window_bounds = array<i64: 16, 128>}, {pipeline_mode = #tpu.pipeline_mode<synchronous>, transform_indices = @transform_1, window_bounds = array<i64: 1, 128>}, {pipeline_mode = #tpu.pipeline_mode<synchronous>, transform_indices = @transform_2, window_bounds = array<i64: 1, 128>}, {transform_indices = @transform_3, window_bounds = array<i64: 16, 128>}]} {
    %c0 = arith.constant 0 : index
    %c0_0 = arith.constant 0 : index
    %0 = vector.load %arg1[%c0, %c0_0] : memref<16x128xf32, #tpu.memory_space<vmem>>, vector<16x128xf32>
    %cst = arith.constant dense<0.000000e+00> : vector<16xf32>
    %1 = vector.multi_reduction <add>, %0, %cst [1] : vector<16x128xf32> to vector<16xf32>
    %2 = vector.shape_cast %1 : vector<16xf32> to vector<16x1xf32>
    %cst_1 = arith.constant 1.280000e+02 : f32
    %3 = vector.broadcast %cst_1 : f32 to vector<16x1xf32>
    %4 = arith.divf %2, %3 : vector<16x1xf32>
    %5 = vector.broadcast %4 : vector<16x1xf32> to vector<16x128xf32>
    %6 = arith.subf %0, %5 : vector<16x128xf32>
    %7 = arith.mulf %6, %6 : vector<16x128xf32>
    %cst_2 = arith.constant dense<0.000000e+00> : vector<16xf32>
    %8 = vector.multi_reduction <add>, %7, %cst_2 [1] : vector<16x128xf32> to vector<16xf32>
    %9 = vector.shape_cast %8 : vector<16xf32> to vector<16x1xf32>
    %cst_3 = arith.constant 1.280000e+02 : f32
    %10 = vector.broadcast %cst_3 : f32 to vector<16x1xf32>
    %11 = arith.divf %9, %10 : vector<16x1xf32>
    %12 = vector.broadcast %4 : vector<16x1xf32> to vector<16x128xf32>
    %13 = arith.subf %0, %12 : vector<16x128xf32>
    %cst_4 = arith.constant 9.99999974E-6 : f32
    %14 = vector.broadcast %cst_4 : f32 to vector<16x1xf32>
    %15 = arith.addf %11, %14 : vector<16x1xf32>
    %16 = math.rsqrt %15 : vector<16x1xf32>
    %17 = vector.broadcast %16 : vector<16x1xf32> to vector<16x128xf32>
    %18 = arith.mulf %13, %17 : vector<16x128xf32>
    %c0_5 = arith.constant 0 : index
    %c0_6 = arith.constant 0 : index
    %19 = vector.load %arg2[%c0_5, %c0_6] : memref<1x128xf32, #tpu.memory_space<vmem>>, vector<1x128xf32>
    %20 = vector.broadcast %19 : vector<1x128xf32> to vector<16x128xf32>
    %21 = arith.mulf %18, %20 : vector<16x128xf32>
    %c0_7 = arith.constant 0 : index
    %c0_8 = arith.constant 0 : index
    %22 = vector.load %arg3[%c0_7, %c0_8] : memref<1x128xf32, #tpu.memory_space<vmem>>, vector<1x128xf32>
    %23 = vector.broadcast %22 : vector<1x128xf32> to vector<16x128xf32>
    %24 = arith.addf %21, %23 : vector<16x128xf32>
    %c0_9 = arith.constant 0 : index
    %c0_10 = arith.constant 0 : index
    %25 = vector.load %arg4[%c0_9, %c0_10] : memref<16x128xf32, #tpu.memory_space<vmem>>, vector<16x128xf32>
    tpu.vector_store %arg4[%c0_9, %c0_10], %24 {strides = array<i32>} : memref<16x128xf32, #tpu.memory_space<vmem>>, vector<16x128xf32>,
    return
  }
  func.func @transform_0(%arg0: i32) -> (i32, i32) {
    %c0_i32 = arith.constant 0 : i32
    %c0_i32_0 = arith.constant 0 : i32
    return %arg0, %c0_i32 : i32, i32
  }
  func.func @transform_1(%arg0: i32) -> (i32, i32) {
    %c0_i32 = arith.constant 0 : i32
    %c0_i32_0 = arith.constant 0 : i32
    %c0_i32_1 = arith.constant 0 : i32
    return %c0_i32, %c0_i32_0 : i32, i32
  }
  func.func @transform_2(%arg0: i32) -> (i32, i32) {
    %c0_i32 = arith.constant 0 : i32
    %c0_i32_0 = arith.constant 0 : i32
    %c0_i32_1 = arith.constant 0 : i32
    return %c0_i32, %c0_i32_0 : i32, i32
  }
  func.func @transform_3(%arg0: i32) -> (i32, i32) {
    %c0_i32 = arith.constant 0 : i32
    %c0_i32_0 = arith.constant 0 : i32
    return %arg0, %c0_i32 : i32, i32
  }
}

</mosaic_0001>

<bundles_post_ra>
// kernel: vit_forward.6
= control target key start
LH: loop header
LB: loop body
LE: loop exit
PB: predicated region body
PF: predicated region fallthrough
CT: control target
= control target key end

     0   :  { %s522_s12 = smov 0   ;;  %s594_s0 = inlined_call_operand.vmem [shape: f32[32,256], index: 0, kind: input, shape index: {}]   ;;  %s595_s1 = inlined_call_operand.vmem [shape: bf16[256,128], index: 1, kind: input, shape index: {}]   ;;  %s596_s2 = inlined_call_operand.vmem [shape: f32[1,128], index: 2, kind: input, shape index: {}]   ;;  %s597_s3 = inlined_call_operand.vmem [shape: f32[32,128], index: 3, kind: output, shape index: {}]  }
   0x1 LB: > { %s418_s13 = sadd.s32 4294967295, %s500_s12   ;;  %p422_p0 = scmp.ge.s32.totalorder %s500_s12, 1  ;;  %s500_s12 = sphi %s522_s12, %s13_s12  }
   0x2   : > { %p139_p1 = scmp.lt.s32.totalorder %s500_s12, 3 }
   0x4   : > { %p140_p2 = pnand %p422_p0, %p139_p1 }
   0x5   : > { %s423_s16 = sshll.u32 (!%p140_p2), %s418_s13, 1 }
   0x6   : > { %143 = sbr.rel (%p140_p2) target bundleno = 248 (0xf8), region = 32  ;;  %p165_p3 = scmp.lt.s32.totalorder (!%p140_p2), %s423_s16, 3 }
   0xb   : > { %v478_v0 = vld [vmem:[%s595_s1 + $0x78] sm:$0xff]   ;;  %v480_v2 = vld [vmem:[%s595_s1 + $0x70] sm:$0xff]   ;;  %v482_v4 = vld [vmem:[%s595_s1 + $0x68] sm:$0xff]   ;;  %s599_s16 = smov (!%p165_p3, %s423_s16), 3 }
   0xc   : > { %v479_v1 = vld [vmem:[%s595_s1 + $0x38] sm:$0xff]   ;;  %448 = vmatprep.subr.bf16.mxu0 %v478_v0  ;;  %v481_v3 = vld [vmem:[%s595_s1 + $0x30] sm:$0xff]   ;;  %v483_v5 = vld [vmem:[%s595_s1 + $0x28] sm:$0xff]   ;;  %s447_s29 = sshll.u32 %s599_s16, 4  ;;  %s427_s26 = sshll.u32 %s599_s16, 3 }
   0xd   : > { %449 = vmatpush3.bf16.msra.mxu0 %v479_v1  ;;  %v484_v6 = vld [vmem:[%s595_s1 + $0x60] sm:$0xff]   ;;  %v486_v8 = vld [vmem:[%s595_s1 + $0x58] sm:$0xff]   ;;  %s169_s9 = scalar_lea.vmem %s594_s0, %s447_s29  ;;  %v488_v10 = vld [vmem:[%s595_s1 + $0x50] sm:$0xff]   ;;  %s175_s4 = scalar_lea.vmem %s597_s3, %s427_s26 }
   0xe   : > { %450 = vmatprep.subr.bf16.mxu0 %v480_v2  ;;  %v485_v7 = vld [vmem:[%s595_s1 + $0x20] sm:$0xff]   ;;  %v487_v9 = vld [vmem:[%s595_s1 + $0x18] sm:$0xff]   ;;  %v179_v11 = vld [vmem:[%s169_s9 + $0x8] sm:$0xff] }
   0xf   : > { %v181_v12 = vld [vmem:[%s169_s9 + $0x18] sm:$0xff]  ;;  %v489_v14 = vld [vmem:[%s595_s1 + $0x10] sm:$0xff]   ;;  %v490_v15 = vld [vmem:[%s595_s1 + $0x48] sm:$0xff]  }
  0x10   : > { %v183_v13 = vpack.c.bf16 %v181_v12, %v179_v11  ;;  %v491_v16 = vld [vmem:[%s595_s1 + $0x8] sm:$0xff]   ;;  %v492_v17 = vld [vmem:[%s595_s1 + $0x40] sm:$0xff]   ;;  %v180_v20 = vld [vmem:[%s169_s9 + $0x10] sm:$0xff] }
  0x11   : > { %451 = vmatpush3.bf16.msra.mxu0 %v481_v3  ;;  %v493_v18 = vld [vmem:[%s595_s1] sm:$0xff]  }
  0x12   : > { %452 = vmatprep.subr.bf16.mxu0 %v482_v4  ;;  %351 = vmatprep.mubr.bf16.mxu0 %v183_v13  ;;  %v178_v19 = vld [vmem:[%s169_s9] sm:$0xff] }
  0x13   : > { %v182_v21 = vpack.c.bf16 %v180_v20, %v178_v19  ;;  %v428_v23 = vld [vmem:[%s596_s2] ss:$0 sm:$0xff] }
  0x15   : > { %453 = vmatpush3.bf16.msra.mxu0 %v483_v5 }
  0x16   : > { %454 = vmatprep.subr.bf16.mxu0 %v484_v6 }
  0x19   : > { %455 = vmatpush3.bf16.msra.mxu0 %v485_v7 }
  0x1a   : > { %456 = vmatprep.subr.bf16.mxu0 %v486_v8 }
  0x1d   : > { %457 = vmatpush3.bf16.msra.mxu0 %v487_v9 }
  0x1e   : > { %458 = vmatprep.subr.bf16.mxu0 %v488_v10 }
  0x21   : > { %459 = vmatpush3.bf16.msra.mxu0 %v489_v14 }
  0x22   : > { %460 = vmatprep.subr.bf16.mxu0 %v490_v15 }
  0x25   : > { %461 = vmatpush3.bf16.msra.mxu0 %v491_v16 }
  0x26   : > { %462 = vmatprep.subr.bf16.mxu0 %v492_v17 }
  0x29   : > { %463 = vmatpush3.bf16.msra.mxu0 %v493_v18 }
  0x2c   : > { %352 = vmatmul.mubr.bf16.vlgmr.msra.gmra.mxu0 %v182_v21 }
  0xec   : > { %v464_v22 = vpop.f32.mrf.mxu0 }
  0xee   : > { %v465_v24 = vpop.f32.mrf.mxu0 }
  0xef   : > { %v466_v25 = vadd.f32 %v465_v24, %v464_v22 }
  0xf0   : > { %v467_v26 = vpop.f32.mrf.mxu0 }
  0xf1   : > { %v354_v27 = vadd.f32 %v466_v25, %v428_v23 }
  0xf2   : > { %v468_v28 = vpop.f32.mrf.mxu0 }
  0xf3   : > { %360 = vst [vmem:[%s175_s4] sm:$0xff] %v354_v27  ;;  %v469_v29 = vadd.f32 %v468_v28, %v467_v26 }
  0xf5   : > { %v357_v30 = vadd.f32 %v469_v29, %v428_v23 }
  0xf7   : > { %361 = vst [vmem:[%s175_s4 + $0x8] sm:$0xff] %v357_v30 }
  0xf8 PF: > { %s13_s12 = sadd.s32 1, %s500_s12  }
  0xf9   : > { %p10_p4 = scmp.ge.s32.totalorder %s13_s12, 4  }
  0xfb   :  { %12 = sbr.rel (!%p10_p4) target bundleno = 1 (0x1), region = 62 }

// kernel: vit_forward.8
= control target key start
LH: loop header
LB: loop body
LE: loop exit
PB: predicated region body
PF: predicated region fallthrough
CT: control target
= control target key end

     0   :  { %s1356_s24 = smov 0   ;;  %s1604_s0 = inlined_call_operand.vmem [shape: f32[32,128], index: 0, kind: input, shape index: {}, may-alias: {0,7}]   ;;  %s1605_s1 = inlined_call_operand.vmem [shape: f32[1,128], index: 1, kind: input, shape index: {}]   ;;  %s1606_s2 = inlined_call_operand.vmem [shape: f32[1,128], index: 2, kind: input, shape index: {}]   ;;  %s1607_s3 = inlined_call_operand.vmem [shape: bf16[128,512], index: 3, kind: input, shape index: {}]   ;;  %s1608_s4 = inlined_call_operand.vmem [shape: f32[1,512], index: 4, kind: input, shape index: {}]   ;;  %s1609_s5 = inlined_call_operand.vmem [shape: bf16[512,128], index: 5, kind: input, shape index: {}]   ;;  %s1610_s6 = inlined_call_operand.vmem [shape: f32[1,128], index: 6, kind: input, shape index: {}]   ;;  %s1611_s7 = inlined_call_operand.vmem [shape: f32[32,128], index: 7, kind: output, shape index: {}, may-alias: {0,7}]  }
   0x1 LB: > { %s1076_s25 = sadd.s32 4294967295, %s1313_s24   ;;  %p1080_p0 = scmp.ge.s32.totalorder %s1313_s24, 1  ;;  %s1313_s24 = sphi %s1356_s24, %s17_s24  }
   0x2   : > { %p238_p1 = scmp.lt.s32.totalorder %s1313_s24, 3 }
   0x4   : > { %p239_p2 = pnand %p1080_p0, %p238_p1 }
   0x5   : > { %s1081_s26 = sshll.u32 (!%p239_p2), %s1076_s25, 1 }
   0x6   : > { %242 = sbr.rel (%p239_p2) target bundleno = 759 (0x2f7), region = 48  ;;  %p271_p3 = scmp.lt.s32.totalorder (!%p239_p2), %s1081_s26, 3 }
   0xb   : > { %s1613_s26 = smov (!%p271_p3, %s1081_s26), 3  ;;  %v1207_v2 = vld [vmem:[%s1607_s3 + $0xe4] ss:$16 sps:$4 sm:$0xff]   ;;  %v1209_v3 = vld [vmem:[%s1607_s3 + $0xec] ss:$16 sps:$4 sm:$0xff]   ;;  %v1315_v36 = vmov 0  }
   0xc   : > { %s1082_s27 = sshll.u32 %s1613_s26, 3  ;;  %v1211_v4 = vld [vmem:[%s1607_s3 + $0xe0] ss:$16 sps:$4 sm:$0xff]   ;;  %v1212_v5 = vld [vmem:[%s1607_s3 + $0xe8] ss:$16 sps:$4 sm:$0xff]   ;;  %541 = vmatprep.subr.bf16.mxu0 %v1207_v2  ;;  %584 = vmatprep.subr.bf16.mxu1 %v1209_v3 }
   0xd   : > { %s274_s30 = scalar_lea.vmem %s1604_s0, %s1082_s27  ;;  %542 = vmatpush1.bf16.msra.mxu0 %v1211_v4  ;;  %585 = vmatpush1.bf16.msra.mxu1 %v1212_v5  ;;  %v1213_v14 = vld [vmem:[%s1607_s3 + $0xc4] ss:$16 sps:$4 sm:$0xff]   ;;  %v1215_v15 = vld [vmem:[%s1607_s3 + $0xcc] ss:$16 sps:$4 sm:$0xff]   ;;  %v1217_v16 = vld [vmem:[%s1607_s3 + $0xc0] ss:$16 sps:$4 sm:$0xff]   ;;  %s280_s29 = scalar_lea.vmem %s1611_s7, %s1082_s27 }
   0xe   : > { %v1372_v0 = vld [vmem:[%s274_s30] sm:$0xff]  ;;  %v1374_v1 = vld [vmem:[%s274_s30 + $0x8] sm:$0xff]  ;;  %543 = vmatprep.subr.bf16.mxu0 %v1213_v14  ;;  %586 = vmatprep.subr.bf16.mxu1 %v1215_v15  ;;  %v1255_v60 = vld [vmem:[%s1609_s5 + $0x78] sm:$0xff]  }
   0xf   : > { %285 = vadd.xlane.f32.xlu0 %v1372_v0  ;;  %v1218_v17 = vld [vmem:[%s1607_s3 + $0xc8] ss:$16 sps:$4 sm:$0xff]   ;;  %v1219_v18 = vld [vmem:[%s1607_s3 + $0xa4] ss:$16 sps:$4 sm:$0xff]   ;;  %v1221_v19 = vld [vmem:[%s1607_s3 + $0xac] ss:$16 sps:$4 sm:$0xff]   ;;  %573 = vmatprep.mubr.bf16.mxu0 %v1315_v36 }
  0x10   : > { %v1223_v20 = vld [vmem:[%s1607_s3 + $0xa0] ss:$16 sps:$4 sm:$0xff]   ;;  %v1224_v21 = vld [vmem:[%s1607_s3 + $0xa8] ss:$16 sps:$4 sm:$0xff]   ;;  %v1225_v22 = vld [vmem:[%s1607_s3 + $0x84] ss:$16 sps:$4 sm:$0xff]   ;;  %616 = vmatprep.mubr.bf16.mxu1 %v1315_v36 }
  0x11   : > { %544 = vmatpush1.bf16.msra.mxu0 %v1217_v16  ;;  %587 = vmatpush1.bf16.msra.mxu1 %v1218_v17  ;;  %v1227_v23 = vld [vmem:[%s1607_s3 + $0x8c] ss:$16 sps:$4 sm:$0xff]   ;;  %v1229_v24 = vld [vmem:[%s1607_s3 + $0x80] ss:$16 sps:$4 sm:$0xff]   ;;  %v1230_v25 = vld [vmem:[%s1607_s3 + $0x88] ss:$16 sps:$4 sm:$0xff]  }
  0x12   : > { %545 = vmatprep.subr.bf16.mxu0 %v1219_v18  ;;  %588 = vmatprep.subr.bf16.mxu1 %v1221_v19  ;;  %v1231_v26 = vld [vmem:[%s1607_s3 + $0x64] ss:$16 sps:$4 sm:$0xff]   ;;  %v1233_v27 = vld [vmem:[%s1607_s3 + $0x6c] ss:$16 sps:$4 sm:$0xff]   ;;  %v1235_v28 = vld [vmem:[%s1607_s3 + $0x60] ss:$16 sps:$4 sm:$0xff]  }
  0x13   : > { %287 = vadd.xlane.f32.xlu0 %v1374_v1  ;;  %v1236_v29 = vld [vmem:[%s1607_s3 + $0x68] ss:$16 sps:$4 sm:$0xff]   ;;  %v1237_v30 = vld [vmem:[%s1607_s3 + $0x44] ss:$16 sps:$4 sm:$0xff]   ;;  %v1239_v31 = vld [vmem:[%s1607_s3 + $0x4c] ss:$16 sps:$4 sm:$0xff]  }
  0x14   : > { %v1241_v32 = vld [vmem:[%s1607_s3 + $0x40] ss:$16 sps:$4 sm:$0xff]   ;;  %v1242_v33 = vld [vmem:[%s1607_s3 + $0x48] ss:$16 sps:$4 sm:$0xff]   ;;  %v1243_v34 = vld [vmem:[%s1607_s3 + $0x24] ss:$16 sps:$4 sm:$0xff]  }
  0x15   : > { %546 = vmatpush1.bf16.msra.mxu0 %v1223_v20  ;;  %589 = vmatpush1.bf16.msra.mxu1 %v1224_v21  ;;  %v1245_v35 = vld [vmem:[%s1607_s3 + $0x2c] ss:$16 sps:$4 sm:$0xff]   ;;  %v1247_v37 = vld [vmem:[%s1607_s3 + $0x20] ss:$16 sps:$4 sm:$0xff]   ;;  %v1248_v38 = vld [vmem:[%s1607_s3 + $0x28] ss:$16 sps:$4 sm:$0xff]  }
  0x16   : > { %547 = vmatprep.subr.bf16.mxu0 %v1225_v22  ;;  %590 = vmatprep.subr.bf16.mxu1 %v1227_v23  ;;  %v1249_v39 = vld [vmem:[%s1607_s3 + $0x4] ss:$16 sps:$4 sm:$0xff]   ;;  %v1251_v40 = vld [vmem:[%s1607_s3 + $0xc] ss:$16 sps:$4 sm:$0xff]   ;;  %v1253_v41 = vld [vmem:[%s1607_s3] ss:$16 sps:$4 sm:$0xff]  }
  0x17   : > { %v1254_v42 = vld [vmem:[%s1607_s3 + $0x8] ss:$16 sps:$4 sm:$0xff]   ;;  %v1085_v51 = vld [vmem:[%s1605_s1] ss:$0 sm:$0xff]  ;;  %v1259_v2 = vld [vmem:[%s1609_s5 + $0x70] sm:$0xff]  }
  0x18   : > { %v1086_v55 = vld [vmem:[%s1606_s2] ss:$0 sm:$0xff]  ;;  %v1256_v61 = vld [vmem:[%s1609_s5 + $0xf8] sm:$0xff]   ;;  %v1260_v3 = vld [vmem:[%s1609_s5 + $0xf0] sm:$0xff]  }
  0x19   : > { %548 = vmatpush1.bf16.msra.mxu0 %v1229_v24  ;;  %591 = vmatpush1.bf16.msra.mxu1 %v1230_v25  ;;  %v1257_v62 = vld [vmem:[%s1609_s5 + $0x38] sm:$0xff]   ;;  %v1261_v4 = vld [vmem:[%s1609_s5 + $0x30] sm:$0xff]   ;;  %v1279_v22 = vld [vmem:[%s1609_s5 + $0x48] sm:$0xff]  }
  0x1a   : > { %549 = vmatprep.subr.bf16.mxu0 %v1231_v26  ;;  %592 = vmatprep.subr.bf16.mxu1 %v1233_v27  ;;  %v1258_v63 = vld [vmem:[%s1609_s5 + $0xb8] sm:$0xff]   ;;  %v1262_v5 = vld [vmem:[%s1609_s5 + $0xb0] sm:$0xff]   ;;  %v1280_v23 = vld [vmem:[%s1609_s5 + $0xc8] sm:$0xff]  }
  0x1b   : > { %v1271_v14 = vld [vmem:[%s1609_s5 + $0x58] sm:$0xff]   ;;  %v1275_v18 = vld [vmem:[%s1609_s5 + $0x50] sm:$0xff]   ;;  %v1281_v24 = vld [vmem:[%s1609_s5 + $0x8] sm:$0xff]  }
  0x1c   : > { %v1272_v15 = vld [vmem:[%s1609_s5 + $0xd8] sm:$0xff]   ;;  %v1276_v19 = vld [vmem:[%s1609_s5 + $0xd0] sm:$0xff]   ;;  %v1282_v25 = vld [vmem:[%s1609_s5 + $0x88] sm:$0xff]  }
  0x1d   : > { %550 = vmatpush1.bf16.msra.mxu0 %v1235_v28  ;;  %593 = vmatpush1.bf16.msra.mxu1 %v1236_v29  ;;  %v1273_v16 = vld [vmem:[%s1609_s5 + $0x18] sm:$0xff]   ;;  %v1277_v20 = vld [vmem:[%s1609_s5 + $0x10] sm:$0xff]   ;;  %v1283_v26 = vld [vmem:[%s1609_s5 + $0x40] sm:$0xff]  }
  0x1e   : > { %551 = vmatprep.subr.bf16.mxu0 %v1237_v30  ;;  %594 = vmatprep.subr.bf16.mxu1 %v1239_v31  ;;  %v1274_v17 = vld [vmem:[%s1609_s5 + $0x98] sm:$0xff]   ;;  %v1278_v21 = vld [vmem:[%s1609_s5 + $0x90] sm:$0xff]   ;;  %v1284_v27 = vld [vmem:[%s1609_s5 + $0xc0] sm:$0xff]   ;;  %v361_v30 = vlaneseq }
  0x1f   : > { %v1285_v28 = vld [vmem:[%s1609_s5] sm:$0xff]  }
  0x20   : > { %v1286_v29 = vld [vmem:[%s1609_s5 + $0x80] sm:$0xff]   ;;  %v362_v31 = vshrl.u32 %v361_v30, 7 }
  0x21   : > { %552 = vmatpush1.bf16.msra.mxu0 %v1241_v32  ;;  %595 = vmatpush1.bf16.msra.mxu1 %v1242_v33 }
  0x22   : > { %553 = vmatprep.subr.bf16.mxu0 %v1243_v34  ;;  %596 = vmatprep.subr.bf16.mxu1 %v1245_v35  ;;  %v363_v32 = vsub.s32 0, %v362_v31  ;;  %v371_v33 = vsub.s32 2, %v362_v31  ;;  %v359_v34 = vld [vmem:[%s1608_s4] sm:$0xf]  ;;  %v367_v35 = vsub.s32 1, %v362_v31  ;;  %v375_v36 = vsub.s32 3, %v362_v31 }
  0x25   : > { %554 = vmatpush1.bf16.msra.mxu0 %v1247_v37  ;;  %597 = vmatpush1.bf16.msra.mxu1 %v1248_v38  ;;  %v364_v37 = vrot.slane %v359_v34, %v363_v32  ;;  %v372_v38 = vrot.slane %v359_v34, %v371_v33 }
  0x26   : > { %555 = vmatprep.subr.bf16.mxu0 %v1249_v39  ;;  %598 = vmatprep.subr.bf16.mxu1 %v1251_v40 }
  0x29   : > { %556 = vmatpush1.bf16.msra.mxu0 %v1253_v41  ;;  %599 = vmatpush1.bf16.msra.mxu1 %v1254_v42  ;;  %v368_v41 = vrot.slane %v359_v34, %v367_v35  ;;  %v376_v42 = vrot.slane %v359_v34, %v375_v36 }
  0x2a   : > { %1154 = vmatprep.subr.bf16.mxu0 %v1255_v60  ;;  %1176 = vmatprep.subr.bf16.mxu1 %v1256_v61 }
  0x98   : > { %v286_v6 = vpop.xlane.xlu0 %285 }
  0x99   : > { %v290_v7 = vmul.f32 0.0078125, %v286_v6  ;;  %v1263_v6 = vld [vmem:[%s1609_s5 + $0x68] sm:$0xff]  }
  0x9b   : > { %v1391_v8 = vsub.f32 %v1372_v0, %v290_v7  ;;  %v1264_v7 = vld [vmem:[%s1609_s5 + $0xe8] sm:$0xff]  }
  0x9c   : > { %v288_v9 = vpop.xlane.xlu0 %287 }
  0x9d   : > { %v291_v10 = vmul.f32 0.0078125, %v288_v9  ;;  %v294_v11 = vmul.f32 %v1391_v8, %v1391_v8  ;;  %v1266_v9 = vld [vmem:[%s1609_s5 + $0xa8] sm:$0xff]  }
  0x9f   : > { %v1396_v12 = vsub.f32 %v1374_v1, %v291_v10  ;;  %296 = vadd.xlane.f32.xlu1 %v294_v11  ;;  %v1267_v10 = vld [vmem:[%s1609_s5 + $0x60] sm:$0xff]  }
  0xa0   : > { %v1268_v11 = vld [vmem:[%s1609_s5 + $0xe0] sm:$0xff]  }
  0xa1   : > { %v295_v13 = vmul.f32 %v1396_v12, %v1396_v12 }
  0xa3   : > { %298 = vadd.xlane.f32.xlu1 %v295_v13  ;;  %v1270_v13 = vld [vmem:[%s1609_s5 + $0xa0] sm:$0xff]  }
 0x128   : > { %v297_v43 = vpop.xlane.xlu1 %296 }
 0x129   : > { %v300_v44 = vmul.f32 0.0078125, %v297_v43 }
 0x12b   : > { %v302_v45 = vadd.f32 1e-05, %v300_v44 }
 0x12c   : > { %v299_v46 = vpop.xlane.xlu1 %298 }
 0x12d   : > { %1287 = vrsqrt.f32 %v302_v45  ;;  %v301_v47 = vmul.f32 0.0078125, %v299_v46 }
 0x12f   : > { %v303_v48 = vadd.f32 1e-05, %v301_v47 }
 0x131   : > { %1289 = vrsqrt.f32 %v303_v48 }
 0x13a   : > { %v1288_v49 = vpop.eup %1287 }
 0x13b   : > { %v306_v50 = vmul.f32 %v1288_v49, %v1391_v8  ;;  %v1265_v8 = vld [vmem:[%s1609_s5 + $0x28] sm:$0xff]  }
 0x13d   : > { %v315_v54 = vmul.f32 %v1085_v51, %v306_v50 }
 0x13e   : > { %v1290_v52 = vpop.eup %1289 }
 0x13f   : > { %v307_v53 = vmul.f32 %v1290_v52, %v1396_v12  ;;  %v324_v57 = vadd.f32 %v1086_v55, %v315_v54  ;;  %v1269_v12 = vld [vmem:[%s1609_s5 + $0x20] sm:$0xff]  }
 0x141   : > { %v316_v56 = vmul.f32 %v1085_v51, %v307_v53 }
 0x143   : > { %v325_v58 = vadd.f32 %v1086_v55, %v316_v56 }
 0x145   : > { %v326_v59 = vpack.c.bf16 %v325_v58, %v324_v57 }
 0x147   : > { %574 = vmatmul.mubr.bf16.vlgmr.msra.gmra.mxu0 %v326_v59  ;;  %617 = vmatmul.mubr.bf16.vlgmr.msra.gmra.mxu1 %v326_v59 }
 0x148   : > { %1155 = vmatpush3.bf16.msra.mxu0 %v1257_v62  ;;  %1177 = vmatpush3.bf16.msra.mxu1 %v1258_v63 }
 0x149   : > { %1156 = vmatprep.subr.bf16.mxu0 %v1259_v2  ;;  %1178 = vmatprep.subr.bf16.mxu1 %v1260_v3 }
 0x14c   : > { %1157 = vmatpush3.bf16.msra.mxu0 %v1261_v4  ;;  %1179 = vmatpush3.bf16.msra.mxu1 %v1262_v5 }
 0x14d   : > { %1158 = vmatprep.subr.bf16.mxu0 %v1263_v6  ;;  %1180 = vmatprep.subr.bf16.mxu1 %v1264_v7 }
 0x150   : > { %1159 = vmatpush3.bf16.msra.mxu0 %v1265_v8  ;;  %1181 = vmatpush3.bf16.msra.mxu1 %v1266_v9 }
 0x151   : > { %1160 = vmatprep.subr.bf16.mxu0 %v1267_v10  ;;  %1182 = vmatprep.subr.bf16.mxu1 %v1268_v11 }
 0x154   : > { %1161 = vmatpush3.bf16.msra.mxu0 %v1269_v12  ;;  %1183 = vmatpush3.bf16.msra.mxu1 %v1270_v13 }
 0x155   : > { %1162 = vmatprep.subr.bf16.mxu0 %v1271_v14  ;;  %1184 = vmatprep.subr.bf16.mxu1 %v1272_v15 }
 0x158   : > { %1163 = vmatpush3.bf16.msra.mxu0 %v1273_v16  ;;  %1185 = vmatpush3.bf16.msra.mxu1 %v1274_v17 }
 0x159   : > { %1164 = vmatprep.subr.bf16.mxu0 %v1275_v18  ;;  %1186 = vmatprep.subr.bf16.mxu1 %v1276_v19 }
 0x15c   : > { %1165 = vmatpush3.bf16.msra.mxu0 %v1277_v20  ;;  %1187 = vmatpush3.bf16.msra.mxu1 %v1278_v21 }
 0x15d   : > { %1166 = vmatprep.subr.bf16.mxu0 %v1279_v22  ;;  %1188 = vmatprep.subr.bf16.mxu1 %v1280_v23 }
 0x160   : > { %1167 = vmatpush3.bf16.msra.mxu0 %v1281_v24  ;;  %1189 = vmatpush3.bf16.msra.mxu1 %v1282_v25 }
 0x161   : > { %1168 = vmatprep.subr.bf16.mxu0 %v1283_v26  ;;  %1190 = vmatprep.subr.bf16.mxu1 %v1284_v27 }
 0x164   : > { %1169 = vmatpush3.bf16.msra.mxu0 %v1285_v28  ;;  %1191 = vmatpush3.bf16.msra.mxu1 %v1286_v29 }
 0x207   : > { %v575_v39 = vpop.f32.mrf.mxu0  ;;  %v618_v40 = vpop.f32.mrf.mxu1 }
 0x208   : > { %v576_v43 = vadd.f32 %v575_v39, %v364_v37  ;;  %v619_v44 = vadd.f32 %v618_v40, %v372_v38 }
 0x209   : > { %v577_v45 = vpop.f32.mrf.mxu0  ;;  %v620_v46 = vpop.f32.mrf.mxu1 }
 0x20a   : > { %v635_v47 = vmul.f32 0.70710677, %v576_v43  ;;  %v637_v48 = vmul.f32 0.70710677, %v619_v44  ;;  %v578_v49 = vadd.f32 %v577_v45, %v368_v41  ;;  %v621_v50 = vadd.f32 %v620_v46, %v376_v42 }
 0x20b   : > { %v579_v51 = vpop.f32.mrf.mxu0  ;;  %v622_v52 = vpop.f32.mrf.mxu1  ;;  %v627_v9 = vmul.f32 0.5, %v576_v43  ;;  %v629_v27 = vmul.f32 0.5, %v619_v44 }
 0x20c   : > { %v580_v53 = vadd.f32 %v579_v51, %v364_v37  ;;  %v623_v54 = vadd.f32 %v622_v52, %v372_v38  ;;  %1291 = verf.f32 %v635_v47  ;;  %v636_v55 = vmul.f32 0.70710677, %v578_v49 }
 0x20d   : > { %v581_v56 = vpop.f32.mrf.mxu0  ;;  %v624_v57 = vpop.f32.mrf.mxu1  ;;  %1293 = verf.f32 %v637_v48  ;;  %v638_v58 = vmul.f32 0.70710677, %v621_v50  ;;  %v628_v10 = vmul.f32 0.5, %v578_v49  ;;  %v630_v23 = vmul.f32 0.5, %v621_v50 }
 0x20e   : > { %v639_v59 = vmul.f32 0.70710677, %v580_v53  ;;  %1295 = verf.f32 %v636_v55  ;;  %v641_v60 = vmul.f32 0.70710677, %v623_v54  ;;  %v582_v61 = vadd.f32 %v581_v56, %v368_v41  ;;  %v1119_v41 = vld [vmem:[%s1610_s6] ss:$0 sm:$0xff] }
 0x20f   : > { %v625_v62 = vadd.f32 %v624_v57, %v376_v42  ;;  %1297 = verf.f32 %v638_v58  ;;  %v631_v16 = vmul.f32 0.5, %v580_v53  ;;  %v633_v20 = vmul.f32 0.5, %v623_v54 }
 0x210   : > { %1299 = verf.f32 %v639_v59  ;;  %v640_v63 = vmul.f32 0.70710677, %v582_v61  ;;  %v632_v21 = vmul.f32 0.5, %v582_v61 }
 0x211   : > { %1301 = verf.f32 %v641_v60  ;;  %v642_v2 = vmul.f32 0.70710677, %v625_v62  ;;  %v634_v25 = vmul.f32 0.5, %v625_v62 }
 0x212   : > { %1303 = verf.f32 %v640_v63 }
 0x213   : > { %1305 = verf.f32 %v642_v2 }
 0x219   : > { %v1292_v3 = vpop.eup %1291 }
 0x21a   : > { %v1294_v4 = vpop.eup %1293  ;;  %v651_v14 = vadd.f32 1.0, %v1292_v3 }
 0x21b   : > { %v1296_v5 = vpop.eup %1295  ;;  %v653_v19 = vadd.f32 1.0, %v1294_v4 }
 0x21c   : > { %v1298_v6 = vpop.eup %1297  ;;  %v652_v11 = vadd.f32 1.0, %v1296_v5  ;;  %v659_v31 = vmul.f32 %v651_v14, %v627_v9 }
 0x21d   : > { %v1300_v7 = vpop.eup %1299  ;;  %v654_v15 = vadd.f32 1.0, %v1298_v6  ;;  %v661_v34 = vmul.f32 %v653_v19, %v629_v27 }
 0x21e   : > { %v1302_v8 = vpop.eup %1301  ;;  %v655_v12 = vadd.f32 1.0, %v1300_v7  ;;  %v660_v28 = vmul.f32 %v652_v11, %v628_v10 }
 0x21f   : > { %v1304_v13 = vpop.eup %1303  ;;  %v657_v17 = vadd.f32 1.0, %v1302_v8  ;;  %v662_v32 = vmul.f32 %v654_v15, %v630_v23 }
 0x220   : > { %v1306_v18 = vpop.eup %1305  ;;  %v656_v22 = vadd.f32 1.0, %v1304_v13  ;;  %v663_v24 = vmul.f32 %v655_v12, %v631_v16 }
 0x221   : > { %v658_v26 = vadd.f32 1.0, %v1306_v18  ;;  %v665_v29 = vmul.f32 %v657_v17, %v633_v20 }
 0x222   : > { %v664_v30 = vmul.f32 %v656_v22, %v632_v21  ;;  %v667_v36 = vpack.c.bf16 %v663_v24, %v659_v31 }
 0x223   : > { %v666_v33 = vmul.f32 %v658_v26, %v634_v25  ;;  %v669_v38 = vpack.c.bf16 %v665_v29, %v661_v34 }
 0x224   : > { %v668_v35 = vpack.c.bf16 %v664_v30, %v660_v28 }
 0x225   : > { %v670_v37 = vpack.c.bf16 %v666_v33, %v662_v32 }
 0x226   : > { %966 = vmatprep.mubr.bf16.mxu0 %v668_v35 }
 0x227   : > { %1007 = vmatprep.mubr.bf16.mxu1 %v670_v37  ;;  %967 = vmatmul.mubr.bf16.vlgmr.msra.gmra.mxu0 %v667_v36 }
 0x228   : > { %1008 = vmatmul.mubr.bf16.vlgmr.msra.gmra.mxu1 %v669_v38 }
 0x2e7   : > { %v1170_v39 = vpop.f32.mrf.mxu0 }
 0x2e8   : > { %v1192_v40 = vpop.f32.mrf.mxu1 }
 0x2e9   : > { %v1171_v42 = vpop.f32.mrf.mxu0 }
 0x2ea   : > { %v1172_v43 = vadd.f32 %v1171_v42, %v1170_v39  ;;  %v1193_v44 = vpop.f32.mrf.mxu1 }
 0x2eb   : > { %v1173_v45 = vpop.f32.mrf.mxu0  ;;  %v1194_v47 = vadd.f32 %v1193_v44, %v1192_v40 }
 0x2ec   : > { %v969_v46 = vadd.f32 %v1172_v43, %v1119_v41  ;;  %v1195_v48 = vpop.f32.mrf.mxu1 }
 0x2ed   : > { %v1174_v49 = vpop.f32.mrf.mxu0 }
 0x2ee   : > { %v1010_v50 = vadd.f32 %v1194_v47, %v969_v46  ;;  %v1175_v51 = vadd.f32 %v1174_v49, %v1173_v45  ;;  %v1196_v52 = vpop.f32.mrf.mxu1 }
 0x2ef   : > { %v1197_v55 = vadd.f32 %v1196_v52, %v1195_v48 }
 0x2f0   : > { %v1016_v53 = vadd.f32 %v1010_v50, %v1372_v0  ;;  %v972_v54 = vadd.f32 %v1175_v51, %v1119_v41 }
 0x2f2   : > { %1018 = vst [vmem:[%s280_s29] sm:$0xff] %v1016_v53  ;;  %v1013_v56 = vadd.f32 %v1197_v55, %v972_v54 }
 0x2f4   : > { %v1017_v57 = vadd.f32 %v1013_v56, %v1374_v1 }
 0x2f6   : > { %1019 = vst [vmem:[%s280_s29 + $0x8] sm:$0xff] %v1017_v57 }
 0x2f7 PF: > { %s17_s24 = sadd.s32 1, %s1313_s24  }
 0x2f8   : > { %p14_p4 = scmp.ge.s32.totalorder %s17_s24, 4  }
 0x2fa   :  { %16 = sbr.rel (!%p14_p4) target bundleno = 1 (0x1), region = 78 }

// kernel: vit_forward.11
= control target key start
LH: loop header
LB: loop body
LE: loop exit
PB: predicated region body
PF: predicated region fallthrough
CT: control target
= control target key end

     0   :  { %8 = vsyncpa [#allocation3], 0  ;;  %s545_s0 = inlined_call_operand.vmem [shape: f32[32,128], index: 0, kind: input, shape index: {}]   ;;  %s546_s1 = inlined_call_operand.vmem [shape: f32[1,128], index: 1, kind: input, shape index: {}]   ;;  %s547_s2 = inlined_call_operand.vmem [shape: f32[1,128], index: 2, kind: input, shape index: {}]   ;;  %s548_s3 = inlined_call_operand.hbm [shape: f32[32,128], index: 3, kind: output, shape index: {}]  }
   0x1   :  { %10 = vsyncpa [#allocation3 + $0x1], 0  ;;  %s438_s12 = smov 0   ;;  %s440_s13 = smov 0  }
   0x2   :  { %s442_s14 = smov 0   ;;  %s444_s15 = smov 0  }
   0x3 LB: > { %s459_s16 = sadd.s32 4294967295, %s413_s15   ;;  %s293_s17 = sadd.s32 4294967294, %s413_s15   ;;  %s413_s15 = sphi %s444_s15, %s554_s15   ;;  %s409_s14 = sphi %s442_s14, %s553_s14   ;;  %s405_s13 = sphi %s440_s13, %s552_s13   ;;  %s401_s12 = sphi %s438_s12, %s551_s12  }
   0x4   : > { %s463_s18 = sadd.s32 1, %s413_s15   ;;  %s91_s19 = sadd.s32 1, %s409_s14 }
   0x5   : > { %s88_s20 = ssub.s32 %s413_s15, %s463_s18  ;;  %p101_p0 = scmp.ne.s32.totalorder %s409_s14, %s405_s13 }
   0x6   : > { %p89_p1 = scmp.eq.s32.totalorder %s88_s20, 0  ;;  %p102_p2 = scmp.eq.s32.totalorder %s459_s16, 1 }
   0x7   : > { %p107_p3 = scmp.ne.s32.totalorder %s405_s13, %s401_s12  ;;  %p108_p4 = scmp.eq.s32.totalorder %s293_s17, 1 }
   0x8   : > { %s474_s21 = scalar_select %p89_p1, %s409_s14, %s91_s19  }
   0x9   : > { %p476_p5 = por %p102_p2, %p101_p0  ;;  %p480_p6 = por %p108_p4, %p107_p3 }
   0xa   : > { %p296_p7 = scmp.ge.s32.totalorder %s413_s15, 1  ;;  %p141_p8 = scmp.lt.s32.totalorder %s413_s15, 3 }
   0xc   : > { %p142_p9 = pnand %p296_p7, %p141_p8 }
   0xd   : > { %s298_s24 = sshll.u32 (!%p142_p9), %s459_s16, 1  ;;  %s162_s29 = sand.u32 (!%p142_p9), 1, %s405_s13  }
   0xe   : > { %145 = sbr.rel (%p142_p9) target bundleno = 347 (0x15b), region = 32  ;;  %p166_p10 = scmp.lt.s32.totalorder (!%p142_p9), %s298_s24, 3 }
   0xf   : > { %s297_s5 = sshll.u32 (!%p142_p9), %s162_s29, 4  ;;  %s307_s8 = sshll.u32 (!%p142_p9), %s459_s16, 8 }
  0x10   : > { %s164_s9 = scalar_lea.vmem (!%p142_p9), [#allocation2], %s297_s5  ;;  %s501_s19 = scalar_lea.hbm (!%p142_p9), %s548_s3, %s307_s8 }
  0x11   : > { %s231_s10 = sshll.u32 (!%p142_p9), %s164_s9, 4  ;;  %s505_s20 = scalar_lea.sflag (!%p142_p9), [#allocation3], %s162_s29  ;;  %s503_s10 = int_to_ptr.vmem [resolvable:$true] %s231_s10 }
  0x12   : > { %s415_s16 = smov (!%p142_p9), [#allocation2]  }
  0x13   : > { %s556_s24 = smov (!%p166_p10, %s298_s24), 3  ;;  %v300_v17 = vld [vmem:[%s546_s1] ss:$0 sm:$0xff] }
  0x14   : > { %s299_s25 = sshll.u32 %s556_s24, 3  ;;  %v301_v19 = vld [vmem:[%s547_s2] ss:$0 sm:$0xff]  ;;  %s353_s24 = scalar_lea.vmem %s503_s10, 256 }
  0x15   : > { %s169_s28 = scalar_lea.vmem %s545_s0, %s299_s25  ;;  %p354_p11 = scmp.ne.s32.totalorder %s503_s10, %s353_s24 }
  0x16   : > { %v172_v0 = vld [vmem:[%s169_s28] sm:$0xff]  ;;  %v173_v1 = vld [vmem:[%s169_s28 + $0x8] sm:$0xff]  ;;  %s357_s25 = sshll.u32 %s415_s16, 4  ;;  %s358_s25 = int_to_ptr.vmem [resolvable:$false] %s357_s25 }
  0x17   : > { %174 = vadd.xlane.f32.xlu0 %v172_v0  ;;  %p355_p12 = pnand %p354_p11, %p476_p5  ;;  %s359_s26 = scalar_lea.vmem %s358_s25, 512 }
  0x18   : > { %p360_p0 = scmp.lt.s32.totalorder %s503_s10, %s358_s25  ;;  %p361_p1 = scmp.lt.s32.totalorder %s359_s26, %s353_s24 }
  0x19   : > { %p356_p13 = pneg %p355_p12 }
  0x1a   : > { %p362_p2 = por %p361_p1, %p360_p0 }
  0x1b   : > { %176 = vadd.xlane.f32.xlu0 %v173_v1 }
  0x1c   : > { %p363_p3 = pnand %p362_p2, %p356_p13 }
  0xa0   : > { %v175_v2 = vpop.xlane.xlu0 %174 }
  0xa1   : > { %v179_v3 = vmul.f32 0.0078125, %v175_v2 }
  0xa3   : > { %v181_v4 = vsub.f32 %v172_v0, %v179_v3 }
  0xa4   : > { %v177_v5 = vpop.xlane.xlu0 %176 }
  0xa5   : > { %v180_v6 = vmul.f32 0.0078125, %v177_v5  ;;  %v183_v7 = vmul.f32 %v181_v4, %v181_v4 }
  0xa7   : > { %v182_v8 = vsub.f32 %v173_v1, %v180_v6  ;;  %185 = vadd.xlane.f32.xlu1 %v183_v7 }
  0xa9   : > { %v184_v9 = vmul.f32 %v182_v8, %v182_v8 }
  0xab   : > { %187 = vadd.xlane.f32.xlu1 %v184_v9 }
 0x130   : > { %v186_v10 = vpop.xlane.xlu1 %185 }
 0x131   : > { %v189_v11 = vmul.f32 0.0078125, %v186_v10 }
 0x133   : > { %v191_v12 = vadd.f32 1e-05, %v189_v11 }
 0x134   : > { %v188_v13 = vpop.xlane.xlu1 %187 }
 0x135   : > { %349 = vrsqrt.f32 %v191_v12  ;;  %v190_v14 = vmul.f32 0.0078125, %v188_v13 }
 0x137   : > { %v192_v15 = vadd.f32 1e-05, %v190_v14 }
 0x139   : > { %351 = vrsqrt.f32 %v192_v15 }
 0x142   : > { %v350_v16 = vpop.eup %349 }
 0x143   : > { %v195_v18 = vmul.f32 %v350_v16, %v181_v4 }
 0x145   : > { %v204_v20 = vmul.f32 %v300_v17, %v195_v18 }
 0x146   : > { %v352_v21 = vpop.eup %351 }
 0x147   : > { %v196_v22 = vmul.f32 %v352_v21, %v182_v8  ;;  %v213_v23 = vadd.f32 %v301_v19, %v204_v20 }
 0x149   : > { %v205_v24 = vmul.f32 %v300_v17, %v196_v22  ;;  %215 = vst [vmem:[%s164_s9] sm:$0xff] %v213_v23 }
 0x14b   : > { %v214_v25 = vadd.f32 %v301_v19, %v205_v24 }
 0x14d   : > { %216 = vst [vmem:[%s164_s9 + $0x8] sm:$0xff] %v214_v25 }
 0x14e   : > { %366 = shalt.err (!%p363_p3)
}
 0x14f   : > { %s367_s27 = scalar_lea.hbm %s501_s19, 256  ;;  %s371_s30 = scalar_lea.hbm %s548_s3, 512 }
 0x150   : > { %p368_p4 = scmp.ne.s32.totalorder %s501_s19, %s367_s27  ;;  %p372_p9 = scmp.lt.s32.totalorder %s501_s19, %s548_s3 }
 0x151   : > { %p373_p10 = scmp.lt.s32.totalorder %s371_s30, %s367_s27 }
 0x152   : > { %p369_p7 = pnand %p368_p4, %p476_p5 }
 0x153   : > { %p374_p11 = por %p373_p10, %p372_p9 }
 0x154   : > { %p370_p8 = pneg %p369_p7 }
 0x156   : > { %p375_p12 = pnand %p374_p11, %p370_p8 }
 0x158   : > { %378 = shalt.err (!%p375_p12)
}
 0x159   : > { %s416_s6 = smov 128   ;;  %s417_s7 = smov 8  }
 0x15a   : > { %308 = dma.vmem_to_hbm [thread:$0]  (%p476_p5), %s503_s10, 256, %s501_s19, %s505_s20, %s416_s6, %s416_s6, %s417_s7  }
 0x15b PF: > { %p314_p13 = scmp.ge.s32.totalorder %s413_s15, 2  ;;  %s246_s8 = sand.u32 1, %s401_s12  }
 0x15c   : > { %s247_s9 = scalar_lea.sflag [#allocation3], %s246_s8 }
 0x15d   : > { %p311_p0 = pnand %p314_p13, %p480_p6 }
 0x15f   : > { %p312_p1 = pneg %p311_p0 }
 0x161   : > { %396 = dma.done.wait (%p312_p1), %s247_s9, 256  }
 0x162   : > { %398 = vsyncadd (%p312_p1), %s247_s9, 4294967040  ;;  %p13_p2 = scmp.ge.s32.totalorder %s463_s18, 4   ;;  %s551_s12 = smov %s405_s13 }
 0x163   : > { %s552_s13 = smov %s409_s14  ;;  %s553_s14 = smov %s474_s21 }
 0x164   : > { %s554_s15 = smov %s463_s18  ;;  %15 = sbr.rel (!%p13_p2) target bundleno = 3 (0x3), region = 67 }
 0x169   :  { %252 = vsyncpa [#allocation3], 1 }
 0x16a   :  { %254 = vsyncpa [#allocation3 + $0x1], 1 }

// kernel: vit_forward.7
= control target key start
LH: loop header
LB: loop body
LE: loop exit
PB: predicated region body
PF: predicated region fallthrough
CT: control target
= control target key end

     0   :  { %s4245_s24 = smov 0   ;;  %s5166_s0 = inlined_call_operand.vmem [shape: f32[2,16,128], index: 0, kind: input, shape index: {}, may-alias: {0,7}]   ;;  %s5167_s1 = inlined_call_operand.vmem [shape: f32[1,128], index: 1, kind: input, shape index: {}]   ;;  %s5168_s2 = inlined_call_operand.vmem [shape: f32[1,128], index: 2, kind: input, shape index: {}]   ;;  %s5169_s3 = inlined_call_operand.vmem [shape: bf16[128,384], index: 3, kind: input, shape index: {}]   ;;  %s5170_s4 = inlined_call_operand.vmem [shape: bf16[128,128], index: 4, kind: input, shape index: {}]   ;;  %s5171_s5 = inlined_call_operand.vmem [shape: f32[1,128], index: 5, kind: input, shape index: {}]   ;;  %s5172_s6 = inlined_call_operand.vmem [shape: f32[16,16,16], index: 6, kind: input, shape index: {}]   ;;  %s5173_s7 = inlined_call_operand.vmem [shape: f32[2,16,128], index: 7, kind: output, shape index: {}, may-alias: {0,7}]  }
   0x1 LB: > { %s3386_s25 = sadd.s32 4294967295, %s4185_s24   ;;  %p3390_p0 = scmp.ge.s32.totalorder %s4185_s24, 1  ;;  %s4185_s24 = sphi %s4245_s24, %s17_s24  }
   0x2   : > { %p237_p1 = scmp.lt.s32.totalorder %s4185_s24, 3 }
   0x4   : > { %p238_p2 = pnand %p3390_p0, %p237_p1 }
   0x5   : > { %p269_p3 = scmp.lt.s32.totalorder (!%p238_p2), %s3386_s25, 1  ;;  %s5175_s28 = smov (!%p238_p2), 120  }
   0x6   : > { %241 = sbr.rel (%p238_p2) target bundleno = 2481 (0x9b1), region = 48  ;;  %s5177_s30 = smov (!%p238_p2), 112  }
   0x7   : > { %s5179_s8 = smov (!%p238_p2), 104   ;;  %s4193_s9 = smov (!%p238_p2), 96  }
   0x8   : > { %s4194_s10 = smov (!%p238_p2), 88   ;;  %s4195_s11 = smov (!%p238_p2), 80  }
   0x9   : > { %s4196_s12 = smov (!%p238_p2), 72   ;;  %s4197_s13 = smov (!%p238_p2), 64  }
   0xa   : > { %s4198_s14 = smov (!%p238_p2), 56   ;;  %s4199_s15 = smov (!%p238_p2), 48  }
   0xb   : > { %s5186_s25 = smov (!%p269_p3, %s3386_s25), 1  ;;  %v3957_v2 = vld [vmem:[%s5169_s3 + $0xac] ss:$12 sps:$4 sm:$0xff]   ;;  %v3959_v3 = vld [vmem:[%s5169_s3 + $0xa8] ss:$12 sps:$4 sm:$0xff]   ;;  %v4187_v4 = vmov 0.0  }
   0xc   : > { %s5174_s26 = sshll.u32 %s5186_s25, 4  ;;  %3699 = vmatprep.subr.bf16.mxu1 %v4187_v4  ;;  %v3960_v5 = vld [vmem:[%s5169_s3 + $0xb0] ss:$12 sps:$4 sm:$0xff]   ;;  %484 = vmatprep.subr.bf16.mxu0 %v3957_v2  ;;  %v3961_v14 = vld [vmem:[%s5169_s3 + $0x94] ss:$12 sps:$4 sm:$0xff]   ;;  %v4188_v27 = vmov 0  }
   0xd   : > { %s4261_s29 = scalar_lea.vmem %s5166_s0, %s5174_s26  ;;  %485 = vmatpush1.bf16.msra.mxu0 %v3959_v3  ;;  %3700 = vmatpush3.bf16.msra.mxu1 %v3960_v5  ;;  %v3963_v15 = vld [vmem:[%s5169_s3 + $0x90] ss:$12 sps:$4 sm:$0xff]   ;;  %v3964_v16 = vld [vmem:[%s5169_s3 + $0x98] ss:$12 sps:$4 sm:$0xff]   ;;  %v3968_v19 = vld [vmem:[%s5169_s3 + $0x80] ss:$12 sps:$4 sm:$0xff]  }
   0xe   : > { %v280_v0 = vld [vmem:[%s4261_s29] sm:$0xff]  ;;  %v4265_v1 = vld [vmem:[%s4261_s29 + $0x8] sm:$0xff]  ;;  %3701 = vmatprep.subr.bf16.mxu1 %v4187_v4  ;;  %486 = vmatprep.subr.bf16.mxu0 %v3961_v14  ;;  %v3976_v25 = vld [vmem:[%s5169_s3 + $0x50] ss:$12 sps:$4 sm:$0xff]   ;;  %vm4189_vm0 = vmmov 0   ;;  %vm608_vm1 = vcmask 64512  }
   0xf   : > { %282 = vadd.xlane.f32.xlu0 %v280_v0  ;;  %v3965_v17 = vld [vmem:[%s5169_s3 + $0x7c] ss:$12 sps:$4 sm:$0xff]   ;;  %v3967_v18 = vld [vmem:[%s5169_s3 + $0x78] ss:$12 sps:$4 sm:$0xff]   ;;  %v3971_v21 = vld [vmem:[%s5169_s3 + $0x60] ss:$12 sps:$4 sm:$0xff]   ;;  %516 = vmatprep.mubr.bf16.mxu0 %v4188_v27 }
  0x10   : > { %v3969_v20 = vld [vmem:[%s5169_s3 + $0x64] ss:$12 sps:$4 sm:$0xff]   ;;  %v3972_v22 = vld [vmem:[%s5169_s3 + $0x68] ss:$12 sps:$4 sm:$0xff]   ;;  %v3973_v23 = vld [vmem:[%s5169_s3 + $0x4c] ss:$12 sps:$4 sm:$0xff]   ;;  %3715 = vmatprep.mubr.msk.bf16.mxu1 %vm4189_vm0, %v4187_v4 }
  0x11   : > { %487 = vmatpush1.bf16.msra.mxu0 %v3963_v15  ;;  %3702 = vmatpush3.bf16.msra.mxu1 %v3964_v16  ;;  %v3975_v24 = vld [vmem:[%s5169_s3 + $0x48] ss:$12 sps:$4 sm:$0xff]   ;;  %v3979_v28 = vld [vmem:[%s5169_s3 + $0x30] ss:$12 sps:$4 sm:$0xff]   ;;  %v3980_v29 = vld [vmem:[%s5169_s3 + $0x38] ss:$12 sps:$4 sm:$0xff]  }
  0x12   : > { %3703 = vmatprep.subr.bf16.mxu1 %v4187_v4  ;;  %488 = vmatprep.subr.bf16.mxu0 %v3965_v17  ;;  %v3977_v26 = vld [vmem:[%s5169_s3 + $0x34] ss:$12 sps:$4 sm:$0xff]   ;;  %v3981_v30 = vld [vmem:[%s5169_s3 + $0x1c] ss:$12 sps:$4 sm:$0xff]   ;;  %v3983_v31 = vld [vmem:[%s5169_s3 + $0x18] ss:$12 sps:$4 sm:$0xff]  }
  0x13   : > { %284 = vadd.xlane.f32.xlu0 %v4265_v1  ;;  %v3984_v32 = vld [vmem:[%s5169_s3 + $0x20] ss:$12 sps:$4 sm:$0xff]   ;;  %v3985_v33 = vld [vmem:[%s5169_s3 + $0x4] ss:$12 sps:$4 sm:$0xff]   ;;  %v3988_v35 = vld [vmem:[%s5169_s3 + $0x8] ss:$12 sps:$4 sm:$0xff]  }
  0x14   : > { %v3987_v34 = vld [vmem:[%s5169_s3] ss:$12 sps:$4 sm:$0xff]   ;;  %vm662_vm2 = vcmask 130048   ;;  %s4200_s16 = smov 40   ;;  %s4201_s17 = smov 32   ;;  %vm744_vm3 = vcmask 60416  }
  0x15   : > { %489 = vmatpush1.bf16.msra.mxu0 %v3967_v18  ;;  %3704 = vmatpush3.bf16.msra.mxu1 %v3968_v19  ;;  %v3395_v44 = vld [vmem:[%s5167_s1] ss:$0 sm:$0xff]  ;;  %s4202_s18 = smov 24   ;;  %s4203_s19 = smov 16   ;;  %vm908_vm4 = vcmask 126016   ;;  %vm1072_vm5 = vcmask 191616  }
  0x16   : > { %3705 = vmatprep.subr.bf16.mxu1 %v4187_v4  ;;  %490 = vmatprep.subr.bf16.mxu0 %v3969_v20  ;;  %v3396_v48 = vld [vmem:[%s5168_s2] ss:$0 sm:$0xff]  ;;  %s4204_s20 = smov 8   ;;  %s5182_s27 = smov 112   ;;  %vm1236_vm6 = vcmask 257216   ;;  %vm1400_vm7 = vcmask 322816  }
  0x17   : > { %vm1564_vm8 = vcmask 388416   ;;  %vm1728_vm9 = vcmask 454016   ;;  %vm1892_vm10 = vcmask 519616   ;;  %vm2056_vm11 = vcmask 585216  }
  0x18   : > { %vm2220_vm12 = vcmask 650816   ;;  %vm2384_vm13 = vcmask 716416   ;;  %vm2548_vm14 = vcmask 782016   ;;  %vm2712_vm15 = vcmask 847616  }
  0x19   : > { %491 = vmatpush1.bf16.msra.mxu0 %v3971_v21  ;;  %3706 = vmatpush3.bf16.msra.mxu1 %v3972_v22 }
  0x1a   : > { %492 = vmatprep.subr.bf16.mxu0 %v3973_v23  ;;  %3707 = vmatprep.subr.bf16.mxu1 %v4187_v4 }
  0x1d   : > { %493 = vmatpush1.bf16.msra.mxu0 %v3975_v24  ;;  %3708 = vmatpush3.bf16.msra.mxu1 %v3976_v25 }
  0x1e   : > { %494 = vmatprep.subr.bf16.mxu0 %v3977_v26  ;;  %3709 = vmatprep.subr.bf16.mxu1 %v4187_v4 }
  0x21   : > { %495 = vmatpush1.bf16.msra.mxu0 %v3979_v28  ;;  %3710 = vmatpush3.bf16.msra.mxu1 %v3980_v29 }
  0x22   : > { %496 = vmatprep.subr.bf16.mxu0 %v3981_v30  ;;  %3711 = vmatprep.subr.bf16.mxu1 %v4187_v4 }
  0x25   : > { %497 = vmatpush1.bf16.msra.mxu0 %v3983_v31  ;;  %3712 = vmatpush3.bf16.msra.mxu1 %v3984_v32 }
  0x26   : > { %498 = vmatprep.subr.bf16.mxu0 %v3985_v33  ;;  %3713 = vmatprep.subr.bf16.mxu1 %v4187_v4 }
  0x29   : > { %499 = vmatpush1.bf16.msra.mxu0 %v3987_v34  ;;  %3714 = vmatpush3.bf16.msra.mxu1 %v3988_v35 }
  0x2a   : > { %3719 = vmatprep.subr.bf16.mxu1 %v4187_v4  ;;  %3743 = vmatprep.subr.bf16.mxu0 %v4187_v4 }
  0x98   : > { %v283_v6 = vpop.xlane.xlu0 %282 }
  0x99   : > { %v287_v7 = vmul.f32 0.0078125, %v283_v6 }
  0x9b   : > { %v4279_v8 = vsub.f32 %v280_v0, %v287_v7 }
  0x9c   : > { %v285_v9 = vpop.xlane.xlu0 %284 }
  0x9d   : > { %v288_v10 = vmul.f32 0.0078125, %v285_v9  ;;  %v291_v11 = vmul.f32 %v4279_v8, %v4279_v8 }
  0x9f   : > { %293 = vadd.xlane.f32.xlu1 %v291_v11  ;;  %v4284_v12 = vsub.f32 %v4265_v1, %v288_v10 }
  0xa1   : > { %v292_v13 = vmul.f32 %v4284_v12, %v4284_v12 }
  0xa3   : > { %295 = vadd.xlane.f32.xlu1 %v292_v13  ;;  %v659_v13 = vld [vmem:[%s5172_s6 + $0x8] sm:$0xff] }
 0x128   : > { %v294_v36 = vpop.xlane.xlu1 %293 }
 0x129   : > { %v297_v37 = vmul.f32 0.0078125, %v294_v36 }
 0x12b   : > { %v299_v38 = vadd.f32 1e-05, %v297_v37 }
 0x12c   : > { %v296_v39 = vpop.xlane.xlu1 %295 }
 0x12d   : > { %4046 = vrsqrt.f32 %v299_v38  ;;  %v298_v40 = vmul.f32 0.0078125, %v296_v39 }
 0x12f   : > { %v300_v41 = vadd.f32 1e-05, %v298_v40 }
 0x131   : > { %4048 = vrsqrt.f32 %v300_v41 }
 0x13a   : > { %v4047_v42 = vpop.eup %4046 }
 0x13b   : > { %v303_v43 = vmul.f32 %v4047_v42, %v4279_v8  ;;  %v658_v8 = vld [vmem:[%s5172_s6] sm:$0xff] }
 0x13d   : > { %v312_v47 = vmul.f32 %v3395_v44, %v303_v43 }
 0x13e   : > { %v4049_v45 = vpop.eup %4048 }
 0x13f   : > { %v304_v46 = vmul.f32 %v4049_v45, %v4284_v12  ;;  %v321_v50 = vadd.f32 %v3396_v48, %v312_v47 }
 0x141   : > { %v313_v49 = vmul.f32 %v3395_v44, %v304_v46 }
 0x143   : > { %v322_v51 = vadd.f32 %v3396_v48, %v313_v49 }
 0x145   : > { %v323_v52 = vpack.c.bf16 %v322_v51, %v321_v50 }
 0x147   : > { %517 = vmatmul.mubr.bf16.vlgmr.msra.gmra.mxu0 %v323_v52  ;;  %3716 = vmatmul.mubr.bf16.vlgmr.msra.gmra.mxu1 %v323_v52 }
 0x148   : > { %3721 = vmatprep.mubr.msk.bf16.mxu1 %vm4189_vm0, %v4187_v4  ;;  %3745 = vmatprep.mubr.msk.bf16.mxu0 %vm4189_vm0, %v4187_v4 }
 0x207   : > { %v518_v53 = vpop.f32.mrf.mxu0  ;;  %v561_v54 = vpop.f32.mrf.mxu1 }
 0x208   : > { %v3582_v55 = vpack.c.bf16 %v561_v54, %v561_v54 }
 0x209   : > { %v520_v56 = vpop.f32.mrf.mxu0  ;;  %v3717_v57 = vpop.f32.mrf.mxu1 }
 0x20a   : > { %589 = vst [vmem:[#allocation2 + $0x8] sm:$0xf] %v3582_v55  ;;  %v3581_v58 = vpack.c.bf16 %v520_v56, %v518_v53 }
 0x20b   : > { %v522_v59 = vpop.f32.mrf.mxu0  ;;  %v564_v60 = vpop.f32.mrf.mxu1 }
 0x20c   : > { %588 = vst [vmem:[#allocation2] sm:$0xff] %v3581_v58  ;;  %v3584_v61 = vpack.c.bf16 %v564_v60, %v564_v60 }
 0x20d   : > { %v524_v62 = vpop.f32.mrf.mxu0  ;;  %v3718_v63 = vpop.f32.mrf.mxu1 }
 0x20e   : > { %591 = vst [vmem:[#allocation2 + $0x14] sm:$0xf] %v3584_v61  ;;  %v3583_v0 = vpack.c.bf16 %v524_v62, %v522_v59 }
 0x210   : > { %590 = vst [vmem:[#allocation2 + $0xc] sm:$0xff] %v3583_v0 }
 0x215   : > { %v3991_v6 = vld [vmem:[#allocation2 + $0x8] ss:$12 sps:$4 sm:$0xff]  }
 0x217   : > { %v3989_v2 = vld [vmem:[#allocation2 + $0x4] ss:$12 sps:$4 sm:$0xff]   ;;  %v3990_v5 = vld [vmem:[#allocation2] ss:$12 sps:$4 sm:$0xff]  }
 0x218   : > { %v613_v3 = vsel %vm608_vm1, %v3989_v2, 0  ;;  %v3992_v29 = vld [vmem:[#allocation2] ss:$12 sps:$4 sm:$0xff]   ;;  %v3993_v30 = vld [vmem:[#allocation2 + $0x4] ss:$12 sps:$4 sm:$0xff]  }
 0x219   : > { %3720 = vmatpush3.bf16.xpose.msra.mxu1 %v613_v3  ;;  %v3994_v31 = vld [vmem:[#allocation2 + $0x4] ss:$12 sps:$4 sm:$0xff]   ;;  %v3996_v33 = vld [vmem:[#allocation2] ss:$12 sps:$4 sm:$0xff]  }
 0x21a   : > { %3725 = vmatprep.subr.bf16.mxu1 %v4187_v4  ;;  %v3995_v32 = vld [vmem:[#allocation2 + $0x4] ss:$12 sps:$4 sm:$0xff]   ;;  %v3998_v35 = vld [vmem:[#allocation2] ss:$12 sps:$4 sm:$0xff]  }
 0x21b   : > { %v3997_v34 = vld [vmem:[#allocation2 + $0x4] ss:$12 sps:$4 sm:$0xff]   ;;  %v4000_v37 = vld [vmem:[#allocation2] ss:$12 sps:$4 sm:$0xff]  }
 0x21c   : > { %v3999_v36 = vld [vmem:[#allocation2 + $0x4] ss:$12 sps:$4 sm:$0xff]   ;;  %v4002_v39 = vld [vmem:[#allocation2] ss:$12 sps:$4 sm:$0xff]  }
 0x21d   : > { %v4001_v38 = vld [vmem:[#allocation2 + $0x4] ss:$12 sps:$4 sm:$0xff]   ;;  %v4004_v41 = vld [vmem:[#allocation2] ss:$12 sps:$4 sm:$0xff]  }
 0x21e   : > { %v4003_v40 = vld [vmem:[#allocation2 + $0x4] ss:$12 sps:$4 sm:$0xff]   ;;  %v4006_v43 = vld [vmem:[#allocation2] ss:$12 sps:$4 sm:$0xff]  }
 0x21f   : > { %v4005_v42 = vld [vmem:[#allocation2 + $0x4] ss:$12 sps:$4 sm:$0xff]   ;;  %v4008_v45 = vld [vmem:[#allocation2] ss:$12 sps:$4 sm:$0xff]  }
 0x220   : > { %3722 = vmatmul.mubr.msk.bf16.vlgmr.msra.gmra.mxu1 %vm608_vm1, %v3990_v5  ;;  %v4007_v44 = vld [vmem:[#allocation2 + $0x4] ss:$12 sps:$4 sm:$0xff]   ;;  %v4010_v47 = vld [vmem:[#allocation2] ss:$12 sps:$4 sm:$0xff]  }
 0x221   : > { %3726 = vmatpush3.bf16.msra.mxu1 %v3991_v6  ;;  %3727 = vmatprep.mubr.msk.bf16.mxu1 %vm4189_vm0, %v4187_v4  ;;  %v4009_v46 = vld [vmem:[#allocation2 + $0x4] ss:$12 sps:$4 sm:$0xff]   ;;  %v4012_v49 = vld [vmem:[#allocation2] ss:$12 sps:$4 sm:$0xff]  }
 0x222   : > { %3731 = vmatprep.subr.bf16.mxu1 %v4187_v4  ;;  %v4011_v48 = vld [vmem:[#allocation2 + $0x4] ss:$12 sps:$4 sm:$0xff]   ;;  %v4014_v51 = vld [vmem:[#allocation2] ss:$12 sps:$4 sm:$0xff]  }
 0x223   : > { %v4013_v50 = vld [vmem:[#allocation2 + $0x4] ss:$12 sps:$4 sm:$0xff]   ;;  %v4016_v53 = vld [vmem:[#allocation2] ss:$12 sps:$4 sm:$0xff]  }
 0x224   : > { %v4015_v52 = vld [vmem:[#allocation2 + $0x4] ss:$12 sps:$4 sm:$0xff]   ;;  %v4018_v55 = vld [vmem:[#allocation2] ss:$12 sps:$4 sm:$0xff]  }
 0x225   : > { %v4017_v54 = vld [vmem:[#allocation2 + $0x4] ss:$12 sps:$4 sm:$0xff]   ;;  %v4020_v57 = vld [vmem:[#allocation2] ss:$12 sps:$4 sm:$0xff]  }
 0x226   : > { %v4019_v56 = vld [vmem:[#allocation2 + $0x4] ss:$12 sps:$4 sm:$0xff]   ;;  %v4021_v58 = vld [vmem:[#allocation2] ss:$12 sps:$4 sm:$0xff]  }
 0x2e0   : > { %v649_v7 = vpop.f32.mrf.mxu1 }
 0x2e1   : > { %v656_v9 = vmul.f32 0.35355338, %v649_v7 }
 0x2e2   : > { %v3723_v10 = vpop.f32.mrf.mxu1 }
 0x2e3   : > { %v660_v11 = vadd.f32 %v658_v8, %v656_v9 }
 0x2e4   : > { %v652_v12 = vpop.f32.mrf.mxu1 }
 0x2e5   : > { %v657_v14 = vmul.f32 0.35355338, %v652_v12  ;;  %v663_v15 = vsel %vm662_vm2, %v660_v11, -inf }
 0x2e6   : > { %664 = vmax.xlane.f32.xlu0 %v663_v15  ;;  %v3724_v16 = vpop.f32.mrf.mxu1 }
 0x2e7   : > { %v661_v17 = vadd.f32 %v659_v13, %v657_v14 }
 0x2e9   : > { %v666_v18 = vsel %vm662_vm2, %v661_v17, -inf }
 0x2ea   : > { %667 = vmax.xlane.f32.xlu1 %v666_v18 }
 0x36f   : > { %v665_v19 = vpop.xlane.xlu0 %664 }
 0x370   : > { %v669_v20 = vsub.f32 %v660_v11, %v665_v19 }
 0x372   : > { %v671_v21 = vmul.f32 1.442695, %v669_v20 }
 0x373   : > { %v668_v22 = vpop.xlane.xlu1 %667 }
 0x374   : > { %4050 = vpow2.f32 %v671_v21  ;;  %v670_v23 = vsub.f32 %v661_v17, %v668_v22 }
 0x376   : > { %v673_v24 = vmul.f32 1.442695, %v670_v23 }
 0x378   : > { %4052 = vpow2.f32 %v673_v24 }
 0x381   : > { %v4387_v25 = vpop.eup %4050 }
 0x382   : > { %v675_v26 = vsel %vm662_vm2, %v4387_v25, 0.0 }
 0x383   : > { %676 = vadd.xlane.f32.xlu0 %v675_v26 }
 0x385   : > { %v4391_v27 = vpop.eup %4052 }
 0x386   : > { %v678_v28 = vsel %vm662_vm2, %v4391_v27, 0.0 }
 0x387   : > { %679 = vadd.xlane.f32.xlu1 %v678_v28 }
 0x398   : > { %758 = vrot.lane.b32.xlu1 %v3992_v29, %s5175_s28 }
 0x399   : > { %765 = vrot.lane.b32.xlu0 %v3993_v30, %s5175_s28 }
 0x39c   : > { %929 = vrot.lane.b32.xlu1 %v3994_v31, %s5177_s30 }
 0x39d   : > { %1093 = vrot.lane.b32.xlu0 %v3995_v32, %s5179_s8 }
 0x3a0   : > { %922 = vrot.lane.b32.xlu1 %v3996_v33, %s5177_s30 }
 0x3a1   : > { %1257 = vrot.lane.b32.xlu0 %v3997_v34, %s4193_s9 }
 0x3a4   : > { %1086 = vrot.lane.b32.xlu1 %v3998_v35, %s5179_s8 }
 0x3a5   : > { %1421 = vrot.lane.b32.xlu0 %v3999_v36, %s4194_s10 }
 0x3a8   : > { %1250 = vrot.lane.b32.xlu1 %v4000_v37, %s4193_s9 }
 0x3a9   : > { %1585 = vrot.lane.b32.xlu0 %v4001_v38, %s4195_s11 }
 0x3ac   : > { %1414 = vrot.lane.b32.xlu1 %v4002_v39, %s4194_s10 }
 0x3ad   : > { %1749 = vrot.lane.b32.xlu0 %v4003_v40, %s4196_s12 }
 0x3b0   : > { %1578 = vrot.lane.b32.xlu1 %v4004_v41, %s4195_s11 }
 0x3b1   : > { %1913 = vrot.lane.b32.xlu0 %v4005_v42, %s4197_s13 }
 0x3b4   : > { %1742 = vrot.lane.b32.xlu1 %v4006_v43, %s4196_s12 }
 0x3b5   : > { %2077 = vrot.lane.b32.xlu0 %v4007_v44, %s4198_s14 }
 0x3b8   : > { %1906 = vrot.lane.b32.xlu1 %v4008_v45, %s4197_s13 }
 0x3b9   : > { %2241 = vrot.lane.b32.xlu0 %v4009_v46, %s4199_s15 }
 0x3bc   : > { %2070 = vrot.lane.b32.xlu1 %v4010_v47, %s4198_s14 }
 0x3bd   : > { %2405 = vrot.lane.b32.xlu0 %v4011_v48, %s4200_s16 }
 0x3c0   : > { %2234 = vrot.lane.b32.xlu1 %v4012_v49, %s4199_s15 }
 0x3c1   : > { %2569 = vrot.lane.b32.xlu0 %v4013_v50, %s4201_s17  ;;  %v3444_v50 = vld [vmem:[%s5172_s6 + $0x20] sm:$0xff] }
 0x3c4   : > { %2398 = vrot.lane.b32.xlu1 %v4014_v51, %s4200_s16 }
 0x3c5   : > { %2733 = vrot.lane.b32.xlu0 %v4015_v52, %s4202_s18 }
 0x3c8   : > { %2562 = vrot.lane.b32.xlu1 %v4016_v53, %s4201_s17 }
 0x3c9   : > { %2897 = vrot.lane.b32.xlu0 %v4017_v54, %s4203_s19 }
 0x3cc   : > { %2726 = vrot.lane.b32.xlu1 %v4018_v55, %s4202_s18 }
 0x3cd   : > { %3061 = vrot.lane.b32.xlu0 %v4019_v56, %s4204_s20 }
 0x3d0   : > { %2890 = vrot.lane.b32.xlu1 %v4020_v57, %s4203_s19 }
 0x3d4   : > { %3054 = vrot.lane.b32.xlu1 %v4021_v58, %s4204_s20  ;;  %v3445_v58 = vld [vmem:[%s5172_s6 + $0x28] sm:$0xff] }
 0x40c   : > { %v677_v59 = vpop.xlane.xlu0 %676 }
 0x40d   : > { %4054 = vrcp.f32 %v677_v59 }
 0x410   : > { %v680_v60 = vpop.xlane.xlu1 %679  ;;  %v766_v62 = vpop.permute.xlu0 %765 }
 0x411   : > { %4056 = vrcp.f32 %v680_v60  ;;  %v771_v11 = vsel %vm608_vm1, %v766_v62, 0 }
 0x414   : > { %v759_v61 = vpop.permute.xlu1 %758  ;;  %v1094_v5 = vpop.permute.xlu0 %1093 }
 0x415   : > { %v1099_v9 = vsel %vm608_vm1, %v1094_v5, 0  ;;  %v3453_v5 = vld [vmem:[%s5172_s6 + $0x30] sm:$0xff] }
 0x418   : > { %v930_v63 = vpop.permute.xlu1 %929  ;;  %v1258_v12 = vpop.permute.xlu0 %1257 }
 0x419   : > { %v935_v0 = vsel %vm608_vm1, %v930_v63, 0  ;;  %v1263_v14 = vsel %vm608_vm1, %v1258_v12, 0 }
 0x41a   : > { %3744 = vmatpush3.bf16.xpose.msra.mxu0 %v935_v0  ;;  %v4055_v2 = vpop.eup %4054 }
 0x41b   : > { %3755 = vmatprep.subr.bf16.mxu0 %v4187_v4  ;;  %v683_v6 = vmul.f32 %v4055_v2, %v4387_v25 }
 0x41c   : > { %v923_v8 = vpop.permute.xlu1 %922  ;;  %v1422_v15 = vpop.permute.xlu0 %1421 }
 0x41d   : > { %v1427_v17 = vsel %vm608_vm1, %v1422_v15, 0 }
 0x41e   : > { %v4057_v3 = vpop.eup %4056 }
 0x41f   : > { %v684_v7 = vmul.f32 %v4057_v3, %v4391_v27 }
 0x420   : > { %v1087_v13 = vpop.permute.xlu1 %1086  ;;  %v1586_v18 = vpop.permute.xlu0 %1585 }
 0x421   : > { %3746 = vmatmul.mubr.msk.bf16.vlgmr.msra.gmra.mxu0 %vm608_vm1, %v923_v8  ;;  %v685_v10 = vpack.c.bf16 %v684_v7, %v683_v6  ;;  %v1591_v20 = vsel %vm608_vm1, %v1586_v18, 0 }
 0x422   : > { %3756 = vmatpush3.bf16.xpose.msra.mxu0 %v1099_v9  ;;  %3757 = vmatprep.mubr.msk.bf16.mxu0 %vm4189_vm0, %v4187_v4 }
 0x423   : > { %3728 = vmatmul.mubr.msk.bf16.vlgmr.msra.gmra.mxu1 %vm662_vm2, %v685_v10  ;;  %3767 = vmatprep.subr.bf16.mxu0 %v4187_v4 }
 0x424   : > { %3732 = vmatpush3.bf16.xpose.msra.mxu1 %v771_v11  ;;  %3733 = vmatprep.mubr.msk.bf16.mxu1 %vm4189_vm0, %v4187_v4  ;;  %v1251_v16 = vpop.permute.xlu1 %1250  ;;  %v1750_v21 = vpop.permute.xlu0 %1749 }
 0x425   : > { %3737 = vmatprep.subr.bf16.mxu1 %v4187_v4  ;;  %v1755_v23 = vsel %vm608_vm1, %v1750_v21, 0  ;;  %v3462_v21 = vld [vmem:[%s5172_s6 + $0x40] sm:$0xff] }
 0x428   : > { %v1415_v19 = vpop.permute.xlu1 %1414  ;;  %v1914_v24 = vpop.permute.xlu0 %1913 }
 0x429   : > { %3758 = vmatmul.mubr.msk.bf16.vlgmr.msra.gmra.mxu0 %vm608_vm1, %v1087_v13  ;;  %v1919_v26 = vsel %vm608_vm1, %v1914_v24, 0  ;;  %v3454_v13 = vld [vmem:[%s5172_s6 + $0x38] sm:$0xff] }
 0x42a   : > { %3768 = vmatpush3.bf16.xpose.msra.mxu0 %v1263_v14  ;;  %3769 = vmatprep.mubr.msk.bf16.mxu0 %vm4189_vm0, %v4187_v4 }
 0x42b   : > { %3734 = vmatmul.mubr.msk.bf16.vlgmr.msra.gmra.mxu1 %vm608_vm1, %v759_v61  ;;  %3779 = vmatprep.subr.bf16.mxu0 %v4187_v4 }
 0x42c   : > { %3739 = vmatprep.mubr.msk.bf16.mxu1 %vm4189_vm0, %v4187_v4  ;;  %v1579_v22 = vpop.permute.xlu1 %1578  ;;  %v2078_v27 = vpop.permute.xlu0 %2077 }
 0x42d   : > { %v2083_v29 = vsel %vm608_vm1, %v2078_v27, 0  ;;  %v3463_v27 = vld [vmem:[%s5172_s6 + $0x48] sm:$0xff] }
 0x430   : > { %v1743_v25 = vpop.permute.xlu1 %1742  ;;  %v2242_v30 = vpop.permute.xlu0 %2241 }
 0x431   : > { %3770 = vmatmul.mubr.msk.bf16.vlgmr.msra.gmra.mxu0 %vm608_vm1, %v1251_v16  ;;  %v2247_v32 = vsel %vm608_vm1, %v2242_v30, 0 }
 0x432   : > { %3780 = vmatpush3.bf16.xpose.msra.mxu0 %v1427_v17  ;;  %3781 = vmatprep.mubr.msk.bf16.mxu0 %vm4189_vm0, %v4187_v4 }
 0x433   : > { %3791 = vmatprep.subr.bf16.mxu0 %v4187_v4 }
 0x434   : > { %v1907_v28 = vpop.permute.xlu1 %1906  ;;  %v2406_v33 = vpop.permute.xlu0 %2405 }
 0x435   : > { %v2411_v35 = vsel %vm608_vm1, %v2406_v33, 0  ;;  %v3471_v33 = vld [vmem:[%s5172_s6 + $0x50] sm:$0xff] }
 0x438   : > { %v2071_v31 = vpop.permute.xlu1 %2070  ;;  %v2570_v36 = vpop.permute.xlu0 %2569 }
 0x439   : > { %3782 = vmatmul.mubr.msk.bf16.vlgmr.msra.gmra.mxu0 %vm608_vm1, %v1415_v19  ;;  %v2575_v38 = vsel %vm608_vm1, %v2570_v36, 0 }
 0x43a   : > { %3792 = vmatpush3.bf16.xpose.msra.mxu0 %v1591_v20  ;;  %3793 = vmatprep.mubr.msk.bf16.mxu0 %vm4189_vm0, %v4187_v4 }
 0x43b   : > { %3803 = vmatprep.subr.bf16.mxu0 %v4187_v4 }
 0x43c   : > { %v2235_v34 = vpop.permute.xlu1 %2234  ;;  %v2734_v39 = vpop.permute.xlu0 %2733 }
 0x43d   : > { %v2739_v41 = vsel %vm608_vm1, %v2734_v39, 0  ;;  %v3472_v39 = vld [vmem:[%s5172_s6 + $0x58] sm:$0xff] }
 0x440   : > { %v2399_v37 = vpop.permute.xlu1 %2398  ;;  %v2898_v42 = vpop.permute.xlu0 %2897 }
 0x441   : > { %3794 = vmatmul.mubr.msk.bf16.vlgmr.msra.gmra.mxu0 %vm608_vm1, %v1579_v22  ;;  %v2903_v44 = vsel %vm608_vm1, %v2898_v42, 0 }
 0x442   : > { %3804 = vmatpush3.bf16.xpose.msra.mxu0 %v1755_v23  ;;  %3805 = vmatprep.mubr.msk.bf16.mxu0 %vm4189_vm0, %v4187_v4 }
 0x443   : > { %3815 = vmatprep.subr.bf16.mxu0 %v4187_v4 }
 0x444   : > { %v2563_v40 = vpop.permute.xlu1 %2562  ;;  %v3062_v45 = vpop.permute.xlu0 %3061 }
 0x445   : > { %v3067_v47 = vsel %vm608_vm1, %v3062_v45, 0  ;;  %v3480_v45 = vld [vmem:[%s5172_s6 + $0x60] sm:$0xff] }
 0x448   : > { %v2727_v43 = vpop.permute.xlu1 %2726 }
 0x449   : > { %3806 = vmatmul.mubr.msk.bf16.vlgmr.msra.gmra.mxu0 %vm608_vm1, %v1743_v25 }
 0x44a   : > { %3816 = vmatpush3.bf16.xpose.msra.mxu0 %v1919_v26  ;;  %3817 = vmatprep.mubr.msk.bf16.mxu0 %vm4189_vm0, %v4187_v4 }
 0x44b   : > { %3827 = vmatprep.subr.bf16.mxu0 %v4187_v4 }
 0x44c   : > { %v2891_v46 = vpop.permute.xlu1 %2890 }
 0x450   : > { %v3055_v48 = vpop.permute.xlu1 %3054 }
 0x451   : > { %3818 = vmatmul.mubr.msk.bf16.vlgmr.msra.gmra.mxu0 %vm608_vm1, %v1907_v28 }
 0x452   : > { %3828 = vmatpush3.bf16.xpose.msra.mxu0 %v2083_v29  ;;  %3829 = vmatprep.mubr.msk.bf16.mxu0 %vm4189_vm0, %v4187_v4 }
 0x453   : > { %3839 = vmatprep.subr.bf16.mxu0 %v4187_v4 }
 0x459   : > { %3830 = vmatmul.mubr.msk.bf16.vlgmr.msra.gmra.mxu0 %vm608_vm1, %v2071_v31 }
 0x45a   : > { %3840 = vmatpush3.bf16.xpose.msra.mxu0 %v2247_v32  ;;  %3841 = vmatprep.mubr.msk.bf16.mxu0 %vm4189_vm0, %v4187_v4 }
 0x45b   : > { %3851 = vmatprep.subr.bf16.mxu0 %v4187_v4 }
 0x461   : > { %3842 = vmatmul.mubr.msk.bf16.vlgmr.msra.gmra.mxu0 %vm608_vm1, %v2235_v34 }
 0x462   : > { %3852 = vmatpush3.bf16.xpose.msra.mxu0 %v2411_v35  ;;  %3853 = vmatprep.mubr.msk.bf16.mxu0 %vm4189_vm0, %v4187_v4 }
 0x463   : > { %3863 = vmatprep.subr.bf16.mxu0 %v4187_v4 }
 0x469   : > { %3854 = vmatmul.mubr.msk.bf16.vlgmr.msra.gmra.mxu0 %vm608_vm1, %v2399_v37 }
 0x46a   : > { %3864 = vmatpush3.bf16.xpose.msra.mxu0 %v2575_v38  ;;  %3865 = vmatprep.mubr.msk.bf16.mxu0 %vm4189_vm0, %v4187_v4 }
 0x46b   : > { %3875 = vmatprep.subr.bf16.mxu0 %v4187_v4 }
 0x471   : > { %3866 = vmatmul.mubr.msk.bf16.vlgmr.msra.gmra.mxu0 %vm608_vm1, %v2563_v40 }
 0x472   : > { %3876 = vmatpush3.bf16.xpose.msra.mxu0 %v2739_v41  ;;  %3877 = vmatprep.mubr.msk.bf16.mxu0 %vm4189_vm0, %v4187_v4 }
 0x473   : > { %3887 = vmatprep.subr.bf16.mxu0 %v4187_v4 }
 0x479   : > { %3878 = vmatmul.mubr.msk.bf16.vlgmr.msra.gmra.mxu0 %vm608_vm1, %v2727_v43 }
 0x47a   : > { %3888 = vmatpush3.bf16.xpose.msra.mxu0 %v2903_v44  ;;  %3889 = vmatprep.mubr.msk.bf16.mxu0 %vm4189_vm0, %v4187_v4 }
 0x47b   : > { %3899 = vmatprep.subr.bf16.mxu0 %v4187_v4 }
 0x481   : > { %3890 = vmatmul.mubr.msk.bf16.vlgmr.msra.gmra.mxu0 %vm608_vm1, %v2891_v46 }
 0x482   : > { %3900 = vmatpush3.bf16.xpose.msra.mxu0 %v3067_v47  ;;  %3901 = vmatprep.mubr.msk.bf16.mxu0 %vm4189_vm0, %v4187_v4 }
 0x483   : > { %3911 = vmatprep.subr.bf16.mxu0 %v4187_v4 }
 0x489   : > { %3902 = vmatmul.mubr.msk.bf16.vlgmr.msra.gmra.mxu0 %vm608_vm1, %v3055_v48  ;;  %vm3040_vm1 = vcmask 978816  }
 0x48a   : > { %3927 = vmatprep.mubr.msk.bf16.mxu0 %vm4189_vm0, %v4187_v4 }
 0x4e1   : > { %v971_v49 = vpop.f32.mrf.mxu0 }
 0x4e2   : > { %v978_v51 = vmul.f32 0.35355338, %v971_v49 }
 0x4e3   : > { %v729_v52 = vpop.f32.mrf.mxu1  ;;  %v3747_v53 = vpop.f32.mrf.mxu0 }
 0x4e4   : > { %v3585_v54 = vpack.c.bf16 %v729_v52, %v729_v52  ;;  %v4508_v55 = vadd.f32 %v3444_v50, %v978_v51  ;;  %v3481_v51 = vld [vmem:[%s5172_s6 + $0x68] sm:$0xff] }
 0x4e5   : > { %v3729_v56 = vpop.f32.mrf.mxu1  ;;  %v974_v57 = vpop.f32.mrf.mxu0 }
 0x4e6   : > { %745 = vst.msk [vmem:[#allocation3] sm:$0xf] %vm744_vm3, %v3585_v54  ;;  %v979_v59 = vmul.f32 0.35355338, %v974_v57  ;;  %v985_v60 = vsel %vm662_vm2, %v4508_v55, -inf }
 0x4e7   : > { %986 = vmax.xlane.f32.xlu0 %v985_v60  ;;  %v732_v61 = vpop.f32.mrf.mxu1  ;;  %v3748_v62 = vpop.f32.mrf.mxu0 }
 0x4e8   : > { %v3586_v63 = vpack.c.bf16 %v732_v61, %v732_v61  ;;  %v4516_v0 = vadd.f32 %v3445_v58, %v979_v59  ;;  %v3489_v58 = vld [vmem:[%s5172_s6 + $0x70] sm:$0xff] }
 0x4e9   : > { %v3730_v2 = vpop.f32.mrf.mxu1  ;;  %v1135_v3 = vpop.f32.mrf.mxu0 }
 0x4ea   : > { %746 = vst.msk [vmem:[#allocation3 + $0x4] sm:$0xf] %vm744_vm3, %v3586_v63  ;;  %v1142_v6 = vmul.f32 0.35355338, %v1135_v3  ;;  %v988_v7 = vsel %vm662_vm2, %v4516_v0, -inf  ;;  %v3490_v2 = vld [vmem:[%s5172_s6 + $0x78] sm:$0xff] }
 0x4eb   : > { %989 = vmax.xlane.f32.xlu0 %v988_v7  ;;  %v4524_v8 = vpop.f32.mrf.mxu1  ;;  %v3759_v9 = vpop.f32.mrf.mxu0 }
 0x4ec   : > { %v4526_v10 = vadd.f32 %v3453_v5, %v1142_v6 }
 0x4ed   : > { %v3735_v11 = vpop.f32.mrf.mxu1  ;;  %v1138_v12 = vpop.f32.mrf.mxu0 }
 0x4ee   : > { %v1143_v14 = vmul.f32 0.35355338, %v1138_v12  ;;  %v1149_v15 = vsel %vm662_vm2, %v4526_v10, -inf }
 0x4ef   : > { %1150 = vmax.xlane.f32.xlu0 %v1149_v15  ;;  %v4533_v16 = vpop.f32.mrf.mxu1  ;;  %v3760_v17 = vpop.f32.mrf.mxu0 }
 0x4f0   : > { %v4535_v18 = vadd.f32 %v3454_v13, %v1143_v14 }
 0x4f1   : > { %v3736_v19 = vpop.f32.mrf.mxu1  ;;  %v1299_v20 = vpop.f32.mrf.mxu0 }
 0x4f2   : > { %v1306_v22 = vmul.f32 0.35355338, %v1299_v20  ;;  %v1152_v23 = vsel %vm662_vm2, %v4535_v18, -inf }
 0x4f3   : > { %1153 = vmax.xlane.f32.xlu1 %v1152_v23  ;;  %v3771_v24 = vpop.f32.mrf.mxu0 }
 0x4f4   : > { %v4542_v25 = vadd.f32 %v3462_v21, %v1306_v22  ;;  %v4022_v22 = vld [vmem:[#allocation2 + $0x8] ss:$12 sps:$4 sm:$0xff]  }
 0x4f5   : > { %v1302_v26 = vpop.f32.mrf.mxu0  ;;  %v4023_v24 = vld [vmem:[#allocation2 + $0x8] ss:$12 sps:$4 sm:$0xff]  }
 0x4f6   : > { %v1307_v28 = vmul.f32 0.35355338, %v1302_v26  ;;  %v1313_v29 = vsel %vm662_vm2, %v4542_v25, -inf }
 0x4f7   : > { %1314 = vmax.xlane.f32.xlu0 %v1313_v29  ;;  %v3772_v30 = vpop.f32.mrf.mxu0  ;;  %v4025_v29 = vld [vmem:[#allocation2 + $0x8] ss:$12 sps:$4 sm:$0xff]  }
 0x4f8   : > { %v4549_v31 = vadd.f32 %v3463_v27, %v1307_v28  ;;  %v4024_v27 = vld [vmem:[#allocation2 + $0x8] ss:$12 sps:$4 sm:$0xff]  }
 0x4f9   : > { %v1463_v32 = vpop.f32.mrf.mxu0 }
 0x4fa   : > { %v1470_v34 = vmul.f32 0.35355338, %v1463_v32  ;;  %v1316_v35 = vsel %vm662_vm2, %v4549_v31, -inf }
 0x4fb   : > { %1317 = vmax.xlane.f32.xlu1 %v1316_v35  ;;  %v3783_v36 = vpop.f32.mrf.mxu0 }
 0x4fc   : > { %v4556_v37 = vadd.f32 %v3471_v33, %v1470_v34  ;;  %v4026_v33 = vld [vmem:[#allocation2 + $0x8] ss:$12 sps:$4 sm:$0xff]  }
 0x4fd   : > { %v1466_v38 = vpop.f32.mrf.mxu0 }
 0x4fe   : > { %v1471_v40 = vmul.f32 0.35355338, %v1466_v38  ;;  %v1477_v41 = vsel %vm662_vm2, %v4556_v37, -inf }
 0x4ff   : > { %1478 = vmax.xlane.f32.xlu0 %v1477_v41  ;;  %v3784_v42 = vpop.f32.mrf.mxu0 }
 0x500   : > { %v4563_v43 = vadd.f32 %v3472_v39, %v1471_v40 }
 0x501   : > { %v1627_v44 = vpop.f32.mrf.mxu0 }
 0x502   : > { %v1634_v46 = vmul.f32 0.35355338, %v1627_v44  ;;  %v1480_v47 = vsel %vm662_vm2, %v4563_v43, -inf }
 0x503   : > { %1481 = vmax.xlane.f32.xlu1 %v1480_v47  ;;  %v3795_v48 = vpop.f32.mrf.mxu0 }
 0x504   : > { %v4570_v49 = vadd.f32 %v3480_v45, %v1634_v46 }
 0x505   : > { %v1630_v50 = vpop.f32.mrf.mxu0 }
 0x506   : > { %v1635_v52 = vmul.f32 0.35355338, %v1630_v50  ;;  %v1641_v53 = vsel %vm662_vm2, %v4570_v49, -inf }
 0x507   : > { %1642 = vmax.xlane.f32.xlu0 %v1641_v53  ;;  %v3796_v54 = vpop.f32.mrf.mxu0 }
 0x508   : > { %v4577_v56 = vadd.f32 %v3481_v51, %v1635_v52  ;;  %v3498_v51 = vld [vmem:[%s5172_s6 + $0x80] sm:$0xff]  ;;  %v3499_v52 = vld [vmem:[%s5172_s6 + $0x88] sm:$0xff] }
 0x509   : > { %v1791_v57 = vpop.f32.mrf.mxu0 }
 0x50a   : > { %v1798_v59 = vmul.f32 0.35355338, %v1791_v57  ;;  %v1644_v60 = vsel %vm662_vm2, %v4577_v56, -inf }
 0x50b   : > { %1645 = vmax.xlane.f32.xlu1 %v1644_v60  ;;  %v3807_v61 = vpop.f32.mrf.mxu0 }
 0x50c   : > { %v4584_v62 = vadd.f32 %v3489_v58, %v1798_v59  ;;  %v3507_v61 = vld [vmem:[%s5172_s6 + $0x90] sm:$0xff] }
 0x50d   : > { %v1794_v63 = vpop.f32.mrf.mxu0 }
 0x50e   : > { %v1799_v3 = vmul.f32 0.35355338, %v1794_v63  ;;  %v1805_v5 = vsel %vm662_vm2, %v4584_v62, -inf  ;;  %v3508_v63 = vld [vmem:[%s5172_s6 + $0x98] sm:$0xff] }
 0x50f   : > { %1806 = vmax.xlane.f32.xlu0 %v1805_v5  ;;  %v3808_v6 = vpop.f32.mrf.mxu0 }
 0x510   : > { %v4591_v7 = vadd.f32 %v3490_v2, %v1799_v3 }
 0x511   : > { %v1955_v9 = vpop.f32.mrf.mxu0 }
 0x512   : > { %v1808_v11 = vsel %vm662_vm2, %v4591_v7, -inf  ;;  %v1962_v47 = vmul.f32 0.35355338, %v1955_v9 }
 0x513   : > { %1809 = vmax.xlane.f32.xlu1 %v1808_v11  ;;  %v3819_v12 = vpop.f32.mrf.mxu0 }
 0x514   : > { %v4606_v59 = vadd.f32 %v3498_v51, %v1962_v47  ;;  %v3544_v51 = vld [vmem:[%s5172_s6 + $0xd8] sm:$0xff] }
 0x515   : > { %v1958_v13 = vpop.f32.mrf.mxu0 }
 0x516   : > { %v1963_v48 = vmul.f32 0.35355338, %v1958_v13  ;;  %v1969_v9 = vsel %vm662_vm2, %v4606_v59, -inf }
 0x517   : > { %v3820_v14 = vpop.f32.mrf.mxu0 }
 0x518   : > { %v4608_v60 = vadd.f32 %v3499_v52, %v1963_v48  ;;  %v3516_v14 = vld [vmem:[%s5172_s6 + $0xa0] sm:$0xff] }
 0x519   : > { %v2119_v15 = vpop.f32.mrf.mxu0 }
 0x51a   : > { %v2126_v54 = vmul.f32 0.35355338, %v2119_v15  ;;  %v1972_v11 = vsel %vm662_vm2, %v4608_v60, -inf  ;;  %v3517_v15 = vld [vmem:[%s5172_s6 + $0xa8] sm:$0xff] }
 0x51b   : > { %v3831_v17 = vpop.f32.mrf.mxu0 }
 0x51c   : > { %v4620_v12 = vadd.f32 %v3507_v61, %v2126_v54  ;;  %v3552_v61 = vld [vmem:[%s5172_s6 + $0xe0] sm:$0xff] }
 0x51d   : > { %v2122_v19 = vpop.f32.mrf.mxu0 }
 0x51e   : > { %v2127_v57 = vmul.f32 0.35355338, %v2122_v19 }
 0x51f   : > { %v3832_v20 = vpop.f32.mrf.mxu0 }
 0x520   : > { %v4622_v13 = vadd.f32 %v3508_v63, %v2127_v57  ;;  %v3553_v63 = vld [vmem:[%s5172_s6 + $0xe8] sm:$0xff] }
 0x521   : > { %v2283_v21 = vpop.f32.mrf.mxu0 }
 0x522   : > { %v2290_v3 = vmul.f32 0.35355338, %v2283_v21 }
 0x523   : > { %v3843_v23 = vpop.f32.mrf.mxu0 }
 0x524   : > { %1013 = vrot.lane.b32.xlu1 %v4022_v22, %s5177_s30  ;;  %v4630_v19 = vadd.f32 %v3516_v14, %v2290_v3  ;;  %v3562_v14 = vld [vmem:[%s5172_s6 + $0xf8] sm:$0xff]  ;;  %s5183_s30 = smov 120  }
 0x525   : > { %849 = vrot.lane.b32.xlu0 %v4023_v24, %s5175_s28  ;;  %v2286_v26 = vpop.f32.mrf.mxu0  ;;  %v2133_v24 = vsel %vm662_vm2, %v4620_v12, -inf }
 0x526   : > { %v2291_v5 = vmul.f32 0.35355338, %v2286_v26  ;;  %v2136_v26 = vsel %vm662_vm2, %v4622_v13, -inf }
 0x527   : > { %v3844_v28 = vpop.f32.mrf.mxu0 }
 0x528   : > { %1341 = vrot.lane.b32.xlu1 %v4024_v27, %s4193_s9  ;;  %v4632_v20 = vadd.f32 %v3517_v15, %v2291_v5  ;;  %v3525_v27 = vld [vmem:[%s5172_s6 + $0xb0] sm:$0xff]  ;;  %v3526_v28 = vld [vmem:[%s5172_s6 + $0xb8] sm:$0xff] }
 0x529   : > { %1177 = vrot.lane.b32.xlu0 %v4025_v29, %s5179_s8  ;;  %v2447_v30 = vpop.f32.mrf.mxu0  ;;  %v2297_v29 = vsel %vm662_vm2, %v4630_v19, -inf }
 0x52a   : > { %v2454_v21 = vmul.f32 0.35355338, %v2447_v30  ;;  %v2300_v30 = vsel %vm662_vm2, %v4632_v20, -inf }
 0x52b   : > { %v3855_v32 = vpop.f32.mrf.mxu0 }
 0x52d   : > { %1505 = vrot.lane.b32.xlu0 %v4026_v33, %s4194_s10  ;;  %v2450_v34 = vpop.f32.mrf.mxu0 }
 0x52e   : > { %v2455_v22 = vmul.f32 0.35355338, %v2450_v34  ;;  %v4648_v34 = vadd.f32 %v3525_v27, %v2454_v21 }
 0x52f   : > { %v3856_v35 = vpop.f32.mrf.mxu0 }
 0x530   : > { %v4650_v35 = vadd.f32 %v3526_v28, %v2455_v22 }
 0x531   : > { %v2611_v36 = vpop.f32.mrf.mxu0 }
 0x532   : > { %v2618_v32 = vmul.f32 0.35355338, %v2611_v36  ;;  %v2461_v36 = vsel %vm662_vm2, %v4648_v34, -inf }
 0x533   : > { %v3867_v38 = vpop.f32.mrf.mxu0 }
 0x534   : > { %v3534_v38 = vld [vmem:[%s5172_s6 + $0xc0] sm:$0xff] }
 0x535   : > { %v2614_v39 = vpop.f32.mrf.mxu0  ;;  %v4662_v47 = vadd.f32 %v3534_v38, %v2618_v32 }
 0x536   : > { %v2619_v33 = vmul.f32 0.35355338, %v2614_v39  ;;  %v2464_v39 = vsel %vm662_vm2, %v4650_v35, -inf }
 0x537   : > { %v3868_v40 = vpop.f32.mrf.mxu0  ;;  %v2625_v57 = vsel %vm662_vm2, %v4662_v47, -inf }
 0x538   : > { %v3535_v40 = vld [vmem:[%s5172_s6 + $0xc8] sm:$0xff] }
 0x539   : > { %v2775_v41 = vpop.f32.mrf.mxu0  ;;  %v4664_v48 = vadd.f32 %v3535_v40, %v2619_v33 }
 0x53b   : > { %v3879_v42 = vpop.f32.mrf.mxu0 }
 0x53c   : > { %v2782_v42 = vmul.f32 0.35355338, %v2775_v41 }
 0x53d   : > { %v2778_v44 = vpop.f32.mrf.mxu0 }
 0x53f   : > { %v3880_v45 = vpop.f32.mrf.mxu0 }
 0x540   : > { %v2783_v45 = vmul.f32 0.35355338, %v2778_v44 }
 0x541   : > { %v2939_v46 = vpop.f32.mrf.mxu0 }
 0x542   : > { %v4674_v44 = vadd.f32 %v3544_v51, %v2783_v45  ;;  %v2946_v52 = vmul.f32 0.35355338, %v2939_v46 }
 0x543   : > { %v3891_v50 = vpop.f32.mrf.mxu0 }
 0x544   : > { %v3543_v50 = vld [vmem:[%s5172_s6 + $0xd0] sm:$0xff] }
 0x545   : > { %v2942_v53 = vpop.f32.mrf.mxu0  ;;  %v4672_v41 = vadd.f32 %v3543_v50, %v2782_v42 }
 0x546   : > { %v2947_v54 = vmul.f32 0.35355338, %v2942_v53  ;;  %v2792_v53 = vsel %vm662_vm2, %v4674_v44, -inf }
 0x547   : > { %v3892_v58 = vpop.f32.mrf.mxu0  ;;  %v2789_v46 = vsel %vm662_vm2, %v4672_v41, -inf }
 0x548   : > { %v2628_v58 = vsel %vm662_vm2, %v4664_v48, -inf }
 0x549   : > { %v3103_v2 = vpop.f32.mrf.mxu0 }
 0x54a   : > { %v3110_v3 = vmul.f32 0.35355338, %v3103_v2 }
 0x54b   : > { %v3903_v6 = vpop.f32.mrf.mxu0 }
 0x54c   : > { %1970 = vmax.xlane.f32.xlu0 %v1969_v9  ;;  %1973 = vmax.xlane.f32.xlu1 %v1972_v11  ;;  %v4690_v6 = vadd.f32 %v3552_v61, %v2946_v52  ;;  %v4692_v9 = vadd.f32 %v3553_v63, %v2947_v54  ;;  %v3561_v11 = vld [vmem:[%s5172_s6 + $0xf0] sm:$0xff] }
 0x54d   : > { %v3106_v17 = vpop.f32.mrf.mxu0 }
 0x54e   : > { %v3111_v5 = vmul.f32 0.35355338, %v3106_v17  ;;  %v2953_v15 = vsel %vm662_vm2, %v4690_v6, -inf  ;;  %v2956_v2 = vsel %vm662_vm2, %v4692_v9, -inf  ;;  %v4704_v17 = vadd.f32 %v3561_v11, %v3110_v3 }
 0x54f   : > { %v3904_v23 = vpop.f32.mrf.mxu0 }
 0x550   : > { %2134 = vmax.xlane.f32.xlu0 %v2133_v24  ;;  %2137 = vmax.xlane.f32.xlu1 %v2136_v26  ;;  %v4706_v21 = vadd.f32 %v3562_v14, %v3111_v5  ;;  %v3117_v22 = vsel %vm662_vm2, %v4704_v17, -inf }
 0x552   : > { %v3120_v23 = vsel %vm662_vm2, %v4706_v21, -inf }
 0x554   : > { %2298 = vmax.xlane.f32.xlu0 %v2297_v29  ;;  %2301 = vmax.xlane.f32.xlu1 %v2300_v30 }
 0x558   : > { %2462 = vmax.xlane.f32.xlu0 %v2461_v36  ;;  %2465 = vmax.xlane.f32.xlu1 %v2464_v39 }
 0x55c   : > { %2626 = vmax.xlane.f32.xlu0 %v2625_v57  ;;  %2629 = vmax.xlane.f32.xlu1 %v2628_v58 }
 0x560   : > { %2790 = vmax.xlane.f32.xlu0 %v2789_v46  ;;  %2793 = vmax.xlane.f32.xlu1 %v2792_v53 }
 0x564   : > { %2954 = vmax.xlane.f32.xlu0 %v2953_v15  ;;  %2957 = vmax.xlane.f32.xlu1 %v2956_v2 }
 0x568   : > { %3118 = vmax.xlane.f32.xlu0 %v3117_v22  ;;  %3121 = vmax.xlane.f32.xlu1 %v3120_v23 }
 0x570   : > { %v987_v24 = vpop.xlane.xlu0 %986 }
 0x571   : > { %v991_v26 = vsub.f32 %v4508_v55, %v987_v24 }
 0x573   : > { %v993_v27 = vmul.f32 1.442695, %v991_v26 }
 0x574   : > { %v990_v28 = vpop.xlane.xlu0 %989 }
 0x575   : > { %4058 = vpow2.f32 %v993_v27  ;;  %v992_v29 = vsub.f32 %v4516_v0, %v990_v28 }
 0x577   : > { %v995_v30 = vmul.f32 1.442695, %v992_v29 }
 0x578   : > { %v1151_v32 = vpop.xlane.xlu0 %1150 }
 0x579   : > { %4060 = vpow2.f32 %v995_v30  ;;  %v1155_v33 = vsub.f32 %v4526_v10, %v1151_v32 }
 0x57b   : > { %v1157_v38 = vmul.f32 1.442695, %v1155_v33 }
 0x57c   : > { %v1154_v40 = vpop.xlane.xlu1 %1153 }
 0x57d   : > { %4062 = vpow2.f32 %v1157_v38  ;;  %v1156_v42 = vsub.f32 %v4535_v18, %v1154_v40 }
 0x57f   : > { %v1159_v45 = vmul.f32 1.442695, %v1156_v42 }
 0x580   : > { %v1315_v36 = vpop.xlane.xlu0 %1314 }
 0x581   : > { %4064 = vpow2.f32 %v1159_v45  ;;  %v1319_v55 = vsub.f32 %v4542_v25, %v1315_v36 }
 0x582   : > { %v4717_v39 = vpop.eup %4058 }
 0x583   : > { %v1321_v50 = vmul.f32 1.442695, %v1319_v55  ;;  %v997_v0 = vsel %vm662_vm2, %v4717_v39, 0.0 }
 0x584   : > { %998 = vadd.xlane.f32.xlu0 %v997_v0  ;;  %v1318_v51 = vpop.xlane.xlu1 %1317 }
 0x585   : > { %4066 = vpow2.f32 %v1321_v50  ;;  %v1320_v10 = vsub.f32 %v4549_v31, %v1318_v51 }
 0x586   : > { %v4722_v52 = vpop.eup %4060 }
 0x587   : > { %v1323_v54 = vmul.f32 1.442695, %v1320_v10  ;;  %v1000_v18 = vsel %vm662_vm2, %v4722_v52, 0.0 }
 0x588   : > { %v1479_v57 = vpop.xlane.xlu0 %1478  ;;  %1001 = vadd.xlane.f32.xlu1 %v1000_v18 }
 0x589   : > { %4068 = vpow2.f32 %v1323_v54  ;;  %v1483_v25 = vsub.f32 %v4556_v37, %v1479_v57 }
 0x58a   : > { %v4727_v58 = vpop.eup %4062 }
 0x58b   : > { %v1485_v61 = vmul.f32 1.442695, %v1483_v25  ;;  %v1161_v63 = vsel %vm662_vm2, %v4727_v58, 0.0 }
 0x58c   : > { %1162 = vadd.xlane.f32.xlu0 %v1161_v63  ;;  %v1482_v46 = vpop.xlane.xlu1 %1481 }
 0x58d   : > { %4070 = vpow2.f32 %v1485_v61  ;;  %v1484_v31 = vsub.f32 %v4563_v43, %v1482_v46 }
 0x58e   : > { %v4732_v53 = vpop.eup %4064 }
 0x58f   : > { %v1487_v3 = vmul.f32 1.442695, %v1484_v31  ;;  %v1164_v5 = vsel %vm662_vm2, %v4732_v53, 0.0 }
 0x590   : > { %v1643_v11 = vpop.xlane.xlu0 %1642  ;;  %1165 = vadd.xlane.f32.xlu1 %v1164_v5 }
 0x591   : > { %4072 = vpow2.f32 %v1487_v3  ;;  %v1647_v37 = vsub.f32 %v4570_v49, %v1643_v11 }
 0x592   : > { %v4737_v14 = vpop.eup %4066 }
 0x593   : > { %v1649_v15 = vmul.f32 1.442695, %v1647_v37  ;;  %v1325_v2 = vsel %vm662_vm2, %v4737_v14, 0.0 }
 0x594   : > { %1326 = vadd.xlane.f32.xlu0 %v1325_v2  ;;  %v1646_v22 = vpop.xlane.xlu1 %1645 }
 0x595   : > { %4074 = vpow2.f32 %v1649_v15  ;;  %v1648_v43 = vsub.f32 %v4577_v56, %v1646_v22 }
 0x596   : > { %v4742_v23 = vpop.eup %4068 }
 0x597   : > { %v1651_v24 = vmul.f32 1.442695, %v1648_v43  ;;  %v1328_v26 = vsel %vm662_vm2, %v4742_v23, 0.0 }
 0x598   : > { %v1807_v27 = vpop.xlane.xlu0 %1806  ;;  %1329 = vadd.xlane.f32.xlu1 %v1328_v26  ;;  %v3435_v26 = vld [vmem:[%s5172_s6 + $0x10] sm:$0xff] }
 0x599   : > { %4076 = vpow2.f32 %v1651_v24  ;;  %v1811_v49 = vsub.f32 %v4584_v62, %v1807_v27 }
 0x59a   : > { %v4747_v28 = vpop.eup %4070 }
 0x59b   : > { %v1813_v29 = vmul.f32 1.442695, %v1811_v49  ;;  %v1489_v30 = vsel %vm662_vm2, %v4747_v28, 0.0 }
 0x59c   : > { %v850_v32 = vpop.permute.xlu0 %849  ;;  %1490 = vadd.xlane.f32.xlu1 %v1489_v30  ;;  %v1810_v56 = vpop.xlane.xlu1 %1809 }
 0x59d   : > { %4078 = vpow2.f32 %v1813_v29  ;;  %v1812_v33 = vsub.f32 %v4591_v7, %v1810_v56  ;;  %3738 = vmatpush3.bf16.msra.mxu1 %v850_v32  ;;  %v815_v29 = vmul.f32 0.35355338, %v4533_v16 }
 0x59e   : > { %v4752_v38 = vpop.eup %4072  ;;  %3749 = vmatprep.subr.bf16.mxu1 %v4187_v4 }
 0x59f   : > { %v1815_v40 = vmul.f32 1.442695, %v1812_v33  ;;  %v1492_v62 = vsel %vm662_vm2, %v4752_v38, 0.0 }
 0x5a0   : > { %1493 = vadd.xlane.f32.xlu1 %v1492_v62  ;;  %v4773_v10 = vpop.permute.xlu0 %1177  ;;  %v4775_v54 = vpop.permute.xlu1 %1013 }
 0x5a1   : > { %4080 = vpow2.f32 %v1815_v40 }
 0x5a2   : > { %v4757_v42 = vpop.eup %4074 }
 0x5a3   : > { %v1653_v45 = vsel %vm662_vm2, %v4757_v42, 0.0 }
 0x5a4   : > { %1654 = vadd.xlane.f32.xlu0 %v1653_v45  ;;  %v4777_v18 = vpop.permute.xlu0 %1505  ;;  %v4779_v57 = vpop.permute.xlu1 %1341 }
 0x5a6   : > { %v4761_v36 = vpop.eup %4076 }
 0x5a7   : > { %v1656_v7 = vsel %vm662_vm2, %v4761_v36, 0.0 }
 0x5a8   : > { %1657 = vadd.xlane.f32.xlu1 %v1656_v7 }
 0x5aa   : > { %v4765_v55 = vpop.eup %4078 }
 0x5ab   : > { %v1817_v50 = vsel %vm662_vm2, %v4765_v55, 0.0 }
 0x5ac   : > { %1818 = vadd.xlane.f32.xlu1 %v1817_v50 }
 0x5ae   : > { %v4769_v0 = vpop.eup %4080 }
 0x5af   : > { %v1820_v51 = vsel %vm662_vm2, %v4769_v0, 0.0 }
 0x5b0   : > { %1821 = vadd.xlane.f32.xlu1 %v1820_v51 }
 0x5d5   : > { %v1971_v25 = vpop.xlane.xlu0 %1970  ;;  %v1974_v61 = vpop.xlane.xlu1 %1973 }
 0x5d6   : > { %v1975_v63 = vsub.f32 %v4606_v59, %v1971_v25  ;;  %v1976_v46 = vsub.f32 %v4608_v60, %v1974_v61  ;;  %v814_v59 = vmul.f32 0.35355338, %v4524_v8 }
 0x5d8   : > { %v1977_v31 = vmul.f32 1.442695, %v1975_v63  ;;  %v1979_v3 = vmul.f32 1.442695, %v1976_v46  ;;  %v4796_v49 = vadd.f32 %v3435_v26, %v814_v59 }
 0x5d9   : > { %v2135_v5 = vpop.xlane.xlu0 %2134  ;;  %v2138_v37 = vpop.xlane.xlu1 %2137 }
 0x5da   : > { %4082 = vpow2.f32 %v1977_v31  ;;  %v2139_v11 = vsub.f32 %v4620_v12, %v2135_v5  ;;  %v2140_v2 = vsub.f32 %v4622_v13, %v2138_v37  ;;  %v821_v56 = vsel %vm662_vm2, %v4796_v49, -inf }
 0x5db   : > { %4084 = vpow2.f32 %v1979_v3  ;;  %v4027_v3 = vld [vmem:[#allocation2 + $0x8] ss:$12 sps:$4 sm:$0xff]  }
 0x5dc   : > { %v2141_v15 = vmul.f32 1.442695, %v2139_v11  ;;  %v2143_v43 = vmul.f32 1.442695, %v2140_v2  ;;  %v4028_v2 = vld [vmem:[#allocation2 + $0x8] ss:$12 sps:$4 sm:$0xff]  }
 0x5dd   : > { %v2299_v22 = vpop.xlane.xlu0 %2298  ;;  %v2302_v33 = vpop.xlane.xlu1 %2301 }
 0x5de   : > { %4086 = vpow2.f32 %v2141_v15  ;;  %v2303_v24 = vsub.f32 %v4630_v19, %v2299_v22  ;;  %v3436_v19 = vld [vmem:[%s5172_s6 + $0x18] sm:$0xff]  ;;  %v2304_v37 = vsub.f32 %v4632_v20, %v2302_v33 }
 0x5df   : > { %4088 = vpow2.f32 %v2143_v43  ;;  %v4810_v16 = vadd.f32 %v3436_v19, %v815_v29 }
 0x5e0   : > { %v2305_v60 = vmul.f32 1.442695, %v2303_v24  ;;  %v2307_v22 = vmul.f32 1.442695, %v2304_v37 }
 0x5e1   : > { %v2463_v40 = vpop.xlane.xlu0 %2462  ;;  %v824_v62 = vsel %vm662_vm2, %v4810_v16, -inf  ;;  %v2466_v7 = vpop.xlane.xlu1 %2465 }
 0x5e2   : > { %4090 = vpow2.f32 %v2305_v60  ;;  %v2468_v43 = vsub.f32 %v4650_v35, %v2466_v7  ;;  %v2467_v20 = vsub.f32 %v4648_v34, %v2463_v40 }
 0x5e4   : > { %v2471_v60 = vmul.f32 1.442695, %v2468_v43  ;;  %v2469_v19 = vmul.f32 1.442695, %v2467_v20 }
 0x5e5   : > { %v2627_v25 = vpop.xlane.xlu0 %2626  ;;  %v4822_v63 = vpop.xlane.xlu1 %2629 }
 0x5e6   : > { %v2631_v29 = vsub.f32 %v4662_v47, %v2627_v25 }
 0x5e7   : > { %v4790_v27 = vpop.eup %4082 }
 0x5e8   : > { %v4792_v12 = vpop.eup %4084  ;;  %v1981_v13 = vsel %vm662_vm2, %v4790_v27, 0.0  ;;  %v2633_v35 = vmul.f32 1.442695, %v2631_v29 }
 0x5e9   : > { %1982 = vadd.xlane.f32.xlu0 %v1981_v13  ;;  %v1984_v8 = vsel %vm662_vm2, %v4792_v12, 0.0  ;;  %v4824_v46 = vpop.xlane.xlu0 %2790  ;;  %v4826_v31 = vpop.xlane.xlu1 %2793 }
 0x5ea   : > { %1985 = vadd.xlane.f32.xlu1 %v1984_v8 }
 0x5eb   : > { %v4804_v30 = vpop.eup %4086 }
 0x5ec   : > { %v2145_v32 = vsel %vm662_vm2, %v4804_v30, 0.0  ;;  %v4814_v45 = vpop.eup %4088 }
 0x5ed   : > { %822 = vmax.xlane.f32.xlu0 %v821_v56  ;;  %v2148_v50 = vsel %vm662_vm2, %v4814_v45, 0.0  ;;  %v4828_v5 = vpop.xlane.xlu0 %2954  ;;  %v4831_v11 = vpop.xlane.xlu1 %2957 }
 0x5ee   : > { %2146 = vadd.xlane.f32.xlu1 %v2145_v32 }
 0x5ef   : > { %v4818_v51 = vpop.eup %4090 }
 0x5f0   : > { %v2309_v61 = vsel %vm662_vm2, %v4818_v51, 0.0 }
 0x5f1   : > { %v4834_v15 = vpop.xlane.xlu0 %3118  ;;  %v4838_v24 = vpop.xlane.xlu1 %3121 }
 0x5f2   : > { %825 = vmax.xlane.f32.xlu1 %v824_v62 }
 0x5f6   : > { %2149 = vadd.xlane.f32.xlu1 %v2148_v50 }
 0x5fa   : > { %2310 = vadd.xlane.f32.xlu1 %v2309_v61 }
 0x603   : > { %1669 = vrot.lane.b32.xlu0 %v4027_v3, %s4195_s11 }
 0x60b   : > { %1833 = vrot.lane.b32.xlu1 %v4028_v2, %s4196_s12 }
 0x60d   : > { %v999_v59 = vpop.xlane.xlu0 %998 }
 0x60e   : > { %4092 = vrcp.f32 %v999_v59 }
 0x60f   : > { %4094 = vpow2.f32 %v2307_v22 }
 0x611   : > { %v1002_v26 = vpop.xlane.xlu1 %1001 }
 0x612   : > { %4096 = vrcp.f32 %v1002_v26 }
 0x613   : > { %4098 = vpow2.f32 %v2471_v60 }
 0x615   : > { %v1163_v13 = vpop.xlane.xlu0 %1162 }
 0x616   : > { %4100 = vrcp.f32 %v1163_v13 }
 0x619   : > { %v1166_v8 = vpop.xlane.xlu1 %1165 }
 0x61a   : > { %4102 = vrcp.f32 %v1166_v8 }
 0x61b   : > { %v4093_v32 = vpop.eup %4092  ;;  %4104 = vpow2.f32 %v2469_v19 }
 0x61c   : > { %v4842_v33 = vpop.eup %4094  ;;  %v4845_v7 = vmul.f32 %v4093_v32, %v4717_v39 }
 0x61d   : > { %v1327_v56 = vpop.xlane.xlu0 %1326  ;;  %v2312_v47 = vsel %vm662_vm2, %v4842_v33, 0.0 }
 0x61e   : > { %4106 = vrcp.f32 %v1327_v56 }
 0x61f   : > { %v4097_v62 = vpop.eup %4096  ;;  %4108 = vpow2.f32 %v2633_v35 }
 0x620   : > { %v4848_v50 = vmul.f32 %v4097_v62, %v4722_v52  ;;  %v4852_v40 = vpop.eup %4098 }
 0x621   : > { %v1330_v34 = vpop.xlane.xlu1 %1329  ;;  %v2476_v39 = vsel %vm662_vm2, %v4852_v40, 0.0 }
 0x622   : > { %4110 = vrcp.f32 %v1330_v34  ;;  %2313 = vadd.xlane.f32.xlu0 %v2312_v47  ;;  %v1007_v25 = vpack.c.bf16 %v4848_v50, %v4845_v7 }
 0x623   : > { %v4101_v61 = vpop.eup %4100 }
 0x624   : > { %v4859_v37 = vmul.f32 %v4101_v61, %v4727_v58 }
 0x625   : > { %v1491_v3 = vpop.xlane.xlu1 %1490 }
 0x626   : > { %2477 = vadd.xlane.f32.xlu0 %v2476_v39  ;;  %4112 = vrcp.f32 %v1491_v3 }
 0x627   : > { %v4103_v52 = vpop.eup %4102 }
 0x628   : > { %v4862_v2 = vmul.f32 %v4103_v52, %v4732_v53  ;;  %v4866_v59 = vpop.eup %4104 }
 0x629   : > { %v1494_v22 = vpop.xlane.xlu1 %1493  ;;  %v2473_v13 = vsel %vm662_vm2, %v4866_v59, 0.0 }
 0x62a   : > { %4114 = vrcp.f32 %v1494_v22  ;;  %v1171_v43 = vpack.c.bf16 %v4862_v2, %v4859_v37 }
 0x62b   : > { %v4107_v60 = vpop.eup %4106 }
 0x62c   : > { %v4868_v26 = vpop.eup %4108  ;;  %v4873_v58 = vmul.f32 %v4107_v60, %v4737_v14 }
 0x62d   : > { %v2637_v8 = vsel %vm662_vm2, %v4868_v26, 0.0  ;;  %v4900_v52 = vpop.xlane.xlu0 %1654 }
 0x62f   : > { %v4111_v20 = vpop.eup %4110  ;;  %2474 = vadd.xlane.f32.xlu1 %v2473_v13 }
 0x630   : > { %v4876_v53 = vmul.f32 %v4111_v20, %v4742_v23 }
 0x631   : > { %v4878_v29 = vpop.xlane.xlu1 %1657 }
 0x632   : > { %v1335_v19 = vpack.c.bf16 %v4876_v53, %v4873_v58 }
 0x633   : > { %2638 = vadd.xlane.f32.xlu1 %v2637_v8  ;;  %v4113_v32 = vpop.eup %4112 }
 0x634   : > { %v4885_v62 = vmul.f32 %v4113_v32, %v4747_v28 }
 0x635   : > { %v1819_v35 = vpop.xlane.xlu1 %1818 }
 0x636   : > { %4116 = vrcp.f32 %v1819_v35 }
 0x637   : > { %v4115_v56 = vpop.eup %4114 }
 0x638   : > { %v4888_v14 = vmul.f32 %v4115_v56, %v4752_v38 }
 0x639   : > { %v1822_v23 = vpop.xlane.xlu1 %1821 }
 0x63a   : > { %4118 = vrcp.f32 %v1822_v23  ;;  %v1499_v34 = vpack.c.bf16 %v4888_v14, %v4885_v62 }
 0x643   : > { %v4117_v47 = vpop.eup %4116 }
 0x644   : > { %v4893_v3 = vmul.f32 %v4117_v47, %v4765_v55 }
 0x647   : > { %v4119_v61 = vpop.eup %4118 }
 0x648   : > { %v4896_v39 = vmul.f32 %v4119_v61, %v4769_v0 }
 0x64a   : > { %v1827_v28 = vpack.c.bf16 %v4896_v39, %v4893_v3 }
 0x672   : > { %v1983_v38 = vpop.xlane.xlu0 %1982 }
 0x673   : > { %4120 = vrcp.f32 %v1983_v38  ;;  %v1986_v22 = vpop.xlane.xlu1 %1985 }
 0x674   : > { %4122 = vrcp.f32 %v1986_v22 }
 0x676   : > { %v823_v60 = vpop.xlane.xlu0 %822 }
 0x677   : > { %v2147_v13 = vpop.xlane.xlu1 %2146  ;;  %v827_v20 = vsub.f32 %v4796_v49, %v823_v60 }
 0x679   : > { %v829_v8 = vmul.f32 1.442695, %v827_v20 }
 0x67b   : > { %4124 = vpow2.f32 %v829_v8  ;;  %v826_v55 = vpop.xlane.xlu1 %825 }
 0x67c   : > { %v828_v32 = vsub.f32 %v4810_v16, %v826_v55  ;;  %4126 = vrcp.f32 %v2147_v13  ;;  %v4029_v55 = vld [vmem:[#allocation2 + $0x8] ss:$12 sps:$4 sm:$0xff]  }
 0x67e   : > { %v831_v0 = vmul.f32 1.442695, %v828_v32  ;;  %v4030_v32 = vld [vmem:[#allocation2 + $0x8] ss:$12 sps:$4 sm:$0xff]  }
 0x67f   : > { %v2150_v35 = vpop.xlane.xlu1 %2149 }
 0x680   : > { %v4121_v56 = vpop.eup %4120  ;;  %4128 = vpow2.f32 %v831_v0  ;;  %v2632_v0 = vsub.f32 %v4664_v48, %v4822_v63 }
 0x681   : > { %v4123_v23 = vpop.eup %4122  ;;  %4130 = vrcp.f32 %v2150_v35  ;;  %v4905_v47 = vmul.f32 %v4121_v56, %v4790_v27  ;;  %v4932_v35 = vpop.permute.xlu0 %1669 }
 0x682   : > { %v4908_v61 = vmul.f32 %v4123_v23, %v4792_v12  ;;  %v2795_v23 = vsub.f32 %v4672_v41, %v4824_v46 }
 0x683   : > { %v2311_v56 = vpop.xlane.xlu1 %2310 }
 0x684   : > { %v1991_v49 = vpack.c.bf16 %v4908_v61, %v4905_v47  ;;  %4132 = vrcp.f32 %v2311_v56 }
 0x688   : > { %v4912_v38 = vpop.eup %4124 }
 0x689   : > { %v833_v16 = vsel %vm662_vm2, %v4912_v38, 0.0  ;;  %v4127_v22 = vpop.eup %4126 }
 0x68a   : > { %834 = vadd.xlane.f32.xlu0 %v833_v16  ;;  %v4921_v12 = vmul.f32 %v4127_v22, %v4804_v30  ;;  %v2635_v30 = vmul.f32 1.442695, %v2632_v0 }
 0x68d   : > { %v4916_v60 = vpop.eup %4128 }
 0x68e   : > { %v4131_v13 = vpop.eup %4130  ;;  %v836_v27 = vsel %vm662_vm2, %v4916_v60, 0.0 }
 0x68f   : > { %837 = vadd.xlane.f32.xlu1 %v836_v27  ;;  %v4924_v20 = vmul.f32 %v4131_v13, %v4814_v45  ;;  %v2796_v45 = vsub.f32 %v4674_v44, %v4826_v31  ;;  %v2797_v13 = vmul.f32 1.442695, %v2795_v23  ;;  %v2959_v27 = vsub.f32 %v4690_v6, %v4828_v5 }
 0x690   : > { %v2960_v23 = vsub.f32 %v4692_v9, %v4831_v11  ;;  %v1834_v11 = vpop.permute.xlu1 %1833 }
 0x691   : > { %v2155_v8 = vpack.c.bf16 %v4924_v20, %v4921_v12  ;;  %v2799_v22 = vmul.f32 1.442695, %v2796_v45  ;;  %v2961_v48 = vmul.f32 1.442695, %v2959_v27  ;;  %v4133_v63 = vpop.eup %4132  ;;  %v4032_v45 = vld [vmem:[#allocation2 + $0x8] ss:$12 sps:$4 sm:$0xff]  }
 0x692   : > { %v4941_v44 = vmul.f32 %v4133_v63, %v4818_v51 }
 0x6a0   : > { %2161 = vrot.lane.b32.xlu1 %v4029_v55, %s4198_s14  ;;  %1997 = vrot.lane.b32.xlu0 %v4030_v32, %s4197_s13 }
 0x6ab   : > { %v2314_v16 = vpop.xlane.xlu0 %2313 }
 0x6ac   : > { %4134 = vrcp.f32 %v2314_v16  ;;  %v2963_v16 = vmul.f32 1.442695, %v2960_v23 }
 0x6ad   : > { %4136 = vpow2.f32 %v2635_v30  ;;  %v4031_v30 = vld [vmem:[#allocation2 + $0x8] ss:$12 sps:$4 sm:$0xff]  }
 0x6ae   : > { %4138 = vpow2.f32 %v2799_v22  ;;  %v3124_v22 = vsub.f32 %v4706_v21, %v4838_v24 }
 0x6af   : > { %4140 = vpow2.f32 %v2797_v13  ;;  %v3123_v13 = vsub.f32 %v4704_v17, %v4834_v15  ;;  %v4033_v15 = vld [vmem:[#allocation2 + $0x8] ss:$12 sps:$4 sm:$0xff]  }
 0x6b0   : > { %4142 = vpow2.f32 %v2961_v48  ;;  %v3127_v27 = vmul.f32 1.442695, %v3124_v22 }
 0x6b1   : > { %4144 = vpow2.f32 %v2963_v16  ;;  %v3125_v48 = vmul.f32 1.442695, %v3123_v13  ;;  %v4036_v16 = vld [vmem:[#allocation2 + $0x8] ss:$12 sps:$4 sm:$0xff]  }
 0x6b2   : > { %4146 = vpow2.f32 %v3127_v27 }
 0x6b3   : > { %4148 = vpow2.f32 %v3125_v48 }
 0x6b8   : > { %v2475_v24 = vpop.xlane.xlu1 %2474 }
 0x6b9   : > { %v4135_v55 = vpop.eup %4134 }
 0x6ba   : > { %v4944_v31 = vmul.f32 %v4135_v55, %v4842_v33  ;;  %v4946_v41 = vpop.eup %4136 }
 0x6bb   : > { %v2640_v6 = vsel %vm662_vm2, %v4946_v41, 0.0  ;;  %v4952_v5 = vpop.eup %4138 }
 0x6bc   : > { %v2319_v46 = vpack.c.bf16 %v4944_v31, %v4941_v44  ;;  %v4954_v32 = vpop.eup %4140  ;;  %v2804_v51 = vsel %vm662_vm2, %v4952_v5, 0.0 }
 0x6bd   : > { %v2801_v33 = vsel %vm662_vm2, %v4954_v32, 0.0  ;;  %v4960_v0 = vpop.eup %4142 }
 0x6be   : > { %v2965_v56 = vsel %vm662_vm2, %v4960_v0, 0.0  ;;  %v4972_v63 = vpop.eup %4144 }
 0x6bf   : > { %2641 = vadd.xlane.f32.xlu0 %v2640_v6  ;;  %v2968_v55 = vsel %vm662_vm2, %v4972_v63, 0.0  ;;  %v4976_v6 = vpop.eup %4146 }
 0x6c0   : > { %v4978_v9 = vpop.eup %4148  ;;  %v3132_v21 = vsel %vm662_vm2, %v4976_v6, 0.0 }
 0x6c1   : > { %v3129_v17 = vsel %vm662_vm2, %v4978_v9, 0.0 }
 0x6c3   : > { %2805 = vadd.xlane.f32.xlu0 %v2804_v51  ;;  %v2478_v51 = vpop.xlane.xlu0 %2477 }
 0x6c4   : > { %2802 = vadd.xlane.f32.xlu1 %v2801_v33  ;;  %v4034_v33 = vld [vmem:[#allocation2 + $0x8] ss:$12 sps:$4 sm:$0xff]  }
 0x6c8   : > { %2966 = vadd.xlane.f32.xlu1 %v2965_v56  ;;  %v4986_v56 = vpop.xlane.xlu1 %2638 }
 0x6d9   : > { %2489 = vrot.lane.b32.xlu1 %v4031_v30, %s4200_s16  ;;  %2325 = vrot.lane.b32.xlu0 %v4032_v45, %s4199_s15  ;;  %v4035_v45 = vld [vmem:[#allocation2 + $0x8] ss:$12 sps:$4 sm:$0xff]  }
 0x6f8   : > { %2969 = vadd.xlane.f32.xlu0 %v2968_v55 }
 0x6fc   : > { %3133 = vadd.xlane.f32.xlu0 %v3132_v21 }
 0x6fd   : > { %3130 = vadd.xlane.f32.xlu1 %v3129_v17 }
 0x70e   : > { %2817 = vrot.lane.b32.xlu1 %v4033_v15, %s4202_s18 }
 0x712   : > { %2653 = vrot.lane.b32.xlu0 %v4034_v33, %s4201_s17 }
 0x713   : > { %v835_v30 = vpop.xlane.xlu0 %834 }
 0x714   : > { %4150 = vrcp.f32 %v835_v30 }
 0x716   : > { %2981 = vrot.lane.b32.xlu0 %v4035_v45, %s4203_s19 }
 0x717   : > { %v1998_v50 = vpop.permute.xlu0 %1997 }
 0x718   : > { %v838_v23 = vpop.xlane.xlu1 %837 }
 0x719   : > { %4152 = vrcp.f32 %v838_v23 }
 0x71a   : > { %3145 = vrot.lane.b32.xlu0 %v4036_v16, %s4204_s20  ;;  %4154 = vrcp.f32 %v4878_v29 }
 0x71b   : > { %4156 = vrcp.f32 %v4900_v52 }
 0x71c   : > { %4158 = vrcp.f32 %v2475_v24 }
 0x71d   : > { %4160 = vrcp.f32 %v2478_v51 }
 0x721   : > { %v4151_v22 = vpop.eup %4150 }
 0x722   : > { %v841_v27 = vmul.f32 %v4151_v22, %v4912_v38 }
 0x726   : > { %v4153_v13 = vpop.eup %4152 }
 0x727   : > { %v842_v48 = vmul.f32 %v4153_v13, %v4916_v60 }
 0x729   : > { %v843_v55 = vpack.c.bf16 %v842_v48, %v841_v27 }
 0x72b   : > { %3740 = vmatmul.mubr.msk.bf16.vlgmr.msra.gmra.mxu1 %vm662_vm2, %v843_v55 }
 0x72c   : > { %3750 = vmatpush3.bf16.msra.mxu1 %v4775_v54  ;;  %3751 = vmatprep.mubr.msk.bf16.mxu1 %vm4189_vm0, %v4187_v4 }
 0x72d   : > { %3761 = vmatprep.subr.bf16.mxu1 %v4187_v4 }
 0x733   : > { %3752 = vmatmul.mubr.msk.bf16.vlgmr.msra.gmra.mxu1 %vm662_vm2, %v1007_v25 }
 0x734   : > { %3762 = vmatpush3.bf16.msra.mxu1 %v4773_v10  ;;  %3763 = vmatprep.mubr.msk.bf16.mxu1 %vm4189_vm0, %v4187_v4  ;;  %v4155_v10 = vpop.eup %4154 }
 0x735   : > { %3773 = vmatprep.subr.bf16.mxu1 %v4187_v4  ;;  %v4157_v54 = vpop.eup %4156 }
 0x736   : > { %v4159_v58 = vpop.eup %4158 }
 0x737   : > { %v4161_v29 = vpop.eup %4160 }
 0x738   : > { %v2482_v62 = vmul.f32 %v4161_v29, %v4852_v40 }
 0x73b   : > { %3764 = vmatmul.mubr.msk.bf16.vlgmr.msra.gmra.mxu1 %vm662_vm2, %v1171_v43 }
 0x73c   : > { %3774 = vmatpush3.bf16.msra.mxu1 %v4779_v57  ;;  %3775 = vmatprep.mubr.msk.bf16.mxu1 %vm4189_vm0, %v4187_v4  ;;  %v1661_v57 = vmul.f32 %v4157_v54, %v4757_v42 }
 0x73d   : > { %3785 = vmatprep.subr.bf16.mxu1 %v4187_v4 }
 0x743   : > { %3776 = vmatmul.mubr.msk.bf16.vlgmr.msra.gmra.mxu1 %vm662_vm2, %v1335_v19  ;;  %v2481_v19 = vmul.f32 %v4159_v58, %v4866_v59 }
 0x744   : > { %3786 = vmatpush3.bf16.msra.mxu1 %v4777_v18  ;;  %3787 = vmatprep.mubr.msk.bf16.mxu1 %vm4189_vm0, %v4187_v4  ;;  %v1662_v18 = vmul.f32 %v4155_v10, %v4761_v36  ;;  %v2162_v36 = vpop.permute.xlu1 %2161 }
 0x745   : > { %3797 = vmatprep.subr.bf16.mxu1 %v4187_v4  ;;  %v2483_v14 = vpack.c.bf16 %v2482_v62, %v2481_v19 }
 0x746   : > { %v1663_v7 = vpack.c.bf16 %v1662_v18, %v1661_v57 }
 0x748   : > { %v2642_v42 = vpop.xlane.xlu0 %2641 }
 0x749   : > { %4162 = vrcp.f32 %v2642_v42 }
 0x74a   : > { %4164 = vrcp.f32 %v4986_v56 }
 0x74b   : > { %3788 = vmatmul.mubr.msk.bf16.vlgmr.msra.gmra.mxu1 %vm662_vm2, %v1499_v34 }
 0x74c   : > { %3798 = vmatpush3.bf16.msra.mxu1 %v4932_v35  ;;  %3799 = vmatprep.mubr.msk.bf16.mxu1 %vm4189_vm0, %v4187_v4  ;;  %v2806_v25 = vpop.xlane.xlu0 %2805 }
 0x74d   : > { %3809 = vmatprep.subr.bf16.mxu1 %v4187_v4  ;;  %v2803_v37 = vpop.xlane.xlu1 %2802  ;;  %4166 = vrcp.f32 %v2806_v25 }
 0x74e   : > { %4168 = vrcp.f32 %v2803_v37 }
 0x750   : > { %v2326_v2 = vpop.permute.xlu0 %2325 }
 0x751   : > { %v2967_v43 = vpop.xlane.xlu1 %2966 }
 0x753   : > { %3800 = vmatmul.mubr.msk.bf16.vlgmr.msra.gmra.mxu1 %vm662_vm2, %v1663_v7 }
 0x754   : > { %3810 = vmatpush3.bf16.msra.mxu1 %v1834_v11  ;;  %3811 = vmatprep.mubr.msk.bf16.mxu1 %vm4189_vm0, %v4187_v4 }
 0x755   : > { %3821 = vmatprep.subr.bf16.mxu1 %v4187_v4  ;;  %v2490_v53 = vpop.permute.xlu1 %2489 }
 0x756   : > { %v4163_v3 = vpop.eup %4162 }
 0x757   : > { %v2646_v52 = vmul.f32 %v4163_v3, %v4946_v41 }
 0x75b   : > { %3812 = vmatmul.mubr.msk.bf16.vlgmr.msra.gmra.mxu1 %vm662_vm2, %v1827_v28  ;;  %v4165_v28 = vpop.eup %4164 }
 0x75c   : > { %3822 = vmatpush3.bf16.msra.mxu1 %v1998_v50  ;;  %3823 = vmatprep.mubr.msk.bf16.mxu1 %vm4189_vm0, %v4187_v4  ;;  %v2645_v47 = vmul.f32 %v4165_v28, %v4868_v26  ;;  %v4167_v61 = vpop.eup %4166 }
 0x75d   : > { %3833 = vmatprep.subr.bf16.mxu1 %v4187_v4  ;;  %v4169_v38 = vpop.eup %4168  ;;  %v2810_v26 = vmul.f32 %v4167_v61, %v4952_v5 }
 0x75e   : > { %v2809_v12 = vmul.f32 %v4169_v38, %v4954_v32 }
 0x760   : > { %v2811_v20 = vpack.c.bf16 %v2810_v26, %v2809_v12 }
 0x763   : > { %3824 = vmatmul.mubr.msk.bf16.vlgmr.msra.gmra.mxu1 %vm662_vm2, %v1991_v49  ;;  %v2647_v49 = vpack.c.bf16 %v2646_v52, %v2645_v47 }
 0x764   : > { %3834 = vmatpush3.bf16.msra.mxu1 %v2162_v36  ;;  %3835 = vmatprep.mubr.msk.bf16.mxu1 %vm4189_vm0, %v4187_v4 }
 0x765   : > { %3845 = vmatprep.subr.bf16.mxu1 %v4187_v4 }
 0x76b   : > { %3836 = vmatmul.mubr.msk.bf16.vlgmr.msra.gmra.mxu1 %vm662_vm2, %v2155_v8 }
 0x76c   : > { %3846 = vmatpush3.bf16.msra.mxu1 %v2326_v2  ;;  %3847 = vmatprep.mubr.msk.bf16.mxu1 %vm4189_vm0, %v4187_v4 }
 0x76d   : > { %3857 = vmatprep.subr.bf16.mxu1 %v4187_v4 }
 0x773   : > { %3848 = vmatmul.mubr.msk.bf16.vlgmr.msra.gmra.mxu1 %vm662_vm2, %v2319_v46 }
 0x774   : > { %3858 = vmatpush3.bf16.msra.mxu1 %v2490_v53  ;;  %3859 = vmatprep.mubr.msk.bf16.mxu1 %vm4189_vm0, %v4187_v4 }
 0x775   : > { %3869 = vmatprep.subr.bf16.mxu1 %v4187_v4 }
 0x77b   : > { %3860 = vmatmul.mubr.msk.bf16.vlgmr.msra.gmra.mxu1 %vm662_vm2, %v2483_v14 }
 0x77c   : > { %3871 = vmatprep.mubr.msk.bf16.mxu1 %vm4189_vm0, %v4187_v4 }
 0x781   : > { %v2970_v34 = vpop.xlane.xlu0 %2969 }
 0x782   : > { %4170 = vrcp.f32 %v2970_v34 }
 0x783   : > { %4172 = vrcp.f32 %v2967_v43 }
 0x785   : > { %v3134_v39 = vpop.xlane.xlu0 %3133 }
 0x786   : > { %v3131_v59 = vpop.xlane.xlu1 %3130  ;;  %4174 = vrcp.f32 %v3134_v39 }
 0x787   : > { %4176 = vrcp.f32 %v3131_v59 }
 0x789   : > { %v2654_v40 = vpop.permute.xlu0 %2653 }
 0x78a   : > { %3870 = vmatpush3.bf16.msra.mxu1 %v2654_v40  ;;  %v2818_v60 = vpop.permute.xlu1 %2817 }
 0x78b   : > { %3881 = vmatprep.subr.bf16.mxu1 %v4187_v4 }
 0x78d   : > { %3872 = vmatmul.mubr.msk.bf16.vlgmr.msra.gmra.mxu1 %vm662_vm2, %v2647_v49  ;;  %v2982_v35 = vpop.permute.xlu0 %2981 }
 0x78e   : > { %3882 = vmatpush3.bf16.msra.mxu1 %v2818_v60  ;;  %3883 = vmatprep.mubr.msk.bf16.mxu1 %vm4189_vm0, %v4187_v4 }
 0x78f   : > { %3893 = vmatprep.subr.bf16.mxu1 %v4187_v4  ;;  %v4171_v8 = vpop.eup %4170 }
 0x790   : > { %v4173_v44 = vpop.eup %4172  ;;  %v2974_v31 = vmul.f32 %v4171_v8, %v4972_v63 }
 0x791   : > { %v2973_v41 = vmul.f32 %v4173_v44, %v4960_v0  ;;  %v3146_v5 = vpop.permute.xlu0 %3145 }
 0x793   : > { %v4175_v46 = vpop.eup %4174  ;;  %v2975_v32 = vpack.c.bf16 %v2974_v31, %v2973_v41 }
 0x794   : > { %v4177_v21 = vpop.eup %4176  ;;  %v3138_v11 = vmul.f32 %v4175_v46, %v4976_v6 }
 0x795   : > { %3884 = vmatmul.mubr.msk.bf16.vlgmr.msra.gmra.mxu1 %vm662_vm2, %v2811_v20  ;;  %v3137_v17 = vmul.f32 %v4177_v21, %v4978_v9 }
 0x796   : > { %3894 = vmatpush3.bf16.msra.mxu1 %v2982_v35  ;;  %3895 = vmatprep.mubr.msk.bf16.mxu1 %vm4189_vm0, %v4187_v4 }
 0x797   : > { %3905 = vmatprep.subr.bf16.mxu1 %v4187_v4  ;;  %v3139_v15 = vpack.c.bf16 %v3138_v11, %v3137_v17 }
 0x79d   : > { %3896 = vmatmul.mubr.msk.bf16.vlgmr.msra.gmra.mxu1 %vm662_vm2, %v2975_v32 }
 0x79e   : > { %3906 = vmatpush3.bf16.msra.mxu1 %v3146_v5  ;;  %3907 = vmatprep.mubr.msk.bf16.mxu1 %vm4189_vm0, %v4187_v4  ;;  %vm2876_vm0 = vcmask 913216  }
 0x7a5   : > { %3908 = vmatmul.mubr.msk.bf16.vlgmr.msra.gmra.mxu1 %vm662_vm2, %v3139_v15  ;;  %vm3204_vm2 = vcmask 1044416  }
 0x7eb   : > { %v889_v63 = vpop.f32.mrf.mxu1 }
 0x7ec   : > { %v3587_v24 = vpack.c.bf16 %v889_v63, %v889_v63 }
 0x7ed   : > { %v3741_v0 = vpop.f32.mrf.mxu1 }
 0x7ee   : > { %902 = vrot.lane.b32.xlu0 %v3587_v24, %s4204_s20 }
 0x7ef   : > { %v892_v51 = vpop.f32.mrf.mxu1 }
 0x7f0   : > { %v3588_v33 = vpack.c.bf16 %v892_v51, %v892_v51 }
 0x7f1   : > { %v3742_v56 = vpop.f32.mrf.mxu1 }
 0x7f2   : > { %904 = vrot.lane.b32.xlu0 %v3588_v33, %s4204_s20  ;;  %v4037_v33 = vld [vmem:[%s5170_s4 + $0x38] sm:$0xff]   ;;  %v4038_v56 = vld [vmem:[%s5170_s4 + $0x30] sm:$0xff]   ;;  %s5181_s20 = smov 104  }
 0x7f3   : > { %v1053_v30 = vpop.f32.mrf.mxu1  ;;  %3912 = vmatpush3.bf16.msra.mxu0 %v4037_v33  ;;  %v3567_v33 = vld [vmem:[%s5171_s5] ss:$0 sm:$0xff] }
 0x7f4   : > { %v3589_v45 = vpack.c.bf16 %v1053_v30, %v1053_v30  ;;  %3913 = vmatprep.subr.bf16.mxu0 %v4187_v4 }
 0x7f5   : > { %v3753_v23 = vpop.f32.mrf.mxu1 }
 0x7f6   : > { %1066 = vrot.lane.b32.xlu1 %v3589_v45, %s4203_s19 }
 0x7f7   : > { %v1056_v9 = vpop.f32.mrf.mxu1  ;;  %3914 = vmatpush3.bf16.msra.mxu0 %v4038_v56 }
 0x7f8   : > { %v3590_v6 = vpack.c.bf16 %v1056_v9, %v1056_v9  ;;  %3915 = vmatprep.subr.bf16.mxu0 %v4187_v4  ;;  %v4039_v9 = vld [vmem:[%s5170_s4 + $0x28] sm:$0xff]  }
 0x7f9   : > { %v3754_v16 = vpop.f32.mrf.mxu1 }
 0x7fa   : > { %1068 = vrot.lane.b32.xlu0 %v3590_v6, %s4203_s19 }
 0x7fb   : > { %v1217_v22 = vpop.f32.mrf.mxu1  ;;  %3916 = vmatpush3.bf16.msra.mxu0 %v4039_v9 }
 0x7fc   : > { %v3591_v13 = vpack.c.bf16 %v1217_v22, %v1217_v22  ;;  %3917 = vmatprep.subr.bf16.mxu0 %v4187_v4 }
 0x7fd   : > { %v3765_v27 = vpop.f32.mrf.mxu1 }
 0x7fe   : > { %1230 = vrot.lane.b32.xlu1 %v3591_v13, %s4202_s18  ;;  %v4040_v13 = vld [vmem:[%s5170_s4 + $0x20] sm:$0xff]  }
 0x7ff   : > { %v1220_v48 = vpop.f32.mrf.mxu1  ;;  %3918 = vmatpush3.bf16.msra.mxu0 %v4040_v13 }
 0x800   : > { %v3592_v55 = vpack.c.bf16 %v1220_v48, %v1220_v48  ;;  %3919 = vmatprep.subr.bf16.mxu0 %v4187_v4 }
 0x801   : > { %v3766_v10 = vpop.f32.mrf.mxu1 }
 0x802   : > { %1232 = vrot.lane.b32.xlu0 %v3592_v55, %s4202_s18  ;;  %v4041_v10 = vld [vmem:[%s5170_s4 + $0x18] sm:$0xff]  }
 0x803   : > { %v1381_v54 = vpop.f32.mrf.mxu1  ;;  %3920 = vmatpush3.bf16.msra.mxu0 %v4041_v10 }
 0x804   : > { %v3593_v18 = vpack.c.bf16 %v1381_v54, %v1381_v54  ;;  %3921 = vmatprep.subr.bf16.mxu0 %v4187_v4 }
 0x805   : > { %v3777_v57 = vpop.f32.mrf.mxu1 }
 0x806   : > { %1394 = vrot.lane.b32.xlu1 %v3593_v18, %s4201_s17 }
 0x807   : > { %v1384_v7 = vpop.f32.mrf.mxu1 }
 0x808   : > { %v3594_v50 = vpack.c.bf16 %v1384_v7, %v1384_v7  ;;  %v4042_v7 = vld [vmem:[%s5170_s4 + $0x10] sm:$0xff]  }
 0x809   : > { %v3778_v42 = vpop.f32.mrf.mxu1  ;;  %3922 = vmatpush3.bf16.msra.mxu0 %v4042_v7 }
 0x80a   : > { %1396 = vrot.lane.b32.xlu0 %v3594_v50, %s4201_s17  ;;  %3923 = vmatprep.subr.bf16.mxu0 %v4187_v4 }
 0x80b   : > { %v1545_v36 = vpop.f32.mrf.mxu1 }
 0x80c   : > { %v3595_v25 = vpack.c.bf16 %v1545_v36, %v1545_v36 }
 0x80d   : > { %v3789_v37 = vpop.f32.mrf.mxu1 }
 0x80e   : > { %1558 = vrot.lane.b32.xlu1 %v3595_v25, %s4200_s16  ;;  %v4043_v25 = vld [vmem:[%s5170_s4 + $0x8] sm:$0xff]  }
 0x80f   : > { %v1548_v2 = vpop.f32.mrf.mxu1  ;;  %3924 = vmatpush3.bf16.msra.mxu0 %v4043_v25 }
 0x810   : > { %v3596_v43 = vpack.c.bf16 %v1548_v2, %v1548_v2  ;;  %3925 = vmatprep.subr.bf16.mxu0 %v4187_v4 }
 0x811   : > { %v3790_v58 = vpop.f32.mrf.mxu1 }
 0x812   : > { %1560 = vrot.lane.b32.xlu0 %v3596_v43, %s4200_s16  ;;  %v4044_v43 = vld [vmem:[%s5170_s4] sm:$0xff]  }
 0x813   : > { %v1709_v53 = vpop.f32.mrf.mxu1  ;;  %3926 = vmatpush3.bf16.msra.mxu0 %v4044_v43 }
 0x814   : > { %v3597_v29 = vpack.c.bf16 %v1709_v53, %v1709_v53 }
 0x815   : > { %v3801_v19 = vpop.f32.mrf.mxu1 }
 0x816   : > { %1722 = vrot.lane.b32.xlu1 %v3597_v29, %s4199_s15 }
 0x817   : > { %v1712_v62 = vpop.f32.mrf.mxu1 }
 0x818   : > { %v3598_v14 = vpack.c.bf16 %v1712_v62, %v1712_v62 }
 0x819   : > { %v3802_v34 = vpop.f32.mrf.mxu1 }
 0x81a   : > { %1724 = vrot.lane.b32.xlu0 %v3598_v14, %s4199_s15 }
 0x81b   : > { %v1873_v3 = vpop.f32.mrf.mxu1 }
 0x81c   : > { %v3599_v39 = vpack.c.bf16 %v1873_v3, %v1873_v3 }
 0x81d   : > { %v3813_v28 = vpop.f32.mrf.mxu1 }
 0x81e   : > { %1886 = vrot.lane.b32.xlu1 %v3599_v39, %s4198_s14 }
 0x81f   : > { %v1876_v59 = vpop.f32.mrf.mxu1 }
 0x820   : > { %v3600_v52 = vpack.c.bf16 %v1876_v59, %v1876_v59 }
 0x821   : > { %v3814_v40 = vpop.f32.mrf.mxu1 }
 0x822   : > { %1888 = vrot.lane.b32.xlu0 %v3600_v52, %s4198_s14 }
 0x823   : > { %v2037_v47 = vpop.f32.mrf.mxu1 }
 0x824   : > { %v3601_v61 = vpack.c.bf16 %v2037_v47, %v2037_v47 }
 0x825   : > { %v3825_v49 = vpop.f32.mrf.mxu1 }
 0x826   : > { %2050 = vrot.lane.b32.xlu1 %v3601_v61, %s4197_s13 }
 0x827   : > { %v2040_v38 = vpop.f32.mrf.mxu1 }
 0x828   : > { %v3602_v60 = vpack.c.bf16 %v2040_v38, %v2040_v38 }
 0x829   : > { %v3826_v12 = vpop.f32.mrf.mxu1 }
 0x82a   : > { %2052 = vrot.lane.b32.xlu0 %v3602_v60, %s4197_s13  ;;  %s5184_s13 = sshll.u32 %s5186_s25, 4 }
 0x82b   : > { %v2201_v26 = vpop.f32.mrf.mxu1 }
 0x82c   : > { %v3603_v20 = vpack.c.bf16 %v2201_v26, %v2201_v26 }
 0x82d   : > { %v3837_v8 = vpop.f32.mrf.mxu1 }
 0x82e   : > { %2214 = vrot.lane.b32.xlu1 %v3603_v20, %s4196_s12 }
 0x82f   : > { %v2204_v35 = vpop.f32.mrf.mxu1 }
 0x830   : > { %v3604_v44 = vpack.c.bf16 %v2204_v35, %v2204_v35 }
 0x831   : > { %v3838_v31 = vpop.f32.mrf.mxu1 }
 0x832   : > { %2216 = vrot.lane.b32.xlu0 %v3604_v44, %s4196_s12 }
 0x833   : > { %v2365_v41 = vpop.f32.mrf.mxu1 }
 0x834   : > { %v3605_v46 = vpack.c.bf16 %v2365_v41, %v2365_v41 }
 0x835   : > { %v3849_v32 = vpop.f32.mrf.mxu1 }
 0x836   : > { %2378 = vrot.lane.b32.xlu1 %v3605_v46, %s4195_s11 }
 0x837   : > { %v2368_v21 = vpop.f32.mrf.mxu1 }
 0x838   : > { %v3606_v5 = vpack.c.bf16 %v2368_v21, %v2368_v21 }
 0x839   : > { %v3850_v17 = vpop.f32.mrf.mxu1 }
 0x83a   : > { %2380 = vrot.lane.b32.xlu0 %v3606_v5, %s4195_s11  ;;  %s278_s11 = scalar_lea.vmem %s5173_s7, %s5184_s13 }
 0x83b   : > { %v2529_v11 = vpop.f32.mrf.mxu1 }
 0x83c   : > { %v3607_v15 = vpack.c.bf16 %v2529_v11, %v2529_v11 }
 0x83d   : > { %v3861_v63 = vpop.f32.mrf.mxu1 }
 0x83e   : > { %2542 = vrot.lane.b32.xlu1 %v3607_v15, %s4194_s10 }
 0x83f   : > { %v2532_v24 = vpop.f32.mrf.mxu1 }
 0x840   : > { %v3608_v0 = vpack.c.bf16 %v2532_v24, %v2532_v24 }
 0x841   : > { %v3862_v51 = vpop.f32.mrf.mxu1 }
 0x842   : > { %2544 = vrot.lane.b32.xlu0 %v3608_v0, %s4194_s10 }
 0x84d   : > { %v2693_v30 = vpop.f32.mrf.mxu1 }
 0x84e   : > { %v3609_v45 = vpack.c.bf16 %v2693_v30, %v2693_v30 }
 0x84f   : > { %v3873_v23 = vpop.f32.mrf.mxu1 }
 0x850   : > { %2706 = vrot.lane.b32.xlu1 %v3609_v45, %s4193_s9  ;;  %v4178_v23 = vld [vmem:[%s4261_s29] sm:$0xff] }
 0x851   : > { %v2696_v6 = vpop.f32.mrf.mxu1 }
 0x852   : > { %v3610_v16 = vpack.c.bf16 %v2696_v6, %v2696_v6 }
 0x853   : > { %v3874_v22 = vpop.f32.mrf.mxu1 }
 0x854   : > { %2708 = vrot.lane.b32.xlu0 %v3610_v16, %s4193_s9 }
 0x855   : > { %v2857_v27 = vpop.f32.mrf.mxu1 }
 0x856   : > { %v3611_v48 = vpack.c.bf16 %v2857_v27, %v2857_v27 }
 0x857   : > { %v3885_v55 = vpop.f32.mrf.mxu1 }
 0x858   : > { %2870 = vrot.lane.b32.xlu1 %v3611_v48, %s5181_s20 }
 0x859   : > { %v2860_v54 = vpop.f32.mrf.mxu1 }
 0x85a   : > { %v3612_v18 = vpack.c.bf16 %v2860_v54, %v2860_v54 }
 0x85b   : > { %v3886_v57 = vpop.f32.mrf.mxu1 }
 0x85c   : > { %2872 = vrot.lane.b32.xlu0 %v3612_v18, %s5181_s20 }
 0x85d   : > { %v3021_v50 = vpop.f32.mrf.mxu1 }
 0x85e   : > { %v3613_v42 = vpack.c.bf16 %v3021_v50, %v3021_v50 }
 0x85f   : > { %v3897_v36 = vpop.f32.mrf.mxu1 }
 0x860   : > { %v903_v37 = vpop.permute.xlu0 %902  ;;  %3034 = vrot.lane.b32.xlu1 %v3613_v42, %s5182_s27 }
 0x861   : > { %909 = vst.msk [vmem:[#allocation3] sm:$0xf] %vm908_vm4, %v903_v37  ;;  %v3024_v2 = vpop.f32.mrf.mxu1 }
 0x862   : > { %v3614_v58 = vpack.c.bf16 %v3024_v2, %v3024_v2 }
 0x863   : > { %v3898_v53 = vpop.f32.mrf.mxu1 }
 0x864   : > { %v905_v29 = vpop.permute.xlu0 %904  ;;  %3036 = vrot.lane.b32.xlu0 %v3614_v58, %s5182_s27 }
 0x865   : > { %910 = vst.msk [vmem:[#allocation3 + $0x4] sm:$0xf] %vm908_vm4, %v905_v29  ;;  %v3185_v19 = vpop.f32.mrf.mxu1 }
 0x866   : > { %v3615_v62 = vpack.c.bf16 %v3185_v19, %v3185_v19 }
 0x867   : > { %v3909_v14 = vpop.f32.mrf.mxu1 }
 0x868   : > { %v1067_v34 = vpop.permute.xlu1 %1066  ;;  %3198 = vrot.lane.b32.xlu1 %v3615_v62, %s5183_s30 }
 0x869   : > { %1073 = vst.msk [vmem:[#allocation3] sm:$0xf] %vm1072_vm5, %v1067_v34  ;;  %v3188_v3 = vpop.f32.mrf.mxu1 }
 0x86a   : > { %v3616_v39 = vpack.c.bf16 %v3188_v3, %v3188_v3 }
 0x86b   : > { %v3910_v28 = vpop.f32.mrf.mxu1 }
 0x86c   : > { %v1069_v59 = vpop.permute.xlu0 %1068  ;;  %3200 = vrot.lane.b32.xlu0 %v3616_v39, %s5183_s30 }
 0x86d   : > { %1074 = vst.msk [vmem:[#allocation3 + $0x4] sm:$0xf] %vm1072_vm5, %v1069_v59 }
 0x870   : > { %v1231_v4 = vpop.permute.xlu1 %1230 }
 0x871   : > { %1237 = vst.msk [vmem:[#allocation3] sm:$0xf] %vm1236_vm6, %v1231_v4 }
 0x874   : > { %v1233_v52 = vpop.permute.xlu0 %1232 }
 0x875   : > { %1238 = vst.msk [vmem:[#allocation3 + $0x4] sm:$0xf] %vm1236_vm6, %v1233_v52 }
 0x878   : > { %v1395_v40 = vpop.permute.xlu1 %1394 }
 0x879   : > { %1401 = vst.msk [vmem:[#allocation3] sm:$0xf] %vm1400_vm7, %v1395_v40 }
 0x87c   : > { %v1397_v47 = vpop.permute.xlu0 %1396 }
 0x87d   : > { %1402 = vst.msk [vmem:[#allocation3 + $0x4] sm:$0xf] %vm1400_vm7, %v1397_v47 }
 0x880   : > { %v1559_v61 = vpop.permute.xlu1 %1558 }
 0x881   : > { %1565 = vst.msk [vmem:[#allocation3] sm:$0xf] %vm1564_vm8, %v1559_v61 }
 0x884   : > { %v1561_v49 = vpop.permute.xlu0 %1560 }
 0x885   : > { %1566 = vst.msk [vmem:[#allocation3 + $0x4] sm:$0xf] %vm1564_vm8, %v1561_v49 }
 0x888   : > { %v1723_v38 = vpop.permute.xlu1 %1722 }
 0x889   : > { %1729 = vst.msk [vmem:[#allocation3] sm:$0xf] %vm1728_vm9, %v1723_v38 }
 0x88c   : > { %v1725_v60 = vpop.permute.xlu0 %1724 }
 0x88d   : > { %1730 = vst.msk [vmem:[#allocation3 + $0x4] sm:$0xf] %vm1728_vm9, %v1725_v60 }
 0x890   : > { %v1887_v12 = vpop.permute.xlu1 %1886 }
 0x891   : > { %1893 = vst.msk [vmem:[#allocation3] sm:$0xf] %vm1892_vm10, %v1887_v12 }
 0x894   : > { %v1889_v26 = vpop.permute.xlu0 %1888 }
 0x895   : > { %1894 = vst.msk [vmem:[#allocation3 + $0x4] sm:$0xf] %vm1892_vm10, %v1889_v26 }
 0x898   : > { %v2051_v20 = vpop.permute.xlu1 %2050 }
 0x899   : > { %2057 = vst.msk [vmem:[#allocation3] sm:$0xf] %vm2056_vm11, %v2051_v20 }
 0x89c   : > { %v2053_v8 = vpop.permute.xlu0 %2052 }
 0x89d   : > { %2058 = vst.msk [vmem:[#allocation3 + $0x4] sm:$0xf] %vm2056_vm11, %v2053_v8 }
 0x8a0   : > { %v2215_v35 = vpop.permute.xlu1 %2214 }
 0x8a1   : > { %2221 = vst.msk [vmem:[#allocation3] sm:$0xf] %vm2220_vm12, %v2215_v35 }
 0x8a4   : > { %v2217_v44 = vpop.permute.xlu0 %2216 }
 0x8a5   : > { %2222 = vst.msk [vmem:[#allocation3 + $0x4] sm:$0xf] %vm2220_vm12, %v2217_v44 }
 0x8a8   : > { %v2379_v31 = vpop.permute.xlu1 %2378 }
 0x8a9   : > { %2385 = vst.msk [vmem:[#allocation3] sm:$0xf] %vm2384_vm13, %v2379_v31 }
 0x8ac   : > { %v2381_v41 = vpop.permute.xlu0 %2380 }
 0x8ad   : > { %2386 = vst.msk [vmem:[#allocation3 + $0x4] sm:$0xf] %vm2384_vm13, %v2381_v41 }
 0x8b0   : > { %v2543_v46 = vpop.permute.xlu1 %2542 }
 0x8b1   : > { %2549 = vst.msk [vmem:[#allocation3] sm:$0xf] %vm2548_vm14, %v2543_v46 }
 0x8b4   : > { %v2545_v32 = vpop.permute.xlu0 %2544 }
 0x8b5   : > { %2550 = vst.msk [vmem:[#allocation3 + $0x4] sm:$0xf] %vm2548_vm14, %v2545_v32 }
 0x8c2   : > { %v2707_v21 = vpop.permute.xlu1 %2706 }
 0x8c3   : > { %2713 = vst.msk [vmem:[#allocation3] sm:$0xf] %vm2712_vm15, %v2707_v21 }
 0x8c6   : > { %v2709_v5 = vpop.permute.xlu0 %2708 }
 0x8c7   : > { %2714 = vst.msk [vmem:[#allocation3 + $0x4] sm:$0xf] %vm2712_vm15, %v2709_v5 }
 0x8ca   : > { %v2871_v17 = vpop.permute.xlu1 %2870 }
 0x8cb   : > { %2877 = vst.msk [vmem:[#allocation3] sm:$0xf] %vm2876_vm0, %v2871_v17 }
 0x8ce   : > { %v2873_v11 = vpop.permute.xlu0 %2872 }
 0x8cf   : > { %2878 = vst.msk [vmem:[#allocation3 + $0x4] sm:$0xf] %vm2876_vm0, %v2873_v11 }
 0x8d2   : > { %v3035_v15 = vpop.permute.xlu1 %3034 }
 0x8d3   : > { %3041 = vst.msk [vmem:[#allocation3] sm:$0xf] %vm3040_vm1, %v3035_v15 }
 0x8d6   : > { %v3037_v63 = vpop.permute.xlu0 %3036 }
 0x8d7   : > { %3042 = vst.msk [vmem:[#allocation3 + $0x4] sm:$0xf] %vm3040_vm1, %v3037_v63 }
 0x8da   : > { %v3199_v24 = vpop.permute.xlu1 %3198 }
 0x8db   : > { %3205 = vst.msk [vmem:[#allocation3] sm:$0xf] %vm3204_vm2, %v3199_v24 }
 0x8de   : > { %v3201_v0 = vpop.permute.xlu0 %3200 }
 0x8df   : > { %3206 = vst.msk [vmem:[#allocation3 + $0x4] sm:$0xf] %vm3204_vm2, %v3201_v0 }
 0x8e6   : > { %v4045_v51 = vld [vmem:[#allocation3] sm:$0xff]  }
 0x8e7   : > { %3928 = vmatmul.mubr.bf16.vlgmr.msra.gmra.mxu0 %v4045_v51 }
 0x9a7   : > { %v3320_v56 = vpop.f32.mrf.mxu0 }
 0x9a8   : > { %v3321_v30 = vadd.f32 %v3567_v33, %v3320_v56 }
 0x9a9   : > { %v3929_v45 = vpop.f32.mrf.mxu0 }
 0x9aa   : > { %v3327_v9 = vadd.f32 %v4178_v23, %v3321_v30 }
 0x9ab   : > { %v3323_v6 = vpop.f32.mrf.mxu0 }
 0x9ac   : > { %3329 = vst [vmem:[%s278_s11] sm:$0xff] %v3327_v9  ;;  %v3324_v16 = vadd.f32 %v3567_v33, %v3323_v6 }
 0x9ad   : > { %v3930_v22 = vpop.f32.mrf.mxu0 }
 0x9ae   : > { %v3328_v13 = vadd.f32 %v3324_v16, %v4265_v1 }
 0x9b0   : > { %3330 = vst [vmem:[%s278_s11 + $0x8] sm:$0xff] %v3328_v13 }
 0x9b1 PF: > { %s17_s24 = sadd.s32 1, %s4185_s24  }
 0x9b2   : > { %p14_p4 = scmp.ge.s32.totalorder %s17_s24, 4  }
 0x9b4   :  { %16 = sbr.rel (!%p14_p4) target bundleno = 1 (0x1), region = 93 }

</bundles_post_ra>
